<compile_context>
chip_gen: v7x
topology: tpu7x:2x2x1
jax: 0.10.0
libtpu: 0.0.40
codegen_flags: <defaults>
</compile_context>

<pallas_src>
import functools

import jax
import jax.numpy as jnp
from jax.experimental import pallas as pl
from jax.experimental.pallas import tpu as pltpu  # noqa: F401  (TPU backend)

# ----------------------------- config -------------------------------------
D_INPUT = 32
D_MODEL = 32
N_HEADS = 4
D_HEAD = D_MODEL // N_HEADS
D_FF = 64
N_LAYERS = 2
LN_EPS = 1e-5
LANES = 128

# ----------------- packed-parameter slab layout (row offsets) --------------
# One slab: matrices first (each padded to 128 lanes, stacked along rows),
# then one row per vector parameter.
W_EMB = 0                                   # emb_w: (D_INPUT, D_MODEL)
W_LAYER0 = D_INPUT
W_IN = 0                                    # in_w : (D_MODEL, 3*D_MODEL)
W_OUT = W_IN + D_MODEL                      # out_w: (D_MODEL, D_MODEL)
W_FF1 = W_OUT + D_MODEL                     # ff1_w: (D_MODEL, D_FF)
W_FF2 = W_FF1 + D_MODEL                     # ff2_w: (D_FF, D_MODEL)
W_PER_LAYER = W_FF2 + D_FF                  # 160 rows / layer
W_ROWS = W_LAYER0 + N_LAYERS * W_PER_LAYER  # 352 rows

V_BASE = W_ROWS                             # vector rows start here
V_EMB_B = 0
V_MOD_TXT = 1
V_MOD_VIS = 2
V_LOG_W = 3
V_LOG_B = 4
V_LAYER0 = 5
(V_IN_B, V_OUT_B, V_LN1_G, V_LN1_B, V_FF1_B, V_FF2_B, V_LN2_G, V_LN2_B) = range(8)
V_PER_LAYER = 8
V_ROWS = V_LAYER0 + N_LAYERS * V_PER_LAYER  # 21 vector rows
P_ROWS = ((V_BASE + V_ROWS + 7) // 8) * 8   # 376 rows total (multiple of 8)


# ------------------------------ kernel --------------------------------------
def _layernorm(x, g, b):
    mu = jnp.mean(x, axis=-1, keepdims=True)
    var = jnp.mean((x - mu) ** 2, axis=-1, keepdims=True)
    return (x - mu) * jax.lax.rsqrt(var + LN_EPS) * g + b


def _selector_kernel(x_ref, p_ref, out_ref, *, B, S, T, n_text, out_rows):
    f32 = jnp.float32
    x_in = x_ref[...].astype(f32)                       # (B, S, D_INPUT)
    x2 = x_in.reshape(B * S, D_INPUT)

    # ---- embedding linear (dropout = identity in eval) ----
    emb_w = p_ref[W_EMB:W_EMB + D_INPUT, 0:D_MODEL]
    emb_b = p_ref[V_BASE + V_EMB_B:V_BASE + V_EMB_B + 1, 0:D_MODEL]
    h = jnp.dot(x2, emb_w, preferred_element_type=f32) + emb_b       # (B*S, Dm)
    h3 = h.reshape(B, S, D_MODEL)

    # ---- modality encoding: text tokens -> mod[0], visual tokens -> mod[1] ----
    mod_txt = p_ref[V_BASE + V_MOD_TXT:V_BASE + V_MOD_TXT + 1, 0:D_MODEL]
    mod_vis = p_ref[V_BASE + V_MOD_VIS:V_BASE + V_MOD_VIS + 1, 0:D_MODEL]
    mod_txt = mod_txt.reshape(1, 1, D_MODEL)
    mod_vis = mod_vis.reshape(1, 1, D_MODEL)
    is_text = (jax.lax.broadcasted_iota(jnp.int32, (B, S, 1), 1) < n_text).astype(f32)
    is_text = jnp.broadcast_to(is_text, (B, S, D_MODEL))
    x3 = (h3
          + is_text * jnp.broadcast_to(mod_txt, (B, S, D_MODEL))
          + (1.0 - is_text) * jnp.broadcast_to(mod_vis, (B, S, D_MODEL)))

    scale = 1.0 / (D_HEAD ** 0.5)
    for l in range(N_LAYERS):                           # static unroll (2 layers)
        wb = W_LAYER0 + l * W_PER_LAYER
        vb = V_BASE + V_LAYER0 + l * V_PER_LAYER
        in_w = p_ref[wb + W_IN:wb + W_IN + D_MODEL, 0:3 * D_MODEL]
        out_w = p_ref[wb + W_OUT:wb + W_OUT + D_MODEL, 0:D_MODEL]
        ff1_w = p_ref[wb + W_FF1:wb + W_FF1 + D_MODEL, 0:D_FF]
        ff2_w = p_ref[wb + W_FF2:wb + W_FF2 + D_FF, 0:D_MODEL]
        in_b = p_ref[vb + V_IN_B:vb + V_IN_B + 1, 0:3 * D_MODEL]
        out_b = p_ref[vb + V_OUT_B:vb + V_OUT_B + 1, 0:D_MODEL]
        ln1_g = p_ref[vb + V_LN1_G:vb + V_LN1_G + 1, 0:D_MODEL]
        ln1_b = p_ref[vb + V_LN1_B:vb + V_LN1_B + 1, 0:D_MODEL]
        ff1_b = p_ref[vb + V_FF1_B:vb + V_FF1_B + 1, 0:D_FF]
        ff2_b = p_ref[vb + V_FF2_B:vb + V_FF2_B + 1, 0:D_MODEL]
        ln2_g = p_ref[vb + V_LN2_G:vb + V_LN2_G + 1, 0:D_MODEL]
        ln2_b = p_ref[vb + V_LN2_B:vb + V_LN2_B + 1, 0:D_MODEL]

        x2 = x3.reshape(B * S, D_MODEL)
        qkv = jnp.dot(x2, in_w, preferred_element_type=f32) + in_b   # (B*S, 3*Dm)
        qkv3 = qkv.reshape(B, S, 3 * D_MODEL)
        q = qkv3[:, :, 0:D_MODEL]                       # packed [q|k|v] layout
        k = qkv3[:, :, D_MODEL:2 * D_MODEL]
        v = qkv3[:, :, 2 * D_MODEL:3 * D_MODEL]

        attn = jnp.zeros((B * S, D_MODEL), f32)
        for hh in range(N_HEADS):                       # static unroll (4 heads)
            lo, hi = hh * D_HEAD, (hh + 1) * D_HEAD
            qh = q[:, :, lo:hi]                         # (B, S, Dh) lane slices
            kh = k[:, :, lo:hi]
            vh = v[:, :, lo:hi]
            s = jnp.einsum("bqd,bkd->bqk", qh, kh, preferred_element_type=f32) * scale
            s = s - jnp.max(s, axis=-1, keepdims=True)
            p = jnp.exp(s)
            p = p * pl.reciprocal(jnp.sum(p, axis=-1, keepdims=True), approx=True)
            oh = jnp.einsum("bqk,bkd->bqd", p, vh, preferred_element_type=f32)
            # head-concat + out-projection fused: accumulate o_h @ out_w[h block]
            attn = attn + jnp.dot(oh.reshape(B * S, D_HEAD), out_w[lo:hi, :],
                                  preferred_element_type=f32)
        attn = attn + out_b

        # post-norm encoder layer, ReLU FFN
        y = _layernorm(x2 + attn, ln1_g, ln1_b)
        hf = jnp.maximum(jnp.dot(y, ff1_w, preferred_element_type=f32) + ff1_b, 0.0)
        ff = jnp.dot(hf, ff2_w, preferred_element_type=f32) + ff2_b
        y = _layernorm(y + ff, ln2_g, ln2_b)
        x3 = y.reshape(B, S, D_MODEL)

    # ---- logits: (Dm -> 1) projection as a VPU multiply-reduce ----
    x_dtp = x3[:, n_text:, :]                                        # (B, T, Dm)
    log_w = p_ref[V_BASE + V_LOG_W:V_BASE + V_LOG_W + 1, 0:D_MODEL].reshape(1, 1, D_MODEL)
    log_b = p_ref[V_BASE + V_LOG_B:V_BASE + V_LOG_B + 1, 0:1]        # (1, 1)
    logits = jnp.sum(x_dtp * jnp.broadcast_to(log_w, (B, T, D_MODEL)), axis=-1) + log_b

    # ---- eval-mode hard selection: one-hot at first argmax over frames ----
    t_iota = jax.lax.broadcasted_iota(jnp.int32, (B, T), 1)
    m = jnp.max(logits, axis=-1, keepdims=True)
    first = jnp.min(jnp.where(logits == m, t_iota, T), axis=-1, keepdims=True)
    mask = (t_iota == first).astype(f32)                             # (B, T)

    # selected (unmodified) visual embeddings
    x_vis = x_in[:, n_text:, :]                                      # (B, T, D_INPUT)
    sel = jnp.sum(jnp.broadcast_to(mask.reshape(B, T, 1), (B, T, D_INPUT)) * x_vis,
                  axis=1)                                            # (B, D_INPUT)

    # ---- pack all results into one lane-dense (out_rows, 128) slab ----
    # rows [0, B)   : selected frames   (first D_INPUT lanes)
    # rows [B, 2B)  : selection mask    (first T lanes)
    # rows [2B, 3B) : logits            (first T lanes)
    sel_row = jnp.concatenate([sel, jnp.zeros((B, LANES - D_INPUT), f32)], axis=1)
    mask_row = jnp.concatenate([mask, jnp.zeros((B, LANES - T), f32)], axis=1)
    log_row = jnp.concatenate([logits, jnp.zeros((B, LANES - T), f32)], axis=1)
    packed = jnp.concatenate([sel_row, mask_row, log_row], axis=0)
    pad = out_rows - 3 * B
    if pad:
        packed = jnp.concatenate([packed, jnp.zeros((pad, LANES), f32)], axis=0)
    out_ref[...] = packed.astype(out_ref.dtype)                      # single full store


# ------------------------ parameter init & packing --------------------------
def init_params(key):
    def dense(k, fan_in, fan_out):
        return 0.02 * jax.random.normal(k, (fan_in, fan_out), jnp.float32)

    keys = jax.random.split(key, 3 + 4 * N_LAYERS)
    ki = iter(keys)
    params = {
        "emb_w": dense(next(ki), D_INPUT, D_MODEL),
        "emb_b": jnp.zeros((D_MODEL,), jnp.float32),
        "mod_emb": 0.02 * jax.random.normal(next(ki), (2, D_MODEL), jnp.float32),
        "log_w": dense(next(ki), D_MODEL, 1),
        "log_b": jnp.zeros((1,), jnp.float32),
        "layers": [],
    }
    for _l in range(N_LAYERS):
        params["layers"].append(
            {
                "in_w": dense(next(ki), D_MODEL, 3 * D_MODEL),
                "in_b": jnp.zeros((3 * D_MODEL,), jnp.float32),
                "out_w": dense(next(ki), D_MODEL, D_MODEL),
                "out_b": jnp.zeros((D_MODEL,), jnp.float32),
                "ln1_g": jnp.ones((D_MODEL,), jnp.float32),
                "ln1_b": jnp.zeros((D_MODEL,), jnp.float32),
                "ff1_w": dense(next(ki), D_MODEL, D_FF),
                "ff1_b": jnp.zeros((D_FF,), jnp.float32),
                "ff2_w": dense(next(ki), D_FF, D_MODEL),
                "ff2_b": jnp.zeros((D_MODEL,), jnp.float32),
                "ln2_g": jnp.ones((D_MODEL,), jnp.float32),
                "ln2_b": jnp.zeros((D_MODEL,), jnp.float32),
            }
        )
    return params


def pack_params(params):
    """Pack all weights AND vectors into a single lane-dense (P_ROWS, 128) f32 slab."""
    def put_mat(slab, r0, mat):
        rows, cols = mat.shape
        return slab.at[r0:r0 + rows, 0:cols].set(mat)

    def put_vec(slab, r, vec):
        return slab.at[r, 0:vec.shape[0]].set(vec)

    p = jnp.zeros((P_ROWS, LANES), jnp.float32)
    p = put_mat(p, W_EMB, params["emb_w"])
    for l, lp in enumerate(params["layers"]):
        base = W_LAYER0 + l * W_PER_LAYER
        p = put_mat(p, base + W_IN, lp["in_w"])
        p = put_mat(p, base + W_OUT, lp["out_w"])
        p = put_mat(p, base + W_FF1, lp["ff1_w"])
        p = put_mat(p, base + W_FF2, lp["ff2_w"])

    p = put_vec(p, V_BASE + V_EMB_B, params["emb_b"])
    p = put_vec(p, V_BASE + V_MOD_TXT, params["mod_emb"][0])
    p = put_vec(p, V_BASE + V_MOD_VIS, params["mod_emb"][1])
    p = put_vec(p, V_BASE + V_LOG_W, params["log_w"][:, 0])
    p = put_vec(p, V_BASE + V_LOG_B, params["log_b"])
    for l, lp in enumerate(params["layers"]):
        base = V_BASE + V_LAYER0 + l * V_PER_LAYER
        p = put_vec(p, base + V_IN_B, lp["in_b"])
        p = put_vec(p, base + V_OUT_B, lp["out_b"])
        p = put_vec(p, base + V_LN1_G, lp["ln1_g"])
        p = put_vec(p, base + V_LN1_B, lp["ln1_b"])
        p = put_vec(p, base + V_FF1_B, lp["ff1_b"])
        p = put_vec(p, base + V_FF2_B, lp["ff2_b"])
        p = put_vec(p, base + V_LN2_G, lp["ln2_g"])
        p = put_vec(p, base + V_LN2_B, lp["ln2_b"])
    return p


# ------------------------------ forward ------------------------------------
def selector_forward(p_slab, x_vis_seq, x_txt_query, x_txt_cands):
    """Eval-mode forward. Returns (selected_frames, selection_mask, x_logits)."""
    B, T, Din = x_vis_seq.shape
    n_text = 1 + x_txt_cands.shape[1]
    S = n_text + T
    out_rows = ((3 * B + 7) // 8) * 8

    # [query, candidates, visual] along the sequence axis (batch-first layout).
    x_in = jnp.concatenate([x_txt_query[:, None, :], x_txt_cands, x_vis_seq], axis=1)

    kern = functools.partial(_selector_kernel, B=B, S=S, T=T, n_text=n_text,
                             out_rows=out_rows)
    out = pl.pallas_call(
        kern,
        out_shape=jax.ShapeDtypeStruct((out_rows, LANES), jnp.float32),
        grid=(1,),
        in_specs=[
            pl.BlockSpec((B, S, Din), lambda i: (0, 0, 0)),
            pl.BlockSpec((P_ROWS, LANES), lambda i: (0, 0)),
        ],
        out_specs=pl.BlockSpec((out_rows, LANES), lambda i: (0, 0)),
    )(x_in, p_slab)

    selected = out[0:B, 0:Din]                               # (B, D_INPUT)
    mask_bt = out[B:2 * B, 0:T]                              # (B, T)
    logits_bt = out[2 * B:3 * B, 0:T]                        # (B, T)

    selection_mask = jnp.transpose(mask_bt)[..., None]       # (T, B, 1)
    x_logits = jnp.transpose(logits_bt)[..., None]           # (T, B, 1)
    return selected, selection_mask, x_logits


# -------------------------------- main --------------------------------------
if __name__ == "__main__":
    key = jax.random.PRNGKey(0)
    kx, kq, kc, kp = jax.random.split(key, 4)

    B, T, N_CANDS = 2, 8, 3
    x_vis_seq = jax.random.normal(kx, (B, T, D_INPUT), jnp.float32)
    x_txt_query = jax.random.normal(kq, (B, D_INPUT), jnp.float32)
    x_txt_cands = jax.random.normal(kc, (B, N_CANDS, D_INPUT), jnp.float32)

    params = init_params(kp)
    p_slab = pack_params(params)                  # packed once, outside the jit

    fwd = jax.jit(functools.partial(selector_forward, p_slab))
    selected_frames, selection_mask, x_logits = fwd(x_vis_seq, x_txt_query, x_txt_cands)
    jax.block_until_ready((selected_frames, selection_mask, x_logits))

    assert selected_frames.shape == (B, D_INPUT)
    assert selection_mask.shape == (T, B, 1)
    assert x_logits.shape == (T, B, 1)
    # selection mask is a hard one-hot over the frame axis
    assert bool(jnp.all(jnp.sum(selection_mask, axis=0) == 1.0))
    # selected frames equal the argmax-indexed original visual embeddings
    idx = jnp.argmax(x_logits[:, :, 0], axis=0)
    ref_sel = x_vis_seq[jnp.arange(B), idx]
    assert bool(jnp.allclose(selected_frames, ref_sel))

    print("KERNEL_OK")
</pallas_src>

<mosaic_0001>
module attributes {stable_mosaic.version = 11 : i64} {
  func.func @_selector_kernel(%arg0: i32, %arg1: memref<2x12x32xf32, #tpu.memory_space<vmem>>, %arg2: memref<376x128xf32, #tpu.memory_space<vmem>>, %arg3: memref<8x128xf32, #tpu.memory_space<vmem>>) attributes {dimension_semantics = [#tpu.dimension_semantics<arbitrary>], iteration_bounds = array<i64: 1>, scalar_prefetch = 0 : i64, scratch_operands = 0 : i64, tpu.core_type = #tpu.core_type<tc>, window_params = [{pipeline_mode = #tpu.pipeline_mode<synchronous>, transform_indices = @transform_0, window_bounds = array<i64: 2, 12, 32>}, {pipeline_mode = #tpu.pipeline_mode<synchronous>, transform_indices = @transform_1, window_bounds = array<i64: 376, 128>}, {pipeline_mode = #tpu.pipeline_mode<synchronous>, transform_indices = @transform_2, window_bounds = array<i64: 8, 128>}]} {
    %c0 = arith.constant 0 : index
    %c0_0 = arith.constant 0 : index
    %c0_1 = arith.constant 0 : index
    %0 = vector.load %arg1[%c0, %c0_0, %c0_1] : memref<2x12x32xf32, #tpu.memory_space<vmem>>, vector<2x12x32xf32>
    %1 = vector.shape_cast %0 : vector<2x12x32xf32> to vector<24x32xf32>
    %c0_2 = arith.constant 0 : index
    %c0_3 = arith.constant 0 : index
    %2 = vector.load %arg2[%c0_2, %c0_3] : memref<376x128xf32, #tpu.memory_space<vmem>>, vector<32x32xf32>
    %c352 = arith.constant 352 : index
    %c0_4 = arith.constant 0 : index
    %3 = vector.load %arg2[%c352, %c0_4] : memref<376x128xf32, #tpu.memory_space<vmem>>, vector<1x32xf32>
    %cst = arith.constant dense<0.000000e+00> : vector<24x32xf32>
    %4 = tpu.matmul %1, %2, %cst {dimension_numbers = #tpu.dot_dimension_numbers<[1], [0], [0], [1], [0, 0, 1, 1], [], []>} : vector<24x32xf32>, vector<32x32xf32>, vector<24x32xf32> -> vector<24x32xf32>
    %5 = vector.broadcast %3 : vector<1x32xf32> to vector<24x32xf32>
    %6 = arith.addf %4, %5 : vector<24x32xf32>
    %7 = vector.shape_cast %6 : vector<24x32xf32> to vector<2x12x32xf32>
    %c353 = arith.constant 353 : index
    %c0_5 = arith.constant 0 : index
    %8 = vector.load %arg2[%c353, %c0_5] : memref<376x128xf32, #tpu.memory_space<vmem>>, vector<1x32xf32>
    %c354 = arith.constant 354 : index
    %c0_6 = arith.constant 0 : index
    %9 = vector.load %arg2[%c354, %c0_6] : memref<376x128xf32, #tpu.memory_space<vmem>>, vector<1x32xf32>
    %10 = vector.shape_cast %8 : vector<1x32xf32> to vector<1x1x32xf32>
    %11 = vector.shape_cast %9 : vector<1x32xf32> to vector<1x1x32xf32>
    %12 = tpu.iota {dimensions = array<i32: 1>} : vector<2x12x1xi32>
    %c4_i32 = arith.constant 4 : i32
    %13 = vector.broadcast %c4_i32 : i32 to vector<2x12x1xi32>
    %14 = arith.cmpi slt, %12, %13 : vector<2x12x1xi32>
    %15 = arith.extui %14 : vector<2x12x1xi1> to vector<2x12x1xi32>
    %16 = arith.sitofp %15 : vector<2x12x1xi32> to vector<2x12x1xf32>
    %17 = vector.shape_cast %16 : vector<2x12x1xf32> to vector<2x12x1xf32>
    %18 = vector.broadcast %17 : vector<2x12x1xf32> to vector<2x12x32xf32>
    %19 = vector.shape_cast %10 : vector<1x1x32xf32> to vector<1x1x32xf32>
    %20 = vector.broadcast %19 : vector<1x1x32xf32> to vector<2x12x32xf32>
    %21 = arith.mulf %18, %20 : vector<2x12x32xf32>
    %22 = arith.addf %7, %21 : vector<2x12x32xf32>
    %cst_7 = arith.constant 1.000000e+00 : f32
    %23 = vector.broadcast %cst_7 : f32 to vector<2x12x32xf32>
    %24 = arith.subf %23, %18 : vector<2x12x32xf32>
    %25 = vector.shape_cast %11 : vector<1x1x32xf32> to vector<1x1x32xf32>
    %26 = vector.broadcast %25 : vector<1x1x32xf32> to vector<2x12x32xf32>
    %27 = arith.mulf %24, %26 : vector<2x12x32xf32>
    %28 = arith.addf %22, %27 : vector<2x12x32xf32>
    %c32 = arith.constant 32 : index
    %c0_8 = arith.constant 0 : index
    %29 = vector.load %arg2[%c32, %c0_8] : memref<376x128xf32, #tpu.memory_space<vmem>>, vector<32x96xf32>
    %c64 = arith.constant 64 : index
    %c0_9 = arith.constant 0 : index
    %30 = vector.load %arg2[%c64, %c0_9] : memref<376x128xf32, #tpu.memory_space<vmem>>, vector<32x32xf32>
    %c96 = arith.constant 96 : index
    %c0_10 = arith.constant 0 : index
    %31 = vector.load %arg2[%c96, %c0_10] : memref<376x128xf32, #tpu.memory_space<vmem>>, vector<32x64xf32>
    %c128 = arith.constant 128 : index
    %c0_11 = arith.constant 0 : index
    %32 = vector.load %arg2[%c128, %c0_11] : memref<376x128xf32, #tpu.memory_space<vmem>>, vector<64x32xf32>
    %c357 = arith.constant 357 : index
    %c0_12 = arith.constant 0 : index
    %33 = vector.load %arg2[%c357, %c0_12] : memref<376x128xf32, #tpu.memory_space<vmem>>, vector<1x96xf32>
    %c358 = arith.constant 358 : index
    %c0_13 = arith.constant 0 : index
    %34 = vector.load %arg2[%c358, %c0_13] : memref<376x128xf32, #tpu.memory_space<vmem>>, vector<1x32xf32>
    %c359 = arith.constant 359 : index
    %c0_14 = arith.constant 0 : index
    %35 = vector.load %arg2[%c359, %c0_14] : memref<376x128xf32, #tpu.memory_space<vmem>>, vector<1x32xf32>
    %c360 = arith.constant 360 : index
    %c0_15 = arith.constant 0 : index
    %36 = vector.load %arg2[%c360, %c0_15] : memref<376x128xf32, #tpu.memory_space<vmem>>, vector<1x32xf32>
    %c361 = arith.constant 361 : index
    %c0_16 = arith.constant 0 : index
    %37 = vector.load %arg2[%c361, %c0_16] : memref<376x128xf32, #tpu.memory_space<vmem>>, vector<1x64xf32>
    %c362 = arith.constant 362 : index
    %c0_17 = arith.constant 0 : index
    %38 = vector.load %arg2[%c362, %c0_17] : memref<376x128xf32, #tpu.memory_space<vmem>>, vector<1x32xf32>
    %c363 = arith.constant 363 : index
    %c0_18 = arith.constant 0 : index
    %39 = vector.load %arg2[%c363, %c0_18] : memref<376x128xf32, #tpu.memory_space<vmem>>, vector<1x32xf32>
    %c364 = arith.constant 364 : index
    %c0_19 = arith.constant 0 : index
    %40 = vector.load %arg2[%c364, %c0_19] : memref<376x128xf32, #tpu.memory_space<vmem>>, vector<1x32xf32>
    %41 = vector.shape_cast %28 : vector<2x12x32xf32> to vector<24x32xf32>
    %cst_20 = arith.constant dense<0.000000e+00> : vector<24x96xf32>
    %42 = tpu.matmul %41, %29, %cst_20 {dimension_numbers = #tpu.dot_dimension_numbers<[1], [0], [0], [1], [0, 0, 1, 1], [], []>} : vector<24x32xf32>, vector<32x96xf32>, vector<24x96xf32> -> vector<24x96xf32>
    %43 = vector.broadcast %33 : vector<1x96xf32> to vector<24x96xf32>
    %44 = arith.addf %42, %43 : vector<24x96xf32>
    %45 = vector.shape_cast %44 : vector<24x96xf32> to vector<2x12x96xf32>
    %46 = vector.extract_strided_slice %45 {offsets = [0, 0, 0], sizes = [2, 12, 32], strides = [1, 1, 1]} : vector<2x12x96xf32> to vector<2x12x32xf32>
    %47 = vector.extract_strided_slice %45 {offsets = [0, 0, 32], sizes = [2, 12, 32], strides = [1, 1, 1]} : vector<2x12x96xf32> to vector<2x12x32xf32>
    %48 = vector.extract_strided_slice %45 {offsets = [0, 0, 64], sizes = [2, 12, 32], strides = [1, 1, 1]} : vector<2x12x96xf32> to vector<2x12x32xf32>
    %cst_21 = arith.constant 0.000000e+00 : f32
    %49 = vector.broadcast %cst_21 : f32 to vector<24x32xf32>
    %50 = vector.extract_strided_slice %46 {offsets = [0, 0, 0], sizes = [2, 12, 8], strides = [1, 1, 1]} : vector<2x12x32xf32> to vector<2x12x8xf32>
    %51 = vector.extract_strided_slice %47 {offsets = [0, 0, 0], sizes = [2, 12, 8], strides = [1, 1, 1]} : vector<2x12x32xf32> to vector<2x12x8xf32>
    %52 = vector.extract_strided_slice %48 {offsets = [0, 0, 0], sizes = [2, 12, 8], strides = [1, 1, 1]} : vector<2x12x32xf32> to vector<2x12x8xf32>
    "tpu.trace_start"() <{level = 10 : i32, message = "bqd,bkd->bqk"}> : () -> ()
    %cst_22 = arith.constant dense<0.000000e+00> : vector<2x12x12xf32>
    %53 = tpu.matmul %50, %51, %cst_22 {dimension_numbers = #tpu.dot_dimension_numbers<[2], [2], [1], [1], [0, 0, 0, 1, 1, 1], [0], [0]>} : vector<2x12x8xf32>, vector<2x12x8xf32>, vector<2x12x12xf32> -> vector<2x12x12xf32>
    "tpu.trace_stop"() : () -> ()
    %cst_23 = arith.constant 0.353553385 : f32
    %54 = vector.broadcast %cst_23 : f32 to vector<2x12x12xf32>
    %55 = arith.mulf %53, %54 : vector<2x12x12xf32>
    %cst_24 = arith.constant dense<0xFF800000> : vector<2x12xf32>
    %56 = vector.multi_reduction <maximumf>, %55, %cst_24 [2] : vector<2x12x12xf32> to vector<2x12xf32>
    %57 = vector.shape_cast %56 : vector<2x12xf32> to vector<2x12x1xf32>
    %58 = vector.broadcast %57 : vector<2x12x1xf32> to vector<2x12x12xf32>
    %59 = arith.subf %55, %58 : vector<2x12x12xf32>
    %60 = math.exp %59 : vector<2x12x12xf32>
    %cst_25 = arith.constant dense<0.000000e+00> : vector<2x12xf32>
    %61 = vector.multi_reduction <add>, %60, %cst_25 [2] : vector<2x12x12xf32> to vector<2x12xf32>
    %62 = vector.shape_cast %61 : vector<2x12xf32> to vector<2x12x1xf32>
    %63 = tpu.reciprocal %62 {approx = true} : vector<2x12x1xf32> -> vector<2x12x1xf32>
    %64 = vector.broadcast %63 : vector<2x12x1xf32> to vector<2x12x12xf32>
    %65 = arith.mulf %60, %64 : vector<2x12x12xf32>
    "tpu.trace_start"() <{level = 10 : i32, message = "bqk,bkd->bqd"}> : () -> ()
    %cst_26 = arith.constant dense<0.000000e+00> : vector<2x12x8xf32>
    %66 = tpu.matmul %65, %52, %cst_26 {dimension_numbers = #tpu.dot_dimension_numbers<[2], [1], [1], [2], [0, 0, 0, 1, 1, 2], [0], [0]>} : vector<2x12x12xf32>, vector<2x12x8xf32>, vector<2x12x8xf32> -> vector<2x12x8xf32>
    "tpu.trace_stop"() : () -> ()
    %67 = vector.shape_cast %66 : vector<2x12x8xf32> to vector<24x8xf32>
    %68 = vector.extract_strided_slice %30 {offsets = [0, 0], sizes = [8, 32], strides = [1, 1]} : vector<32x32xf32> to vector<8x32xf32>
    %cst_27 = arith.constant dense<0.000000e+00> : vector<24x32xf32>
    %69 = tpu.matmul %67, %68, %cst_27 {dimension_numbers = #tpu.dot_dimension_numbers<[1], [0], [0], [1], [0, 0, 1, 1], [], []>} : vector<24x8xf32>, vector<8x32xf32>, vector<24x32xf32> -> vector<24x32xf32>
    %70 = arith.addf %49, %69 : vector<24x32xf32>
    %71 = vector.extract_strided_slice %46 {offsets = [0, 0, 8], sizes = [2, 12, 8], strides = [1, 1, 1]} : vector<2x12x32xf32> to vector<2x12x8xf32>
    %72 = vector.extract_strided_slice %47 {offsets = [0, 0, 8], sizes = [2, 12, 8], strides = [1, 1, 1]} : vector<2x12x32xf32> to vector<2x12x8xf32>
    %73 = vector.extract_strided_slice %48 {offsets = [0, 0, 8], sizes = [2, 12, 8], strides = [1, 1, 1]} : vector<2x12x32xf32> to vector<2x12x8xf32>
    "tpu.trace_start"() <{level = 10 : i32, message = "bqd,bkd->bqk"}> : () -> ()
    %cst_28 = arith.constant dense<0.000000e+00> : vector<2x12x12xf32>
    %74 = tpu.matmul %71, %72, %cst_28 {dimension_numbers = #tpu.dot_dimension_numbers<[2], [2], [1], [1], [0, 0, 0, 1, 1, 1], [0], [0]>} : vector<2x12x8xf32>, vector<2x12x8xf32>, vector<2x12x12xf32> -> vector<2x12x12xf32>
    "tpu.trace_stop"() : () -> ()
    %cst_29 = arith.constant 0.353553385 : f32
    %75 = vector.broadcast %cst_29 : f32 to vector<2x12x12xf32>
    %76 = arith.mulf %74, %75 : vector<2x12x12xf32>
    %cst_30 = arith.constant dense<0xFF800000> : vector<2x12xf32>
    %77 = vector.multi_reduction <maximumf>, %76, %cst_30 [2] : vector<2x12x12xf32> to vector<2x12xf32>
    %78 = vector.shape_cast %77 : vector<2x12xf32> to vector<2x12x1xf32>
    %79 = vector.broadcast %78 : vector<2x12x1xf32> to vector<2x12x12xf32>
    %80 = arith.subf %76, %79 : vector<2x12x12xf32>
    %81 = math.exp %80 : vector<2x12x12xf32>
    %cst_31 = arith.constant dense<0.000000e+00> : vector<2x12xf32>
    %82 = vector.multi_reduction <add>, %81, %cst_31 [2] : vector<2x12x12xf32> to vector<2x12xf32>
    %83 = vector.shape_cast %82 : vector<2x12xf32> to vector<2x12x1xf32>
    %84 = tpu.reciprocal %83 {approx = true} : vector<2x12x1xf32> -> vector<2x12x1xf32>
    %85 = vector.broadcast %84 : vector<2x12x1xf32> to vector<2x12x12xf32>
    %86 = arith.mulf %81, %85 : vector<2x12x12xf32>
    "tpu.trace_start"() <{level = 10 : i32, message = "bqk,bkd->bqd"}> : () -> ()
    %cst_32 = arith.constant dense<0.000000e+00> : vector<2x12x8xf32>
    %87 = tpu.matmul %86, %73, %cst_32 {dimension_numbers = #tpu.dot_dimension_numbers<[2], [1], [1], [2], [0, 0, 0, 1, 1, 2], [0], [0]>} : vector<2x12x12xf32>, vector<2x12x8xf32>, vector<2x12x8xf32> -> vector<2x12x8xf32>
    "tpu.trace_stop"() : () -> ()
    %88 = vector.shape_cast %87 : vector<2x12x8xf32> to vector<24x8xf32>
    %89 = vector.extract_strided_slice %30 {offsets = [8, 0], sizes = [8, 32], strides = [1, 1]} : vector<32x32xf32> to vector<8x32xf32>
    %cst_33 = arith.constant dense<0.000000e+00> : vector<24x32xf32>
    %90 = tpu.matmul %88, %89, %cst_33 {dimension_numbers = #tpu.dot_dimension_numbers<[1], [0], [0], [1], [0, 0, 1, 1], [], []>} : vector<24x8xf32>, vector<8x32xf32>, vector<24x32xf32> -> vector<24x32xf32>
    %91 = arith.addf %70, %90 : vector<24x32xf32>
    %92 = vector.extract_strided_slice %46 {offsets = [0, 0, 16], sizes = [2, 12, 8], strides = [1, 1, 1]} : vector<2x12x32xf32> to vector<2x12x8xf32>
    %93 = vector.extract_strided_slice %47 {offsets = [0, 0, 16], sizes = [2, 12, 8], strides = [1, 1, 1]} : vector<2x12x32xf32> to vector<2x12x8xf32>
    %94 = vector.extract_strided_slice %48 {offsets = [0, 0, 16], sizes = [2, 12, 8], strides = [1, 1, 1]} : vector<2x12x32xf32> to vector<2x12x8xf32>
    "tpu.trace_start"() <{level = 10 : i32, message = "bqd,bkd->bqk"}> : () -> ()
    %cst_34 = arith.constant dense<0.000000e+00> : vector<2x12x12xf32>
    %95 = tpu.matmul %92, %93, %cst_34 {dimension_numbers = #tpu.dot_dimension_numbers<[2], [2], [1], [1], [0, 0, 0, 1, 1, 1], [0], [0]>} : vector<2x12x8xf32>, vector<2x12x8xf32>, vector<2x12x12xf32> -> vector<2x12x12xf32>
    "tpu.trace_stop"() : () -> ()
    %cst_35 = arith.constant 0.353553385 : f32
    %96 = vector.broadcast %cst_35 : f32 to vector<2x12x12xf32>
    %97 = arith.mulf %95, %96 : vector<2x12x12xf32>
    %cst_36 = arith.constant dense<0xFF800000> : vector<2x12xf32>
    %98 = vector.multi_reduction <maximumf>, %97, %cst_36 [2] : vector<2x12x12xf32> to vector<2x12xf32>
    %99 = vector.shape_cast %98 : vector<2x12xf32> to vector<2x12x1xf32>
    %100 = vector.broadcast %99 : vector<2x12x1xf32> to vector<2x12x12xf32>
    %101 = arith.subf %97, %100 : vector<2x12x12xf32>
    %102 = math.exp %101 : vector<2x12x12xf32>
    %cst_37 = arith.constant dense<0.000000e+00> : vector<2x12xf32>
    %103 = vector.multi_reduction <add>, %102, %cst_37 [2] : vector<2x12x12xf32> to vector<2x12xf32>
    %104 = vector.shape_cast %103 : vector<2x12xf32> to vector<2x12x1xf32>
    %105 = tpu.reciprocal %104 {approx = true} : vector<2x12x1xf32> -> vector<2x12x1xf32>
    %106 = vector.broadcast %105 : vector<2x12x1xf32> to vector<2x12x12xf32>
    %107 = arith.mulf %102, %106 : vector<2x12x12xf32>
    "tpu.trace_start"() <{level = 10 : i32, message = "bqk,bkd->bqd"}> : () -> ()
    %cst_38 = arith.constant dense<0.000000e+00> : vector<2x12x8xf32>
    %108 = tpu.matmul %107, %94, %cst_38 {dimension_numbers = #tpu.dot_dimension_numbers<[2], [1], [1], [2], [0, 0, 0, 1, 1, 2], [0], [0]>} : vector<2x12x12xf32>, vector<2x12x8xf32>, vector<2x12x8xf32> -> vector<2x12x8xf32>
    "tpu.trace_stop"() : () -> ()
    %109 = vector.shape_cast %108 : vector<2x12x8xf32> to vector<24x8xf32>
    %110 = vector.extract_strided_slice %30 {offsets = [16, 0], sizes = [8, 32], strides = [1, 1]} : vector<32x32xf32> to vector<8x32xf32>
    %cst_39 = arith.constant dense<0.000000e+00> : vector<24x32xf32>
    %111 = tpu.matmul %109, %110, %cst_39 {dimension_numbers = #tpu.dot_dimension_numbers<[1], [0], [0], [1], [0, 0, 1, 1], [], []>} : vector<24x8xf32>, vector<8x32xf32>, vector<24x32xf32> -> vector<24x32xf32>
    %112 = arith.addf %91, %111 : vector<24x32xf32>
    %113 = vector.extract_strided_slice %46 {offsets = [0, 0, 24], sizes = [2, 12, 8], strides = [1, 1, 1]} : vector<2x12x32xf32> to vector<2x12x8xf32>
    %114 = vector.extract_strided_slice %47 {offsets = [0, 0, 24], sizes = [2, 12, 8], strides = [1, 1, 1]} : vector<2x12x32xf32> to vector<2x12x8xf32>
    %115 = vector.extract_strided_slice %48 {offsets = [0, 0, 24], sizes = [2, 12, 8], strides = [1, 1, 1]} : vector<2x12x32xf32> to vector<2x12x8xf32>
    "tpu.trace_start"() <{level = 10 : i32, message = "bqd,bkd->bqk"}> : () -> ()
    %cst_40 = arith.constant dense<0.000000e+00> : vector<2x12x12xf32>
    %116 = tpu.matmul %113, %114, %cst_40 {dimension_numbers = #tpu.dot_dimension_numbers<[2], [2], [1], [1], [0, 0, 0, 1, 1, 1], [0], [0]>} : vector<2x12x8xf32>, vector<2x12x8xf32>, vector<2x12x12xf32> -> vector<2x12x12xf32>
    "tpu.trace_stop"() : () -> ()
    %cst_41 = arith.constant 0.353553385 : f32
    %117 = vector.broadcast %cst_41 : f32 to vector<2x12x12xf32>
    %118 = arith.mulf %116, %117 : vector<2x12x12xf32>
    %cst_42 = arith.constant dense<0xFF800000> : vector<2x12xf32>
    %119 = vector.multi_reduction <maximumf>, %118, %cst_42 [2] : vector<2x12x12xf32> to vector<2x12xf32>
    %120 = vector.shape_cast %119 : vector<2x12xf32> to vector<2x12x1xf32>
    %121 = vector.broadcast %120 : vector<2x12x1xf32> to vector<2x12x12xf32>
    %122 = arith.subf %118, %121 : vector<2x12x12xf32>
    %123 = math.exp %122 : vector<2x12x12xf32>
    %cst_43 = arith.constant dense<0.000000e+00> : vector<2x12xf32>
    %124 = vector.multi_reduction <add>, %123, %cst_43 [2] : vector<2x12x12xf32> to vector<2x12xf32>
    %125 = vector.shape_cast %124 : vector<2x12xf32> to vector<2x12x1xf32>
    %126 = tpu.reciprocal %125 {approx = true} : vector<2x12x1xf32> -> vector<2x12x1xf32>
    %127 = vector.broadcast %126 : vector<2x12x1xf32> to vector<2x12x12xf32>
    %128 = arith.mulf %123, %127 : vector<2x12x12xf32>
    "tpu.trace_start"() <{level = 10 : i32, message = "bqk,bkd->bqd"}> : () -> ()
    %cst_44 = arith.constant dense<0.000000e+00> : vector<2x12x8xf32>
    %129 = tpu.matmul %128, %115, %cst_44 {dimension_numbers = #tpu.dot_dimension_numbers<[2], [1], [1], [2], [0, 0, 0, 1, 1, 2], [0], [0]>} : vector<2x12x12xf32>, vector<2x12x8xf32>, vector<2x12x8xf32> -> vector<2x12x8xf32>
    "tpu.trace_stop"() : () -> ()
    %130 = vector.shape_cast %129 : vector<2x12x8xf32> to vector<24x8xf32>
    %131 = vector.extract_strided_slice %30 {offsets = [24, 0], sizes = [8, 32], strides = [1, 1]} : vector<32x32xf32> to vector<8x32xf32>
    %cst_45 = arith.constant dense<0.000000e+00> : vector<24x32xf32>
    %132 = tpu.matmul %130, %131, %cst_45 {dimension_numbers = #tpu.dot_dimension_numbers<[1], [0], [0], [1], [0, 0, 1, 1], [], []>} : vector<24x8xf32>, vector<8x32xf32>, vector<24x32xf32> -> vector<24x32xf32>
    %133 = arith.addf %112, %132 : vector<24x32xf32>
    %134 = vector.broadcast %34 : vector<1x32xf32> to vector<24x32xf32>
    %135 = arith.addf %133, %134 : vector<24x32xf32>
    %136 = arith.addf %41, %135 : vector<24x32xf32>
    %cst_46 = arith.constant dense<0.000000e+00> : vector<24xf32>
    %137 = vector.multi_reduction <add>, %136, %cst_46 [1] : vector<24x32xf32> to vector<24xf32>
    %138 = vector.shape_cast %137 : vector<24xf32> to vector<24x1xf32>
    %cst_47 = arith.constant 3.200000e+01 : f32
    %139 = vector.broadcast %cst_47 : f32 to vector<24x1xf32>
    %140 = arith.divf %138, %139 : vector<24x1xf32>
    %141 = vector.broadcast %140 : vector<24x1xf32> to vector<24x32xf32>
    %142 = arith.subf %136, %141 : vector<24x32xf32>
    %143 = arith.mulf %142, %142 : vector<24x32xf32>
    %cst_48 = arith.constant dense<0.000000e+00> : vector<24xf32>
    %144 = vector.multi_reduction <add>, %143, %cst_48 [1] : vector<24x32xf32> to vector<24xf32>
    %145 = vector.shape_cast %144 : vector<24xf32> to vector<24x1xf32>
    %cst_49 = arith.constant 3.200000e+01 : f32
    %146 = vector.broadcast %cst_49 : f32 to vector<24x1xf32>
    %147 = arith.divf %145, %146 : vector<24x1xf32>
    %148 = vector.broadcast %140 : vector<24x1xf32> to vector<24x32xf32>
    %149 = arith.subf %136, %148 : vector<24x32xf32>
    %cst_50 = arith.constant 9.99999974E-6 : f32
    %150 = vector.broadcast %cst_50 : f32 to vector<24x1xf32>
    %151 = arith.addf %147, %150 : vector<24x1xf32>
    %152 = math.rsqrt %151 : vector<24x1xf32>
    %153 = vector.broadcast %152 : vector<24x1xf32> to vector<24x32xf32>
    %154 = arith.mulf %149, %153 : vector<24x32xf32>
    %155 = vector.broadcast %35 : vector<1x32xf32> to vector<24x32xf32>
    %156 = arith.mulf %154, %155 : vector<24x32xf32>
    %157 = vector.broadcast %36 : vector<1x32xf32> to vector<24x32xf32>
    %158 = arith.addf %156, %157 : vector<24x32xf32>
    %cst_51 = arith.constant dense<0.000000e+00> : vector<24x64xf32>
    %159 = tpu.matmul %158, %31, %cst_51 {dimension_numbers = #tpu.dot_dimension_numbers<[1], [0], [0], [1], [0, 0, 1, 1], [], []>} : vector<24x32xf32>, vector<32x64xf32>, vector<24x64xf32> -> vector<24x64xf32>
    %160 = vector.broadcast %37 : vector<1x64xf32> to vector<24x64xf32>
    %161 = arith.addf %159, %160 : vector<24x64xf32>
    %cst_52 = arith.constant 0.000000e+00 : f32
    %162 = vector.broadcast %cst_52 : f32 to vector<24x64xf32>
    %163 = arith.maximumf %161, %162 : vector<24x64xf32>
    %cst_53 = arith.constant dense<0.000000e+00> : vector<24x32xf32>
    %164 = tpu.matmul %163, %32, %cst_53 {dimension_numbers = #tpu.dot_dimension_numbers<[1], [0], [0], [1], [0, 0, 1, 1], [], []>} : vector<24x64xf32>, vector<64x32xf32>, vector<24x32xf32> -> vector<24x32xf32>
    %165 = vector.broadcast %38 : vector<1x32xf32> to vector<24x32xf32>
    %166 = arith.addf %164, %165 : vector<24x32xf32>
    %167 = arith.addf %158, %166 : vector<24x32xf32>
    %cst_54 = arith.constant dense<0.000000e+00> : vector<24xf32>
    %168 = vector.multi_reduction <add>, %167, %cst_54 [1] : vector<24x32xf32> to vector<24xf32>
    %169 = vector.shape_cast %168 : vector<24xf32> to vector<24x1xf32>
    %cst_55 = arith.constant 3.200000e+01 : f32
    %170 = vector.broadcast %cst_55 : f32 to vector<24x1xf32>
    %171 = arith.divf %169, %170 : vector<24x1xf32>
    %172 = vector.broadcast %171 : vector<24x1xf32> to vector<24x32xf32>
    %173 = arith.subf %167, %172 : vector<24x32xf32>
    %174 = arith.mulf %173, %173 : vector<24x32xf32>
    %cst_56 = arith.constant dense<0.000000e+00> : vector<24xf32>
    %175 = vector.multi_reduction <add>, %174, %cst_56 [1] : vector<24x32xf32> to vector<24xf32>
    %176 = vector.shape_cast %175 : vector<24xf32> to vector<24x1xf32>
    %cst_57 = arith.constant 3.200000e+01 : f32
    %177 = vector.broadcast %cst_57 : f32 to vector<24x1xf32>
    %178 = arith.divf %176, %177 : vector<24x1xf32>
    %179 = vector.broadcast %171 : vector<24x1xf32> to vector<24x32xf32>
    %180 = arith.subf %167, %179 : vector<24x32xf32>
    %cst_58 = arith.constant 9.99999974E-6 : f32
    %181 = vector.broadcast %cst_58 : f32 to vector<24x1xf32>
    %182 = arith.addf %178, %181 : vector<24x1xf32>
    %183 = math.rsqrt %182 : vector<24x1xf32>
    %184 = vector.broadcast %183 : vector<24x1xf32> to vector<24x32xf32>
    %185 = arith.mulf %180, %184 : vector<24x32xf32>
    %186 = vector.broadcast %39 : vector<1x32xf32> to vector<24x32xf32>
    %187 = arith.mulf %185, %186 : vector<24x32xf32>
    %188 = vector.broadcast %40 : vector<1x32xf32> to vector<24x32xf32>
    %189 = arith.addf %187, %188 : vector<24x32xf32>
    %190 = vector.shape_cast %189 : vector<24x32xf32> to vector<2x12x32xf32>
    %c192 = arith.constant 192 : index
    %c0_59 = arith.constant 0 : index
    %191 = vector.load %arg2[%c192, %c0_59] : memref<376x128xf32, #tpu.memory_space<vmem>>, vector<32x96xf32>
    %c224 = arith.constant 224 : index
    %c0_60 = arith.constant 0 : index
    %192 = vector.load %arg2[%c224, %c0_60] : memref<376x128xf32, #tpu.memory_space<vmem>>, vector<32x32xf32>
    %c256 = arith.constant 256 : index
    %c0_61 = arith.constant 0 : index
    %193 = vector.load %arg2[%c256, %c0_61] : memref<376x128xf32, #tpu.memory_space<vmem>>, vector<32x64xf32>
    %c288 = arith.constant 288 : index
    %c0_62 = arith.constant 0 : index
    %194 = vector.load %arg2[%c288, %c0_62] : memref<376x128xf32, #tpu.memory_space<vmem>>, vector<64x32xf32>
    %c365 = arith.constant 365 : index
    %c0_63 = arith.constant 0 : index
    %195 = vector.load %arg2[%c365, %c0_63] : memref<376x128xf32, #tpu.memory_space<vmem>>, vector<1x96xf32>
    %c366 = arith.constant 366 : index
    %c0_64 = arith.constant 0 : index
    %196 = vector.load %arg2[%c366, %c0_64] : memref<376x128xf32, #tpu.memory_space<vmem>>, vector<1x32xf32>
    %c367 = arith.constant 367 : index
    %c0_65 = arith.constant 0 : index
    %197 = vector.load %arg2[%c367, %c0_65] : memref<376x128xf32, #tpu.memory_space<vmem>>, vector<1x32xf32>
    %c368 = arith.constant 368 : index
    %c0_66 = arith.constant 0 : index
    %198 = vector.load %arg2[%c368, %c0_66] : memref<376x128xf32, #tpu.memory_space<vmem>>, vector<1x32xf32>
    %c369 = arith.constant 369 : index
    %c0_67 = arith.constant 0 : index
    %199 = vector.load %arg2[%c369, %c0_67] : memref<376x128xf32, #tpu.memory_space<vmem>>, vector<1x64xf32>
    %c370 = arith.constant 370 : index
    %c0_68 = arith.constant 0 : index
    %200 = vector.load %arg2[%c370, %c0_68] : memref<376x128xf32, #tpu.memory_space<vmem>>, vector<1x32xf32>
    %c371 = arith.constant 371 : index
    %c0_69 = arith.constant 0 : index
    %201 = vector.load %arg2[%c371, %c0_69] : memref<376x128xf32, #tpu.memory_space<vmem>>, vector<1x32xf32>
    %c372 = arith.constant 372 : index
    %c0_70 = arith.constant 0 : index
    %202 = vector.load %arg2[%c372, %c0_70] : memref<376x128xf32, #tpu.memory_space<vmem>>, vector<1x32xf32>
    %203 = vector.shape_cast %190 : vector<2x12x32xf32> to vector<24x32xf32>
    %cst_71 = arith.constant dense<0.000000e+00> : vector<24x96xf32>
    %204 = tpu.matmul %203, %191, %cst_71 {dimension_numbers = #tpu.dot_dimension_numbers<[1], [0], [0], [1], [0, 0, 1, 1], [], []>} : vector<24x32xf32>, vector<32x96xf32>, vector<24x96xf32> -> vector<24x96xf32>
    %205 = vector.broadcast %195 : vector<1x96xf32> to vector<24x96xf32>
    %206 = arith.addf %204, %205 : vector<24x96xf32>
    %207 = vector.shape_cast %206 : vector<24x96xf32> to vector<2x12x96xf32>
    %208 = vector.extract_strided_slice %207 {offsets = [0, 0, 0], sizes = [2, 12, 32], strides = [1, 1, 1]} : vector<2x12x96xf32> to vector<2x12x32xf32>
    %209 = vector.extract_strided_slice %207 {offsets = [0, 0, 32], sizes = [2, 12, 32], strides = [1, 1, 1]} : vector<2x12x96xf32> to vector<2x12x32xf32>
    %210 = vector.extract_strided_slice %207 {offsets = [0, 0, 64], sizes = [2, 12, 32], strides = [1, 1, 1]} : vector<2x12x96xf32> to vector<2x12x32xf32>
    %cst_72 = arith.constant 0.000000e+00 : f32
    %211 = vector.broadcast %cst_72 : f32 to vector<24x32xf32>
    %212 = vector.extract_strided_slice %208 {offsets = [0, 0, 0], sizes = [2, 12, 8], strides = [1, 1, 1]} : vector<2x12x32xf32> to vector<2x12x8xf32>
    %213 = vector.extract_strided_slice %209 {offsets = [0, 0, 0], sizes = [2, 12, 8], strides = [1, 1, 1]} : vector<2x12x32xf32> to vector<2x12x8xf32>
    %214 = vector.extract_strided_slice %210 {offsets = [0, 0, 0], sizes = [2, 12, 8], strides = [1, 1, 1]} : vector<2x12x32xf32> to vector<2x12x8xf32>
    "tpu.trace_start"() <{level = 10 : i32, message = "bqd,bkd->bqk"}> : () -> ()
    %cst_73 = arith.constant dense<0.000000e+00> : vector<2x12x12xf32>
    %215 = tpu.matmul %212, %213, %cst_73 {dimension_numbers = #tpu.dot_dimension_numbers<[2], [2], [1], [1], [0, 0, 0, 1, 1, 1], [0], [0]>} : vector<2x12x8xf32>, vector<2x12x8xf32>, vector<2x12x12xf32> -> vector<2x12x12xf32>
    "tpu.trace_stop"() : () -> ()
    %cst_74 = arith.constant 0.353553385 : f32
    %216 = vector.broadcast %cst_74 : f32 to vector<2x12x12xf32>
    %217 = arith.mulf %215, %216 : vector<2x12x12xf32>
    %cst_75 = arith.constant dense<0xFF800000> : vector<2x12xf32>
    %218 = vector.multi_reduction <maximumf>, %217, %cst_75 [2] : vector<2x12x12xf32> to vector<2x12xf32>
    %219 = vector.shape_cast %218 : vector<2x12xf32> to vector<2x12x1xf32>
    %220 = vector.broadcast %219 : vector<2x12x1xf32> to vector<2x12x12xf32>
    %221 = arith.subf %217, %220 : vector<2x12x12xf32>
    %222 = math.exp %221 : vector<2x12x12xf32>
    %cst_76 = arith.constant dense<0.000000e+00> : vector<2x12xf32>
    %223 = vector.multi_reduction <add>, %222, %cst_76 [2] : vector<2x12x12xf32> to vector<2x12xf32>
    %224 = vector.shape_cast %223 : vector<2x12xf32> to vector<2x12x1xf32>
    %225 = tpu.reciprocal %224 {approx = true} : vector<2x12x1xf32> -> vector<2x12x1xf32>
    %226 = vector.broadcast %225 : vector<2x12x1xf32> to vector<2x12x12xf32>
    %227 = arith.mulf %222, %226 : vector<2x12x12xf32>
    "tpu.trace_start"() <{level = 10 : i32, message = "bqk,bkd->bqd"}> : () -> ()
    %cst_77 = arith.constant dense<0.000000e+00> : vector<2x12x8xf32>
    %228 = tpu.matmul %227, %214, %cst_77 {dimension_numbers = #tpu.dot_dimension_numbers<[2], [1], [1], [2], [0, 0, 0, 1, 1, 2], [0], [0]>} : vector<2x12x12xf32>, vector<2x12x8xf32>, vector<2x12x8xf32> -> vector<2x12x8xf32>
    "tpu.trace_stop"() : () -> ()
    %229 = vector.shape_cast %228 : vector<2x12x8xf32> to vector<24x8xf32>
    %230 = vector.extract_strided_slice %192 {offsets = [0, 0], sizes = [8, 32], strides = [1, 1]} : vector<32x32xf32> to vector<8x32xf32>
    %cst_78 = arith.constant dense<0.000000e+00> : vector<24x32xf32>
    %231 = tpu.matmul %229, %230, %cst_78 {dimension_numbers = #tpu.dot_dimension_numbers<[1], [0], [0], [1], [0, 0, 1, 1], [], []>} : vector<24x8xf32>, vector<8x32xf32>, vector<24x32xf32> -> vector<24x32xf32>
    %232 = arith.addf %211, %231 : vector<24x32xf32>
    %233 = vector.extract_strided_slice %208 {offsets = [0, 0, 8], sizes = [2, 12, 8], strides = [1, 1, 1]} : vector<2x12x32xf32> to vector<2x12x8xf32>
    %234 = vector.extract_strided_slice %209 {offsets = [0, 0, 8], sizes = [2, 12, 8], strides = [1, 1, 1]} : vector<2x12x32xf32> to vector<2x12x8xf32>
    %235 = vector.extract_strided_slice %210 {offsets = [0, 0, 8], sizes = [2, 12, 8], strides = [1, 1, 1]} : vector<2x12x32xf32> to vector<2x12x8xf32>
    "tpu.trace_start"() <{level = 10 : i32, message = "bqd,bkd->bqk"}> : () -> ()
    %cst_79 = arith.constant dense<0.000000e+00> : vector<2x12x12xf32>
    %236 = tpu.matmul %233, %234, %cst_79 {dimension_numbers = #tpu.dot_dimension_numbers<[2], [2], [1], [1], [0, 0, 0, 1, 1, 1], [0], [0]>} : vector<2x12x8xf32>, vector<2x12x8xf32>, vector<2x12x12xf32> -> vector<2x12x12xf32>
    "tpu.trace_stop"() : () -> ()
    %cst_80 = arith.constant 0.353553385 : f32
    %237 = vector.broadcast %cst_80 : f32 to vector<2x12x12xf32>
    %238 = arith.mulf %236, %237 : vector<2x12x12xf32>
    %cst_81 = arith.constant dense<0xFF800000> : vector<2x12xf32>
    %239 = vector.multi_reduction <maximumf>, %238, %cst_81 [2] : vector<2x12x12xf32> to vector<2x12xf32>
    %240 = vector.shape_cast %239 : vector<2x12xf32> to vector<2x12x1xf32>
    %241 = vector.broadcast %240 : vector<2x12x1xf32> to vector<2x12x12xf32>
    %242 = arith.subf %238, %241 : vector<2x12x12xf32>
    %243 = math.exp %242 : vector<2x12x12xf32>
    %cst_82 = arith.constant dense<0.000000e+00> : vector<2x12xf32>
    %244 = vector.multi_reduction <add>, %243, %cst_82 [2] : vector<2x12x12xf32> to vector<2x12xf32>
    %245 = vector.shape_cast %244 : vector<2x12xf32> to vector<2x12x1xf32>
    %246 = tpu.reciprocal %245 {approx = true} : vector<2x12x1xf32> -> vector<2x12x1xf32>
    %247 = vector.broadcast %246 : vector<2x12x1xf32> to vector<2x12x12xf32>
    %248 = arith.mulf %243, %247 : vector<2x12x12xf32>
    "tpu.trace_start"() <{level = 10 : i32, message = "bqk,bkd->bqd"}> : () -> ()
    %cst_83 = arith.constant dense<0.000000e+00> : vector<2x12x8xf32>
    %249 = tpu.matmul %248, %235, %cst_83 {dimension_numbers = #tpu.dot_dimension_numbers<[2], [1], [1], [2], [0, 0, 0, 1, 1, 2], [0], [0]>} : vector<2x12x12xf32>, vector<2x12x8xf32>, vector<2x12x8xf32> -> vector<2x12x8xf32>
    "tpu.trace_stop"() : () -> ()
    %250 = vector.shape_cast %249 : vector<2x12x8xf32> to vector<24x8xf32>
    %251 = vector.extract_strided_slice %192 {offsets = [8, 0], sizes = [8, 32], strides = [1, 1]} : vector<32x32xf32> to vector<8x32xf32>
    %cst_84 = arith.constant dense<0.000000e+00> : vector<24x32xf32>
    %252 = tpu.matmul %250, %251, %cst_84 {dimension_numbers = #tpu.dot_dimension_numbers<[1], [0], [0], [1], [0, 0, 1, 1], [], []>} : vector<24x8xf32>, vector<8x32xf32>, vector<24x32xf32> -> vector<24x32xf32>
    %253 = arith.addf %232, %252 : vector<24x32xf32>
    %254 = vector.extract_strided_slice %208 {offsets = [0, 0, 16], sizes = [2, 12, 8], strides = [1, 1, 1]} : vector<2x12x32xf32> to vector<2x12x8xf32>
    %255 = vector.extract_strided_slice %209 {offsets = [0, 0, 16], sizes = [2, 12, 8], strides = [1, 1, 1]} : vector<2x12x32xf32> to vector<2x12x8xf32>
    %256 = vector.extract_strided_slice %210 {offsets = [0, 0, 16], sizes = [2, 12, 8], strides = [1, 1, 1]} : vector<2x12x32xf32> to vector<2x12x8xf32>
    "tpu.trace_start"() <{level = 10 : i32, message = "bqd,bkd->bqk"}> : () -> ()
    %cst_85 = arith.constant dense<0.000000e+00> : vector<2x12x12xf32>
    %257 = tpu.matmul %254, %255, %cst_85 {dimension_numbers = #tpu.dot_dimension_numbers<[2], [2], [1], [1], [0, 0, 0, 1, 1, 1], [0], [0]>} : vector<2x12x8xf32>, vector<2x12x8xf32>, vector<2x12x12xf32> -> vector<2x12x12xf32>
    "tpu.trace_stop"() : () -> ()
    %cst_86 = arith.constant 0.353553385 : f32
    %258 = vector.broadcast %cst_86 : f32 to vector<2x12x12xf32>
    %259 = arith.mulf %257, %258 : vector<2x12x12xf32>
    %cst_87 = arith.constant dense<0xFF800000> : vector<2x12xf32>
    %260 = vector.multi_reduction <maximumf>, %259, %cst_87 [2] : vector<2x12x12xf32> to vector<2x12xf32>
    %261 = vector.shape_cast %260 : vector<2x12xf32> to vector<2x12x1xf32>
    %262 = vector.broadcast %261 : vector<2x12x1xf32> to vector<2x12x12xf32>
    %263 = arith.subf %259, %262 : vector<2x12x12xf32>
    %264 = math.exp %263 : vector<2x12x12xf32>
    %cst_88 = arith.constant dense<0.000000e+00> : vector<2x12xf32>
    %265 = vector.multi_reduction <add>, %264, %cst_88 [2] : vector<2x12x12xf32> to vector<2x12xf32>
    %266 = vector.shape_cast %265 : vector<2x12xf32> to vector<2x12x1xf32>
    %267 = tpu.reciprocal %266 {approx = true} : vector<2x12x1xf32> -> vector<2x12x1xf32>
    %268 = vector.broadcast %267 : vector<2x12x1xf32> to vector<2x12x12xf32>
    %269 = arith.mulf %264, %268 : vector<2x12x12xf32>
    "tpu.trace_start"() <{level = 10 : i32, message = "bqk,bkd->bqd"}> : () -> ()
    %cst_89 = arith.constant dense<0.000000e+00> : vector<2x12x8xf32>
    %270 = tpu.matmul %269, %256, %cst_89 {dimension_numbers = #tpu.dot_dimension_numbers<[2], [1], [1], [2], [0, 0, 0, 1, 1, 2], [0], [0]>} : vector<2x12x12xf32>, vector<2x12x8xf32>, vector<2x12x8xf32> -> vector<2x12x8xf32>
    "tpu.trace_stop"() : () -> ()
    %271 = vector.shape_cast %270 : vector<2x12x8xf32> to vector<24x8xf32>
    %272 = vector.extract_strided_slice %192 {offsets = [16, 0], sizes = [8, 32], strides = [1, 1]} : vector<32x32xf32> to vector<8x32xf32>
    %cst_90 = arith.constant dense<0.000000e+00> : vector<24x32xf32>
    %273 = tpu.matmul %271, %272, %cst_90 {dimension_numbers = #tpu.dot_dimension_numbers<[1], [0], [0], [1], [0, 0, 1, 1], [], []>} : vector<24x8xf32>, vector<8x32xf32>, vector<24x32xf32> -> vector<24x32xf32>
    %274 = arith.addf %253, %273 : vector<24x32xf32>
    %275 = vector.extract_strided_slice %208 {offsets = [0, 0, 24], sizes = [2, 12, 8], strides = [1, 1, 1]} : vector<2x12x32xf32> to vector<2x12x8xf32>
    %276 = vector.extract_strided_slice %209 {offsets = [0, 0, 24], sizes = [2, 12, 8], strides = [1, 1, 1]} : vector<2x12x32xf32> to vector<2x12x8xf32>
    %277 = vector.extract_strided_slice %210 {offsets = [0, 0, 24], sizes = [2, 12, 8], strides = [1, 1, 1]} : vector<2x12x32xf32> to vector<2x12x8xf32>
    "tpu.trace_start"() <{level = 10 : i32, message = "bqd,bkd->bqk"}> : () -> ()
    %cst_91 = arith.constant dense<0.000000e+00> : vector<2x12x12xf32>
    %278 = tpu.matmul %275, %276, %cst_91 {dimension_numbers = #tpu.dot_dimension_numbers<[2], [2], [1], [1], [0, 0, 0, 1, 1, 1], [0], [0]>} : vector<2x12x8xf32>, vector<2x12x8xf32>, vector<2x12x12xf32> -> vector<2x12x12xf32>
    "tpu.trace_stop"() : () -> ()
    %cst_92 = arith.constant 0.353553385 : f32
    %279 = vector.broadcast %cst_92 : f32 to vector<2x12x12xf32>
    %280 = arith.mulf %278, %279 : vector<2x12x12xf32>
    %cst_93 = arith.constant dense<0xFF800000> : vector<2x12xf32>
    %281 = vector.multi_reduction <maximumf>, %280, %cst_93 [2] : vector<2x12x12xf32> to vector<2x12xf32>
    %282 = vector.shape_cast %281 : vector<2x12xf32> to vector<2x12x1xf32>
    %283 = vector.broadcast %282 : vector<2x12x1xf32> to vector<2x12x12xf32>
    %284 = arith.subf %280, %283 : vector<2x12x12xf32>
    %285 = math.exp %284 : vector<2x12x12xf32>
    %cst_94 = arith.constant dense<0.000000e+00> : vector<2x12xf32>
    %286 = vector.multi_reduction <add>, %285, %cst_94 [2] : vector<2x12x12xf32> to vector<2x12xf32>
    %287 = vector.shape_cast %286 : vector<2x12xf32> to vector<2x12x1xf32>
    %288 = tpu.reciprocal %287 {approx = true} : vector<2x12x1xf32> -> vector<2x12x1xf32>
    %289 = vector.broadcast %288 : vector<2x12x1xf32> to vector<2x12x12xf32>
    %290 = arith.mulf %285, %289 : vector<2x12x12xf32>
    "tpu.trace_start"() <{level = 10 : i32, message = "bqk,bkd->bqd"}> : () -> ()
    %cst_95 = arith.constant dense<0.000000e+00> : vector<2x12x8xf32>
    %291 = tpu.matmul %290, %277, %cst_95 {dimension_numbers = #tpu.dot_dimension_numbers<[2], [1], [1], [2], [0, 0, 0, 1, 1, 2], [0], [0]>} : vector<2x12x12xf32>, vector<2x12x8xf32>, vector<2x12x8xf32> -> vector<2x12x8xf32>
    "tpu.trace_stop"() : () -> ()
    %292 = vector.shape_cast %291 : vector<2x12x8xf32> to vector<24x8xf32>
    %293 = vector.extract_strided_slice %192 {offsets = [24, 0], sizes = [8, 32], strides = [1, 1]} : vector<32x32xf32> to vector<8x32xf32>
    %cst_96 = arith.constant dense<0.000000e+00> : vector<24x32xf32>
    %294 = tpu.matmul %292, %293, %cst_96 {dimension_numbers = #tpu.dot_dimension_numbers<[1], [0], [0], [1], [0, 0, 1, 1], [], []>} : vector<24x8xf32>, vector<8x32xf32>, vector<24x32xf32> -> vector<24x32xf32>
    %295 = arith.addf %274, %294 : vector<24x32xf32>
    %296 = vector.broadcast %196 : vector<1x32xf32> to vector<24x32xf32>
    %297 = arith.addf %295, %296 : vector<24x32xf32>
    %298 = arith.addf %203, %297 : vector<24x32xf32>
    %cst_97 = arith.constant dense<0.000000e+00> : vector<24xf32>
    %299 = vector.multi_reduction <add>, %298, %cst_97 [1] : vector<24x32xf32> to vector<24xf32>
    %300 = vector.shape_cast %299 : vector<24xf32> to vector<24x1xf32>
    %cst_98 = arith.constant 3.200000e+01 : f32
    %301 = vector.broadcast %cst_98 : f32 to vector<24x1xf32>
    %302 = arith.divf %300, %301 : vector<24x1xf32>
    %303 = vector.broadcast %302 : vector<24x1xf32> to vector<24x32xf32>
    %304 = arith.subf %298, %303 : vector<24x32xf32>
    %305 = arith.mulf %304, %304 : vector<24x32xf32>
    %cst_99 = arith.constant dense<0.000000e+00> : vector<24xf32>
    %306 = vector.multi_reduction <add>, %305, %cst_99 [1] : vector<24x32xf32> to vector<24xf32>
    %307 = vector.shape_cast %306 : vector<24xf32> to vector<24x1xf32>
    %cst_100 = arith.constant 3.200000e+01 : f32
    %308 = vector.broadcast %cst_100 : f32 to vector<24x1xf32>
    %309 = arith.divf %307, %308 : vector<24x1xf32>
    %310 = vector.broadcast %302 : vector<24x1xf32> to vector<24x32xf32>
    %311 = arith.subf %298, %310 : vector<24x32xf32>
    %cst_101 = arith.constant 9.99999974E-6 : f32
    %312 = vector.broadcast %cst_101 : f32 to vector<24x1xf32>
    %313 = arith.addf %309, %312 : vector<24x1xf32>
    %314 = math.rsqrt %313 : vector<24x1xf32>
    %315 = vector.broadcast %314 : vector<24x1xf32> to vector<24x32xf32>
    %316 = arith.mulf %311, %315 : vector<24x32xf32>
    %317 = vector.broadcast %197 : vector<1x32xf32> to vector<24x32xf32>
    %318 = arith.mulf %316, %317 : vector<24x32xf32>
    %319 = vector.broadcast %198 : vector<1x32xf32> to vector<24x32xf32>
    %320 = arith.addf %318, %319 : vector<24x32xf32>
    %cst_102 = arith.constant dense<0.000000e+00> : vector<24x64xf32>
    %321 = tpu.matmul %320, %193, %cst_102 {dimension_numbers = #tpu.dot_dimension_numbers<[1], [0], [0], [1], [0, 0, 1, 1], [], []>} : vector<24x32xf32>, vector<32x64xf32>, vector<24x64xf32> -> vector<24x64xf32>
    %322 = vector.broadcast %199 : vector<1x64xf32> to vector<24x64xf32>
    %323 = arith.addf %321, %322 : vector<24x64xf32>
    %cst_103 = arith.constant 0.000000e+00 : f32
    %324 = vector.broadcast %cst_103 : f32 to vector<24x64xf32>
    %325 = arith.maximumf %323, %324 : vector<24x64xf32>
    %cst_104 = arith.constant dense<0.000000e+00> : vector<24x32xf32>
    %326 = tpu.matmul %325, %194, %cst_104 {dimension_numbers = #tpu.dot_dimension_numbers<[1], [0], [0], [1], [0, 0, 1, 1], [], []>} : vector<24x64xf32>, vector<64x32xf32>, vector<24x32xf32> -> vector<24x32xf32>
    %327 = vector.broadcast %200 : vector<1x32xf32> to vector<24x32xf32>
    %328 = arith.addf %326, %327 : vector<24x32xf32>
    %329 = arith.addf %320, %328 : vector<24x32xf32>
    %cst_105 = arith.constant dense<0.000000e+00> : vector<24xf32>
    %330 = vector.multi_reduction <add>, %329, %cst_105 [1] : vector<24x32xf32> to vector<24xf32>
    %331 = vector.shape_cast %330 : vector<24xf32> to vector<24x1xf32>
    %cst_106 = arith.constant 3.200000e+01 : f32
    %332 = vector.broadcast %cst_106 : f32 to vector<24x1xf32>
    %333 = arith.divf %331, %332 : vector<24x1xf32>
    %334 = vector.broadcast %333 : vector<24x1xf32> to vector<24x32xf32>
    %335 = arith.subf %329, %334 : vector<24x32xf32>
    %336 = arith.mulf %335, %335 : vector<24x32xf32>
    %cst_107 = arith.constant dense<0.000000e+00> : vector<24xf32>
    %337 = vector.multi_reduction <add>, %336, %cst_107 [1] : vector<24x32xf32> to vector<24xf32>
    %338 = vector.shape_cast %337 : vector<24xf32> to vector<24x1xf32>
    %cst_108 = arith.constant 3.200000e+01 : f32
    %339 = vector.broadcast %cst_108 : f32 to vector<24x1xf32>
    %340 = arith.divf %338, %339 : vector<24x1xf32>
    %341 = vector.broadcast %333 : vector<24x1xf32> to vector<24x32xf32>
    %342 = arith.subf %329, %341 : vector<24x32xf32>
    %cst_109 = arith.constant 9.99999974E-6 : f32
    %343 = vector.broadcast %cst_109 : f32 to vector<24x1xf32>
    %344 = arith.addf %340, %343 : vector<24x1xf32>
    %345 = math.rsqrt %344 : vector<24x1xf32>
    %346 = vector.broadcast %345 : vector<24x1xf32> to vector<24x32xf32>
    %347 = arith.mulf %342, %346 : vector<24x32xf32>
    %348 = vector.broadcast %201 : vector<1x32xf32> to vector<24x32xf32>
    %349 = arith.mulf %347, %348 : vector<24x32xf32>
    %350 = vector.broadcast %202 : vector<1x32xf32> to vector<24x32xf32>
    %351 = arith.addf %349, %350 : vector<24x32xf32>
    %352 = vector.shape_cast %351 : vector<24x32xf32> to vector<2x12x32xf32>
    %353 = vector.extract_strided_slice %352 {offsets = [0, 4, 0], sizes = [2, 8, 32], strides = [1, 1, 1]} : vector<2x12x32xf32> to vector<2x8x32xf32>
    %c355 = arith.constant 355 : index
    %c0_110 = arith.constant 0 : index
    %354 = vector.load %arg2[%c355, %c0_110] : memref<376x128xf32, #tpu.memory_space<vmem>>, vector<1x32xf32>
    %355 = vector.shape_cast %354 : vector<1x32xf32> to vector<1x1x32xf32>
    %c356 = arith.constant 356 : index
    %c0_111 = arith.constant 0 : index
    %356 = vector.load %arg2[%c356, %c0_111] : memref<376x128xf32, #tpu.memory_space<vmem>>, vector<1x1xf32>
    %357 = vector.shape_cast %355 : vector<1x1x32xf32> to vector<1x1x32xf32>
    %358 = vector.broadcast %357 : vector<1x1x32xf32> to vector<2x8x32xf32>
    %359 = arith.mulf %353, %358 : vector<2x8x32xf32>
    %cst_112 = arith.constant dense<0.000000e+00> : vector<2x8xf32>
    %360 = vector.multi_reduction <add>, %359, %cst_112 [2] : vector<2x8x32xf32> to vector<2x8xf32>
    %361 = vector.broadcast %356 : vector<1x1xf32> to vector<2x8xf32>
    %362 = arith.addf %360, %361 : vector<2x8xf32>
    %363 = tpu.iota {dimensions = array<i32: 1>} : vector<2x8xi32>
    %cst_113 = arith.constant dense<0xFF800000> : vector<2xf32>
    %364 = vector.multi_reduction <maximumf>, %362, %cst_113 [1] : vector<2x8xf32> to vector<2xf32>
    %365 = vector.shape_cast %364 : vector<2xf32> to vector<2x1xf32>
    %366 = vector.broadcast %365 : vector<2x1xf32> to vector<2x8xf32>
    %367 = arith.cmpf oeq, %362, %366 : vector<2x8xf32>
    %c8_i32 = arith.constant 8 : i32
    %368 = vector.broadcast %c8_i32 : i32 to vector<2x8xi32>
    %369 = arith.select %367, %363, %368 : vector<2x8xi1>, vector<2x8xi32>
    %cst_114 = arith.constant dense<2147483647> : vector<2xi32>
    %370 = vector.multi_reduction <minsi>, %369, %cst_114 [1] : vector<2x8xi32> to vector<2xi32>
    %371 = vector.shape_cast %370 : vector<2xi32> to vector<2x1xi32>
    %372 = vector.broadcast %371 : vector<2x1xi32> to vector<2x8xi32>
    %373 = arith.cmpi eq, %363, %372 : vector<2x8xi32>
    %374 = arith.extui %373 : vector<2x8xi1> to vector<2x8xi32>
    %375 = arith.sitofp %374 : vector<2x8xi32> to vector<2x8xf32>
    %376 = vector.extract_strided_slice %0 {offsets = [0, 4, 0], sizes = [2, 8, 32], strides = [1, 1, 1]} : vector<2x12x32xf32> to vector<2x8x32xf32>
    %377 = vector.shape_cast %375 : vector<2x8xf32> to vector<2x8x1xf32>
    %378 = vector.shape_cast %377 : vector<2x8x1xf32> to vector<2x8x1xf32>
    %379 = vector.broadcast %378 : vector<2x8x1xf32> to vector<2x8x32xf32>
    %380 = arith.mulf %379, %376 : vector<2x8x32xf32>
    %cst_115 = arith.constant dense<0.000000e+00> : vector<2x32xf32>
    %381 = vector.multi_reduction <add>, %380, %cst_115 [1] : vector<2x8x32xf32> to vector<2x32xf32>
    %cst_116 = arith.constant 0.000000e+00 : f32
    %382 = vector.broadcast %cst_116 : f32 to vector<2x96xf32>
    %383 = tpu.concatenate %381, %382 in 1 : vector<2x32xf32>, vector<2x96xf32> -> vector<2x128xf32>
    %cst_117 = arith.constant 0.000000e+00 : f32
    %384 = vector.broadcast %cst_117 : f32 to vector<2x120xf32>
    %385 = tpu.concatenate %375, %384 in 1 : vector<2x8xf32>, vector<2x120xf32> -> vector<2x128xf32>
    %cst_118 = arith.constant 0.000000e+00 : f32
    %386 = vector.broadcast %cst_118 : f32 to vector<2x120xf32>
    %387 = tpu.concatenate %362, %386 in 1 : vector<2x8xf32>, vector<2x120xf32> -> vector<2x128xf32>
    %388 = tpu.concatenate %383, %385, %387 in 0 : vector<2x128xf32>, vector<2x128xf32>, vector<2x128xf32> -> vector<6x128xf32>
    %cst_119 = arith.constant 0.000000e+00 : f32
    %389 = vector.broadcast %cst_119 : f32 to vector<2x128xf32>
    %390 = tpu.concatenate %388, %389 in 0 : vector<6x128xf32>, vector<2x128xf32> -> vector<8x128xf32>
    %c0_120 = arith.constant 0 : index
    %c0_121 = arith.constant 0 : index
    %391 = vector.load %arg3[%c0_120, %c0_121] : memref<8x128xf32, #tpu.memory_space<vmem>>, vector<8x128xf32>
    tpu.vector_store %arg3[%c0_120, %c0_121], %390 {strides = array<i32>} : memref<8x128xf32, #tpu.memory_space<vmem>>, vector<8x128xf32>,
    return
  }
  func.func @transform_0(%arg0: i32) -> (i32, i32, i32) {
    %c0_i32 = arith.constant 0 : i32
    %c0_i32_0 = arith.constant 0 : i32
    %c0_i32_1 = arith.constant 0 : i32
    %c0_i32_2 = arith.constant 0 : i32
    return %c0_i32, %c0_i32_0, %c0_i32_1 : i32, i32, i32
  }
  func.func @transform_1(%arg0: i32) -> (i32, i32) {
    %c0_i32 = arith.constant 0 : i32
    %c0_i32_0 = arith.constant 0 : i32
    %c0_i32_1 = arith.constant 0 : i32
    return %c0_i32, %c0_i32_0 : i32, i32
  }
  func.func @transform_2(%arg0: i32) -> (i32, i32) {
    %c0_i32 = arith.constant 0 : i32
    %c0_i32_0 = arith.constant 0 : i32
    %c0_i32_1 = arith.constant 0 : i32
    return %c0_i32, %c0_i32_0 : i32, i32
  }
}

</mosaic_0001>

<bundles_post_ra>
// kernel: selector_forward.1
= control target key start
LH: loop header
LB: loop body
LE: loop exit
PB: predicated region body
PF: predicated region fallthrough
CT: control target
= control target key end

     0   :  { %7 = vsyncpa [#allocation3], 0  ;;  %s7334_s9 = smov [#allocation2]   ;;  %s8282_s0 = inlined_call_operand.vmem [shape: f32[2,12,32], index: 0, kind: input, shape index: {}]   ;;  %s8283_s1 = inlined_call_operand.hbm [shape: f32[376,128], index: 1, kind: input, shape index: {}]   ;;  %s8284_s2 = inlined_call_operand.vmem [shape: f32[8,128], index: 2, kind: output, shape index: {}]  }
   0x1   :  { %s15_s10 = sshll.u32 %s7334_s9, 4  ;;  %s7310_s13 = scalar_lea.hbm %s8283_s1, 6016  ;;  %s16_s10 = int_to_ptr.vmem [resolvable:$true] %s15_s10 }
   0x2   :  { %p7311_p0 = scmp.ne.s32.totalorder %s8283_s1, %s7310_s13  ;;  %p7314_p1 = scmp.lt.u32.totalorder %s7310_s13, %s8283_s1 }
   0x4   :  { %p7316_p2 = pnand %p7314_p1, %p7311_p0 }
   0x6   :  { %7319 = shalt.err (!%p7316_p2)
}
   0x7   :  { %s7320_s18 = scalar_lea.vmem %s16_s10, 6016  ;;  %p7325_p4 = scmp.lt.s32.totalorder %s16_s10, %s16_s10 }
   0x8   :  { %p7321_p3 = scmp.ne.s32.totalorder %s16_s10, %s7320_s18  ;;  %p7326_p5 = scmp.lt.s32.totalorder %s7320_s18, %s7320_s18 }
   0xa   :  { %p7327_p6 = por %p7326_p5, %p7325_p4 }
   0xc   :  { %p7328_p7 = pnand %p7327_p6, %p7321_p3 }
   0xe   :  { %7331 = shalt.err (!%p7328_p7)
}
   0xf   :  { %s7335_s19 = smov 128   ;;  %s7336_s20 = smov 8  }
  0x10   :  { %21 = dma.hbm_to_vmem [thread:$0]  %s8283_s1, 6016, %s16_s10, [#allocation3], %s7335_s19, %s7335_s19, %s7336_s20  }
  0x11   :  { %7332 = dma.done.wait [#allocation3], 6016  }
  0x12   :  { %7333 = vsyncadd [#allocation3], 4294961280  ;;  %v7337_v0 = vmov 0.0|0.0   ;;  %vm7338_vm0 = vmmov 0   ;;  %v7339_v1 = vmov 0.0   ;;  %v35_v2 = vld [vmem:[#allocation2] sm:$0xff]  ;;  %v145_v23 = vlaneseq }
  0x13   :  { %6716 = vmatprep.subr.bf16.mxu0 %v7337_v0  ;;  %6277 = vmatprep.mubr.msk.f32.mxu0 %vm7338_vm0, %v7339_v1  ;;  %v36_v3 = vld [vmem:[#allocation2 + $0x8] sm:$0xff]  ;;  %v37_v4 = vld [vmem:[#allocation2 + $0x10] sm:$0xff]  ;;  %v38_v6 = vld [vmem:[#allocation2 + $0x18] sm:$0xff]  ;;  %vm47_vm1 = vcmask 261120   ;;  %vm324_vm3 = vcmask 64512   ;;  %s7340_s30 = smov 96  }
  0x14   :  { %6962 = vmatprep.subr.bf16.mxu1 %v7337_v0  ;;  %6283 = vmatprep.mubr.msk.f32.mxu1 %vm7338_vm0, %v7339_v1  ;;  %v6717_v5 = vpack.c.bf16 %v36_v3, %v35_v2  ;;  %v25_v7 = vld [vmem:[%s8282_s0] sm:$0xff]  ;;  %v27_v9 = vld [vmem:[%s8282_s0 + $0x10] sm:$0xff]  ;;  %v6720_v10 = vpack.c.bf16 %v38_v6, %v37_v4  ;;  %v28_v11 = vld [vmem:[%s8282_s0 + $0x18] sm:$0xf]  ;;  %v7412_v24 = vshrl.u32 %v145_v23, 7  ;;  %vm500_vm5 = vcmask 97280  }
  0x15   :  { %v33_v8 = vcombine.high %v25_v7, %v25_v7  ;;  %v34_v12 = vcombine.high %v27_v9, %v27_v9  ;;  %v26_v15 = vld [vmem:[%s8282_s0 + $0x8] sm:$0xf]  ;;  %v186_v17 = vld [vmem:[#allocation2 + $0x20] sm:$0xff]  ;;  %v188_v20 = vld [vmem:[#allocation2 + $0x30] sm:$0xff]  ;;  %vm504_vm6 = vcmask 93184   ;;  %s7341_s3 = smov 64  }
  0x16   :  { %6718 = vmatpush3.bf16.msra.mxu0 %v6717_v5  ;;  %6964 = vmatpush3.bf16.msra.mxu1 %v6717_v5  ;;  %v45_v16 = vcombine.low %v26_v15, %v27_v9  ;;  %v187_v18 = vld [vmem:[#allocation2 + $0x28] sm:$0xff]  ;;  %v189_v21 = vld [vmem:[#allocation2 + $0x38] sm:$0xff]  ;;  %vm148_vm2 = vcmp.lt.s32.totalorder %v7412_v24, 4  ;;  %v5878_v26 = vld [vmem:[#allocation2 + $0x161] ss:$0 sm:$0xff]  ;;  %s7342_s4 = smov 88  }
  0x17   :  { %6719 = vmatprep.subr.bf16.mxu0 %v7337_v0  ;;  %6963 = vmatprep.subr.bf16.mxu1 %v7337_v0  ;;  %v44_v13 = vcombine.low %v25_v7, %v33_v8  ;;  %v46_v14 = vcombine.low %v34_v12, %v28_v11  ;;  %v6723_v19 = vpack.c.bf16 %v187_v18, %v186_v17  ;;  %v5877_v25 = vsel %vm148_vm2, 1.0, %v7339_v1  ;;  %v5879_v28 = vld [vmem:[#allocation2 + $0x162] ss:$0 sm:$0xff]  ;;  %v5873_v30 = vld [vmem:[#allocation2 + $0x160] ss:$0 sm:$0xff]  ;;  %vm7469_vm4 = vmpackc.low %vm324_vm3, %vm324_vm3  ;;  %s7343_s5 = smov 120  }
  0x18   :  { %v6726_v22 = vpack.c.bf16 %v189_v21, %v188_v20  ;;  %v169_v27 = vsub.f32 1.0, %v5877_v25  ;;  %v158_v29 = vmul.f32 %v5878_v26, %v5877_v25  ;;  %v159_v42 = vmul.f32 0.0, %v5878_v26  ;;  %v5880_v62 = vld [vmem:[#allocation2 + $0x165] ss:$0 sm:$0xff]  ;;  %s7345_s6 = smov 56   ;;  %s7346_s7 = smov 80  }
  0x19   :  { %vm557_vm7 = vcmask 1043456   ;;  %vm7344_vm8 = vmmov 1   ;;  %s7347_s8 = smov 112   ;;  %s7348_s9 = smov 48   ;;  %vm2656_vm10 = vcmask 523264   ;;  %vm5753_vm11 = vcmask 1041409  }
  0x1a   :  { %6721 = vmatpush3.bf16.msra.mxu0 %v6720_v10  ;;  %6965 = vmatpush3.bf16.msra.mxu1 %v6720_v10  ;;  %v175_v31 = vmul.f32 %v5879_v28, %v169_v27  ;;  %v161_v35 = vcombine.high %v158_v29, %v158_v29  ;;  %vm7504_vm9 = vmpackc.low %vm557_vm7, %vm7344_vm8  ;;  %s7349_s10 = smov 72   ;;  %s7350_s11 = smov 104   ;;  %vm5756_vm12 = vcmask 58368   ;;  %vm5862_vm2 = vcmask 1041408  }
  0x1b   :  { %6722 = vmatprep.subr.bf16.mxu1 %v7337_v0  ;;  %s7351_s12 = smov 40  }
  0x1c   :  { %v178_v39 = vcombine.high %v175_v31, %v175_v31 }
  0x1d   :  { %6278 = vmatmul.mubr.msk.f32.vlgmr.msra.gmra.mrb[0].mxu0 %vm47_vm1, %v44_v13  ;;  %6284 = vmatmul.mubr.msk.f32.vlgmr.msra.gmra.mrb[0].mxu1 %vm47_vm1, %v46_v14 }
  0x1e   :  { %6280 = vmatprep.mubr.msk.f32.mxu0 %vm7338_vm0, %v7339_v1  ;;  %6294 = vmatprep.mubr.msk.f32.mxu1 %vm7338_vm0, %v7339_v1 }
  0x1f   :  { %6724 = vmatpush3.bf16.msra.mxu1 %v6723_v19 }
  0x20   :  { %6725 = vmatprep.subr.bf16.mxu1 %v7337_v0 }
  0x21   :  { %6281 = vmatmul.mubr.msk.f32.gmra.mrb[2].mxu0 %vm47_vm1, %v45_v16 }
  0x23   :  { %6727 = vmatpush3.bf16.msra.mxu1 %v6726_v22 }
  0xf0   :  { %v120_v32 = vpop.f32.mrb[0].mxu0  ;;  %v130_v33 = vpop.f32.mrb[0].mxu1 }
  0xf1   :  { %v121_v34 = vadd.f32 %v5873_v30, %v120_v32  ;;  %v6279_v36 = vpop.f32.mrb[1].mxu0  ;;  %v131_v37 = vadd.f32 %v5873_v30, %v130_v33  ;;  %v6285_v38 = vpop.f32.mrb[1].mxu1 }
  0xf3   :  { %v137_v40 = vcombine.high %v121_v34, %v121_v34  ;;  %v163_v41 = vadd.f32 %v158_v29, %v121_v34  ;;  %v139_v43 = vcombine.high %v131_v37, %v131_v37  ;;  %v167_v49 = vadd.f32 %v161_v35, %v131_v37 }
  0xf4   :  { %v125_v44 = vpop.f32.mrb[2].mxu0 }
  0xf5   :  { %v164_v45 = vadd.f32 %v161_v35, %v137_v40  ;;  %v126_v46 = vadd.f32 %v5873_v30, %v125_v44  ;;  %v6282_v47 = vpop.f32.mrb[3].mxu0  ;;  %v7416_v48 = vadd.f32 %v175_v31, %v163_v41  ;;  %v168_v53 = vadd.f32 %v159_v42, %v139_v43 }
  0xf6   :  { %v7426_v58 = vadd.f32 %v178_v39, %v167_v49 }
  0xf7   :  { %v7418_v50 = vadd.f32 %v178_v39, %v164_v45  ;;  %v138_v51 = vcombine.high %v126_v46, %v126_v46  ;;  %v165_v52 = vadd.f32 %v159_v42, %v126_v46  ;;  %v7428_v59 = vadd.f32 %v5879_v28, %v168_v53 }
  0xf9   :  { %v224_v54 = vcombine.low %v7416_v48, %v7418_v50  ;;  %v166_v55 = vadd.f32 %v158_v29, %v138_v51  ;;  %v7422_v56 = vadd.f32 %v5879_v28, %v165_v52  ;;  %v226_v61 = vcombine.low %v7426_v58, %v7428_v59 }
  0xfb   :  { %v7424_v57 = vadd.f32 %v175_v31, %v166_v55  ;;  %6295 = vmatmul.mubr.msk.f32.vlgmr.msra.gmra.mrb[2].mxu1 %vm47_vm1, %v224_v54 }
  0xfc   :  { %6297 = vmatprep.mubr.msk.f32.mxu1 %vm7338_vm0, %v7339_v1 }
  0xfd   :  { %v225_v60 = vcombine.low %v7422_v56, %v7424_v57 }
  0xff   :  { %6298 = vmatmul.mubr.msk.f32.gmra.mrb[4].mxu1 %vm47_vm1, %v225_v60 }
 0x100   :  { %6300 = vmatprep.mubr.msk.f32.mxu1 %vm7338_vm0, %v7339_v1 }
 0x103   :  { %6301 = vmatmul.mubr.msk.f32.gmra.mrb[6].mxu1 %vm47_vm1, %v226_v61 }
 0x1ce   :  { %v299_v63 = vpop.f32.mrb[2].mxu1 }
 0x1cf   :  { %v300_v2 = vadd.f32 %v5880_v62, %v299_v63  ;;  %v6296_v3 = vpop.f32.mrb[3].mxu1 }
 0x1d1   :  { %v316_v4 = vcombine.high %v300_v2, %v300_v2 }
 0x1d2   :  { %v304_v5 = vpop.f32.mrb[4].mxu1 }
 0x1d3   :  { %v7441_v6 = vcombine.low %v300_v2, %v316_v4  ;;  %v7443_v7 = vadd.f32 %v5880_v62, %v304_v5  ;;  %v6299_v8 = vpop.f32.mrb[5].mxu1 }
 0x1d5   :  { %6307 = vmatprep.mubr.msk.f32.mxu0 %vm324_vm3, %v7441_v6  ;;  %v7449_v9 = vpack.i.bf16 %v7443_v7, %v7441_v6  ;;  %v317_v12 = vcombine.high %v7443_v7, %v7443_v7 }
 0x1d6   :  { %v309_v10 = vpop.f32.mrb[6].mxu1 }
 0x1d7   :  { %v310_v11 = vadd.f32 %v5880_v62, %v309_v10  ;;  %6990 = vrot.lane.b32.xlu0 %v7449_v9, %s7340_s30  ;;  %v6302_v13 = vpop.f32.mrb[7].mxu1 }
 0x1d9   :  { %v7455_v14 = vcombine.high %v310_v11, %v310_v11  ;;  %v7457_v15 = vcombine.low %v317_v12, %v310_v11 }
 0x1db   :  { %6314 = vmatprep.mubr.msk.f32.mxu1 %vm324_vm3, %v7457_v15  ;;  %v7463_v16 = vpack.i.bf16 %v7455_v14, %v7457_v15 }
 0x1dd   :  { %6995 = vrot.lane.b32.xlu0 %v7463_v16, %s7340_s30 }
 0x249   :  { %v6991_v17 = vpop.permute.xlu0 %6990 }
 0x24a   :  { %v6993_v18 = vunpack.i.h.bf16 %v6991_v17  ;;  %v6992_v19 = vunpack.i.l.bf16 %v6991_v17 }
 0x24c   :  { %v6728_v21 = vpack.c.bf16 %v6993_v18, %v6992_v19 }
 0x24e   :  { %6730 = vmatprep.subr.msk.bf16.mxu0 %vm7469_vm4, %v6728_v21 }
 0x24f   :  { %6733 = vmatpush3.bf16.xpose.msk.msra.mxu0 %vm7469_vm4, %v6728_v21  ;;  %v6996_v22 = vpop.permute.xlu0 %6995 }
 0x250   :  { %v6998_v25 = vunpack.i.h.bf16 %v6996_v22  ;;  %v6997_v26 = vunpack.i.l.bf16 %v6996_v22 }
 0x252   :  { %v6734_v27 = vpack.c.bf16 %v6998_v25, %v6997_v26 }
 0x254   :  { %6736 = vmatprep.subr.msk.bf16.mxu1 %vm7469_vm4, %v6734_v27 }
 0x255   :  { %6739 = vmatpush3.bf16.xpose.msk.msra.mxu1 %vm7469_vm4, %v6734_v27 }
 0x256   :  { %6308 = vmatmul.mubr.msk.f32.vlgmr.msra.gmra.mrb[4].mxu0 %vm324_vm3, %v7443_v7 }
 0x25c   :  { %6315 = vmatmul.mubr.msk.f32.vlgmr.msra.gmra.mrb[8].mxu1 %vm324_vm3, %v7455_v14 }
 0x329   :  { %v6309_v28 = vpop.f32.mrb[4].mxu0 }
 0x32a   :  { %v399_v29 = vpop.f32.mrb[5].mxu0  ;;  %v497_v31 = vmul.f32 0.35355338, %v6309_v28 }
 0x32b   :  { %v496_v30 = vmul.f32 0.35355338, %v399_v29 }
 0x32c   :  { %v505_v37 = vsel %vm504_vm6, %v497_v31, -inf }
 0x32d   :  { %v501_v32 = vsel %vm500_vm5, %v496_v30, -inf }
 0x32e   :  { %502 = vmax.xlane.f32.xlu1 %v501_v32 }
 0x32f   :  { %v6316_v33 = vpop.f32.mrb[8].mxu1 }
 0x330   :  { %v487_v34 = vpop.f32.mrb[9].mxu1  ;;  %v499_v35 = vmul.f32 0.35355338, %v6316_v33 }
 0x331   :  { %v498_v36 = vmul.f32 0.35355338, %v487_v34 }
 0x332   :  { %506 = vmax.xlane.f32.xlu1 %v505_v37  ;;  %v511_v39 = vsel %vm504_vm6, %v499_v35, -inf }
 0x333   :  { %v508_v38 = vsel %vm500_vm5, %v498_v36, -inf }
 0x334   :  { %509 = vmax.xlane.f32.xlu0 %v508_v38 }
 0x336   :  { %512 = vmax.xlane.f32.xlu1 %v511_v39 }
 0x347   :  { %7000 = vrot.lane.b32.xlu1 %v7449_v9, %s7341_s3 }
 0x34a   :  { %7005 = vrot.lane.b32.xlu0 %v7463_v16, %s7341_s3 }
 0x34b   :  { %7010 = vrot.lane.b32.xlu1 %v7449_v9, %s7342_s4 }
 0x34e   :  { %820 = vrot.lane.b32.xlu0 %v7457_v15, %s7343_s5 }
 0x34f   :  { %7015 = vrot.lane.b32.xlu1 %v7463_v16, %s7342_s4 }
 0x353   :  { %729 = vrot.lane.b32.xlu1 %v7441_v6, %s7343_s5 }
 0x357   :  { %731 = vrot.lane.b32.xlu1 %v7443_v7, %s7343_s5 }
 0x3bb   :  { %v503_v40 = vpop.xlane.xlu1 %502 }
 0x3bc   :  { %v514_v41 = vsub.f32 %v496_v30, %v503_v40 }
 0x3be   :  { %v518_v44 = vmul.f32 1.442695, %v514_v41 }
 0x3bf   :  { %v507_v42 = vpop.xlane.xlu1 %506 }
 0x3c0   :  { %v515_v43 = vsub.f32 %v497_v31, %v507_v42 }
 0x3c1   :  { %v510_v45 = vpop.xlane.xlu0 %509 }
 0x3c2   :  { %v520_v46 = vmul.f32 1.442695, %v515_v43  ;;  %v516_v52 = vsub.f32 %v498_v36, %v510_v45 }
 0x3c3   :  { %v513_v47 = vpop.xlane.xlu1 %512 }
 0x3c4   :  { %7154 = vpow2.f32 %v520_v46  ;;  %v517_v49 = vsub.f32 %v499_v35, %v513_v47  ;;  %v522_v3 = vmul.f32 1.442695, %v516_v52 }
 0x3c5   :  { %7156 = vpow2.f32 %v518_v44  ;;  %v7006_v51 = vpop.permute.xlu0 %7005 }
 0x3c6   :  { %v524_v53 = vmul.f32 1.442695, %v517_v49  ;;  %v7008_v54 = vunpack.i.h.bf16 %v7006_v51  ;;  %v7007_v55 = vunpack.i.l.bf16 %v7006_v51 }
 0x3c7   :  { %v7001_v60 = vpop.permute.xlu1 %7000 }
 0x3c8   :  { %v6746_v62 = vpack.c.bf16 %v7008_v54, %v7007_v55  ;;  %v7003_v63 = vunpack.i.h.bf16 %v7001_v60  ;;  %v7002_v2 = vunpack.i.l.bf16 %v7001_v60  ;;  %7158 = vpow2.f32 %v524_v53 }
 0x3c9   :  { %7160 = vpow2.f32 %v522_v3  ;;  %v821_v44 = vpop.permute.xlu0 %820 }
 0x3ca   :  { %v6740_v4 = vpack.c.bf16 %v7003_v63, %v7002_v2  ;;  %6748 = vmatprep.subr.msk.bf16.mxu1 %vm7504_vm9, %v6746_v62 }
 0x3cb   :  { %6751 = vmatpush3.bf16.msk.msra.mxu1 %vm7504_vm9, %v6746_v62  ;;  %v7011_v5 = vpop.permute.xlu1 %7010 }
 0x3cc   :  { %v7013_v8 = vunpack.i.h.bf16 %v7011_v5  ;;  %v7012_v10 = vunpack.i.l.bf16 %v7011_v5  ;;  %6742 = vmatprep.subr.msk.bf16.mxu0 %vm7504_vm9, %v6740_v4 }
 0x3cd   :  { %6745 = vmatpush3.bf16.msk.msra.mxu0 %vm7504_vm9, %v6740_v4 }
 0x3ce   :  { %v7155_v11 = vpop.eup %7154  ;;  %v6752_v12 = vpack.c.bf16 %v7013_v8, %v7012_v10 }
 0x3cf   :  { %v7157_v13 = vpop.eup %7156  ;;  %v7016_v17 = vpop.permute.xlu1 %7015  ;;  %v529_v18 = vsel %vm504_vm6, %v7155_v11, 0.0 }
 0x3d0   :  { %v7018_v19 = vunpack.i.h.bf16 %v7016_v17  ;;  %v7017_v21 = vunpack.i.l.bf16 %v7016_v17  ;;  %530 = vadd.xlane.f32.xlu1 %v529_v18  ;;  %6754 = vmatprep.subr.msk.bf16.mxu0 %vm7469_vm4, %v6752_v12  ;;  %v526_v25 = vsel %vm500_vm5, %v7157_v13, 0.0 }
 0x3d2   :  { %v6758_v22 = vpack.c.bf16 %v7018_v19, %v7017_v21  ;;  %v7159_v26 = vpop.eup %7158 }
 0x3d3   :  { %v535_v27 = vsel %vm504_vm6, %v7159_v26, 0.0  ;;  %v7161_v28 = vpop.eup %7160  ;;  %v730_v30 = vpop.permute.xlu1 %729 }
 0x3d4   :  { %527 = vadd.xlane.f32.xlu1 %v526_v25  ;;  %6760 = vmatprep.subr.msk.bf16.mxu1 %vm7469_vm4, %v6758_v22  ;;  %v532_v29 = vsel %vm500_vm5, %v7161_v28, 0.0 }
 0x3d7   :  { %v732_v31 = vpop.permute.xlu1 %731 }
 0x3d8   :  { %536 = vadd.xlane.f32.xlu1 %v535_v27 }
 0x3dc   :  { %533 = vadd.xlane.f32.xlu1 %v532_v29 }
 0x3ed   :  { %822 = vrot.lane.b32.xlu1 %v7455_v14, %s7343_s5 }
 0x45d   :  { %v531_v32 = vpop.xlane.xlu1 %530 }
 0x45e   :  { %7162 = vrcp.f32 %v531_v32 }
 0x461   :  { %v528_v33 = vpop.xlane.xlu1 %527 }
 0x462   :  { %7164 = vrcp.f32 %v528_v33 }
 0x465   :  { %v537_v34 = vpop.xlane.xlu1 %536 }
 0x466   :  { %7166 = vrcp.f32 %v537_v34 }
 0x468   :  { %v7163_v36 = vpop.eup %7162 }
 0x469   :  { %v534_v35 = vpop.xlane.xlu1 %533  ;;  %v543_v39 = vmul.f32 %v7163_v36, %v7155_v11 }
 0x46a   :  { %7168 = vrcp.f32 %v534_v35 }
 0x46c   :  { %v7165_v37 = vpop.eup %7164 }
 0x46d   :  { %v542_v38 = vmul.f32 %v7165_v37, %v7157_v13  ;;  %v823_v45 = vpop.permute.xlu1 %822 }
 0x46f   :  { %6321 = vmatprep.mubr.msk.f32.mxu0 %vm500_vm5, %v542_v38 }
 0x470   :  { %6322 = vmatmul.mubr.msk.f32.vlgmr.msra.gmra.mrb[6].mxu0 %vm500_vm5, %v543_v39  ;;  %v7167_v40 = vpop.eup %7166 }
 0x471   :  { %6757 = vmatpush3.bf16.xpose.msk.msra.mxu0 %vm7469_vm4, %v6752_v12  ;;  %6335 = vmatprep.mubr.msk.f32.mxu0 %vm324_vm3, %v730_v30  ;;  %v545_v43 = vmul.f32 %v7167_v40, %v7159_v26 }
 0x474   :  { %v7169_v41 = vpop.eup %7168 }
 0x475   :  { %v544_v42 = vmul.f32 %v7169_v41, %v7161_v28 }
 0x477   :  { %6328 = vmatprep.mubr.msk.f32.mxu1 %vm500_vm5, %v544_v42 }
 0x478   :  { %6336 = vmatmul.mubr.msk.f32.vlgmr.msra.gmra.mrb[8].mxu0 %vm324_vm3, %v732_v31  ;;  %6329 = vmatmul.mubr.msk.f32.vlgmr.msra.gmra.mrb[10].mxu1 %vm500_vm5, %v545_v43 }
 0x479   :  { %6763 = vmatpush3.bf16.xpose.msk.msra.mxu1 %vm7469_vm4, %v6758_v22  ;;  %6342 = vmatprep.mubr.msk.f32.mxu1 %vm324_vm3, %v821_v44 }
 0x480   :  { %6343 = vmatmul.mubr.msk.f32.vlgmr.msra.gmra.mrb[12].mxu1 %vm324_vm3, %v823_v45 }
 0x543   :  { %v7538_v46 = vpop.f32.mrb[6].mxu0 }
 0x544   :  { %v7540_v47 = vpop.f32.mrb[7].mxu0 }
 0x54b   :  { %v6337_v49 = vpop.f32.mrb[8].mxu0  ;;  %v6330_v51 = vpop.f32.mrb[10].mxu1 }
 0x54c   :  { %v912_v52 = vmul.f32 0.35355338, %v6337_v49  ;;  %v811_v53 = vpop.f32.mrb[9].mxu0  ;;  %v7542_v54 = vpop.f32.mrb[11].mxu1 }
 0x54d   :  { %v911_v55 = vmul.f32 0.35355338, %v811_v53  ;;  %v728_v60 = vcombine.high %v7542_v54, %v7542_v54  ;;  %v1231_v62 = vcombine.low %v7538_v46, %v7542_v54 }
 0x54e   :  { %v918_v63 = vsel %vm504_vm6, %v912_v52, -inf }
 0x54f   :  { %v7549_v2 = vcombine.low %v728_v60, %v6330_v51  ;;  %919 = vmax.xlane.f32.xlu1 %v918_v63  ;;  %v915_v3 = vsel %vm500_vm5, %v911_v55, -inf }
 0x550   :  { %916 = vmax.xlane.f32.xlu0 %v915_v3 }
 0x553   :  { %v6344_v4 = vpop.f32.mrb[12].mxu1 }
 0x554   :  { %v902_v5 = vpop.f32.mrb[13].mxu1  ;;  %v914_v10 = vmul.f32 0.35355338, %v6344_v4 }
 0x555   :  { %v913_v8 = vmul.f32 0.35355338, %v902_v5 }
 0x556   :  { %v924_v12 = vsel %vm504_vm6, %v914_v10, -inf }
 0x557   :  { %v921_v11 = vsel %vm500_vm5, %v913_v8, -inf }
 0x558   :  { %922 = vmax.xlane.f32.xlu0 %v921_v11 }
 0x55c   :  { %925 = vmax.xlane.f32.xlu0 %v924_v12 }
 0x5dc   :  { %v920_v13 = vpop.xlane.xlu1 %919 }
 0x5dd   :  { %v928_v17 = vsub.f32 %v912_v52, %v920_v13  ;;  %v917_v18 = vpop.xlane.xlu0 %916 }
 0x5de   :  { %v927_v19 = vsub.f32 %v911_v55, %v917_v18 }
 0x5df   :  { %v933_v21 = vmul.f32 1.442695, %v928_v17  ;;  %v191_v17 = vld [vmem:[#allocation2 + $0x48] sm:$0xff] }
 0x5e0   :  { %v931_v22 = vmul.f32 1.442695, %v927_v19 }
 0x5e1   :  { %7170 = vpow2.f32 %v933_v21 }
 0x5e2   :  { %7172 = vpow2.f32 %v931_v22 }
 0x5e5   :  { %v923_v25 = vpop.xlane.xlu0 %922 }
 0x5e6   :  { %v929_v26 = vsub.f32 %v913_v8, %v923_v25  ;;  %v727_v25 = vcombine.high %v7540_v47, %v7540_v47 }
 0x5e8   :  { %v935_v27 = vmul.f32 1.442695, %v929_v26 }
 0x5e9   :  { %v926_v28 = vpop.xlane.xlu0 %925 }
 0x5ea   :  { %7174 = vpow2.f32 %v935_v27  ;;  %v930_v29 = vsub.f32 %v914_v10, %v926_v28  ;;  %v190_v27 = vld [vmem:[#allocation2 + $0x40] sm:$0xff] }
 0x5eb   :  { %v7171_v30 = vpop.eup %7170 }
 0x5ec   :  { %v7173_v31 = vpop.eup %7172  ;;  %v937_v32 = vmul.f32 1.442695, %v930_v29  ;;  %v942_v33 = vsel %vm504_vm6, %v7171_v30, 0.0  ;;  %v1230_v29 = vcombine.low %v7540_v47, %v727_v25 }
 0x5ed   :  { %943 = vadd.xlane.f32.xlu0 %v942_v33  ;;  %v939_v34 = vsel %vm500_vm5, %v7173_v31, 0.0 }
 0x5ee   :  { %7176 = vpow2.f32 %v937_v32  ;;  %940 = vadd.xlane.f32.xlu1 %v939_v34 }
 0x5f4   :  { %v7175_v35 = vpop.eup %7174 }
 0x5f5   :  { %v945_v36 = vsel %vm500_vm5, %v7175_v35, 0.0 }
 0x5f6   :  { %946 = vadd.xlane.f32.xlu1 %v945_v36 }
 0x5f8   :  { %v7177_v37 = vpop.eup %7176 }
 0x5f9   :  { %v948_v38 = vsel %vm504_vm6, %v7177_v37, 0.0 }
 0x5fa   :  { %949 = vadd.xlane.f32.xlu0 %v948_v38 }
 0x607   :  { %7020 = vrot.lane.b32.xlu1 %v7449_v9, %s7345_s6 }
 0x60b   :  { %7030 = vrot.lane.b32.xlu1 %v7449_v9, %s7346_s7 }
 0x60f   :  { %7035 = vrot.lane.b32.xlu1 %v7463_v16, %s7346_s7 }
 0x610   :  { %7025 = vrot.lane.b32.xlu0 %v7463_v16, %s7345_s6 }
 0x613   :  { %1321 = vrot.lane.b32.xlu1 %v7443_v7, %s7347_s8 }
 0x614   :  { %1319 = vrot.lane.b32.xlu0 %v7441_v6, %s7347_s8 }
 0x617   :  { %1412 = vrot.lane.b32.xlu1 %v7455_v14, %s7347_s8 }
 0x618   :  { %1410 = vrot.lane.b32.xlu0 %v7457_v15, %s7347_s8 }
 0x67a   :  { %v944_v40 = vpop.xlane.xlu0 %943 }
 0x67b   :  { %v941_v39 = vpop.xlane.xlu1 %940 }
 0x67c   :  { %7178 = vrcp.f32 %v941_v39 }
 0x67d   :  { %7180 = vrcp.f32 %v944_v40 }
 0x683   :  { %v947_v41 = vpop.xlane.xlu1 %946 }
 0x684   :  { %7182 = vrcp.f32 %v947_v41 }
 0x686   :  { %v7179_v42 = vpop.eup %7178 }
 0x687   :  { %v7021_v43 = vpop.permute.xlu1 %7020  ;;  %v950_v44 = vpop.xlane.xlu0 %949  ;;  %v955_v45 = vmul.f32 %v7179_v42, %v7173_v31 }
 0x688   :  { %v7023_v49 = vunpack.i.h.bf16 %v7021_v43  ;;  %v7022_v51 = vunpack.i.l.bf16 %v7021_v43  ;;  %7184 = vrcp.f32 %v950_v44  ;;  %v7181_v53 = vpop.eup %7180 }
 0x689   :  { %6349 = vmatprep.mubr.msk.f32.mxu0 %vm500_vm5, %v955_v45  ;;  %v956_v11 = vmul.f32 %v7181_v53, %v7171_v30 }
 0x68a   :  { %v6764_v52 = vpack.c.bf16 %v7023_v49, %v7022_v51 }
 0x68b   :  { %v7031_v55 = vpop.permute.xlu1 %7030  ;;  %v7026_v60 = vpop.permute.xlu0 %7025 }
 0x68c   :  { %v7028_v63 = vunpack.i.h.bf16 %v7026_v60  ;;  %v7027_v3 = vunpack.i.l.bf16 %v7026_v60  ;;  %6766 = vmatprep.subr.msk.bf16.mxu0 %vm7504_vm9, %v6764_v52  ;;  %v7033_v4 = vunpack.i.h.bf16 %v7031_v55  ;;  %v7032_v5 = vunpack.i.l.bf16 %v7031_v55 }
 0x68d   :  { %6769 = vmatpush3.bf16.msk.msra.mxu0 %vm7504_vm9, %v6764_v52 }
 0x68e   :  { %v7183_v8 = vpop.eup %7182  ;;  %v6770_v10 = vpack.c.bf16 %v7028_v63, %v7027_v3  ;;  %6359 = vmatprep.subr.mxu0 %v7339_v1  ;;  %v6776_v18 = vpack.c.bf16 %v7033_v4, %v7032_v5 }
 0x68f   :  { %v7036_v12 = vpop.permute.xlu1 %7035  ;;  %v957_v13 = vmul.f32 %v7183_v8, %v7175_v35  ;;  %v1320_v30 = vpop.permute.xlu0 %1319 }
 0x690   :  { %6350 = vmatmul.mubr.msk.f32.vlgmr.msra.gmra.mrb[10].mxu0 %vm500_vm5, %v956_v11  ;;  %6772 = vmatprep.subr.msk.bf16.mxu1 %vm7504_vm9, %v6770_v10  ;;  %v7038_v19 = vunpack.i.h.bf16 %v7036_v12  ;;  %v7037_v21 = vunpack.i.l.bf16 %v7036_v12 }
 0x691   :  { %6775 = vmatpush3.bf16.msk.msra.mxu1 %vm7504_vm9, %v6770_v10  ;;  %6356 = vmatprep.mubr.msk.f32.mxu1 %vm500_vm5, %v957_v13 }
 0x692   :  { %v7185_v22 = vpop.eup %7184  ;;  %6360 = vmatpush3.msra.mxu0 %v191_v17  ;;  %6370 = vmatprep.subr.mxu1 %v7339_v1  ;;  %v6782_v28 = vpack.c.bf16 %v7038_v19, %v7037_v21 }
 0x693   :  { %6778 = vmatprep.subr.msk.bf16.mxu0 %vm7469_vm4, %v6776_v18  ;;  %v958_v26 = vmul.f32 %v7185_v22, %v7177_v37  ;;  %6361 = vmatprep.mubr.msk.f32.mxu0 %vm7338_vm0, %v7339_v1  ;;  %v1322_v31 = vpop.permute.xlu1 %1321  ;;  %v1411_v47 = vpop.permute.xlu0 %1410 }
 0x695   :  { %6357 = vmatmul.mubr.msk.f32.vlgmr.msra.gmra.mrb[14].mxu1 %vm500_vm5, %v958_v26 }
 0x696   :  { %6371 = vmatpush3.msra.mxu1 %v190_v27  ;;  %6372 = vmatprep.mubr.msk.f32.mxu1 %vm7338_vm0, %v7339_v1 }
 0x697   :  { %6784 = vmatprep.subr.msk.bf16.mxu1 %vm7469_vm4, %v6782_v28  ;;  %v1413_v32 = vpop.permute.xlu1 %1412 }
 0x699   :  { %6373 = vmatmul.mubr.msk.f32.vlgmr.msra.gmra.mrb[16].mxu1 %vm324_vm3, %v1230_v29 }
 0x69a   :  { %6375 = vmatprep.mubr.msk.f32.mxu1 %vm7338_vm0, %v7339_v1 }
 0x69d   :  { %6787 = vmatpush3.bf16.xpose.msk.msra.mxu1 %vm7469_vm4, %v6782_v28 }
 0x69e   :  { %6376 = vmatmul.mubr.msk.f32.gmra.mrb[18].mxu1 %vm324_vm3, %v1231_v62 }
 0x69f   :  { %6378 = vmatprep.mubr.msk.f32.mxu1 %vm7338_vm0, %v7339_v1 }
 0x6a2   :  { %6379 = vmatmul.mubr.msk.f32.gmra.mrb[20].mxu1 %vm324_vm3, %v7549_v2 }
 0x6a3   :  { %6392 = vmatprep.mubr.msk.f32.mxu1 %vm324_vm3, %v1411_v47 }
 0x6a6   :  { %6393 = vmatmul.mubr.msk.f32.vlgmr.msra.gmra.mrb[22].mxu1 %vm324_vm3, %v1413_v32 }
 0x763   :  { %v6351_v33 = vpop.f32.mrb[10].mxu0 }
 0x764   :  { %v1038_v34 = vpop.f32.mrb[11].mxu0 }
 0x765   :  { %v1139_v35 = vcombine.high %v1038_v34, %v1038_v34 }
 0x767   :  { %v1141_v36 = vcombine.low %v1038_v34, %v1139_v35 }
 0x768   :  { %v6358_v46 = vpop.f32.mrb[14].mxu1 }
 0x769   :  { %v1126_v54 = vpop.f32.mrb[15].mxu1  ;;  %6362 = vmatmul.mubr.msk.f32.vlgmr.msra.gmra.mrb[12].mxu0 %vm324_vm3, %v1141_v36 }
 0x76a   :  { %v1140_v62 = vcombine.high %v1126_v54, %v1126_v54  ;;  %v1142_v37 = vcombine.low %v6351_v33, %v1126_v54  ;;  %6781 = vmatpush3.bf16.xpose.msk.msra.mxu0 %vm7469_vm4, %v6776_v18  ;;  %6364 = vmatprep.mubr.msk.f32.mxu0 %vm7338_vm0, %v7339_v1 }
 0x76c   :  { %v1143_v2 = vcombine.low %v1140_v62, %v6358_v46  ;;  %v1305_v38 = vpop.f32.mrb[16].mxu1 }
 0x76d   :  { %6365 = vmatmul.mubr.msk.f32.gmra.mrb[14].mxu0 %vm324_vm3, %v1142_v37  ;;  %v6374_v39 = vpop.f32.mrb[17].mxu1 }
 0x76e   :  { %6367 = vmatprep.mubr.msk.f32.mxu0 %vm7338_vm0, %v7339_v1 }
 0x771   :  { %v1310_v40 = vpop.f32.mrb[18].mxu1  ;;  %6368 = vmatmul.mubr.msk.f32.gmra.mrb[16].mxu0 %vm324_vm3, %v1143_v2 }
 0x772   :  { %v6377_v41 = vpop.f32.mrb[19].mxu1  ;;  %6385 = vmatprep.mubr.msk.f32.mxu0 %vm324_vm3, %v1320_v30 }
 0x775   :  { %v1315_v42 = vpop.f32.mrb[20].mxu1  ;;  %6386 = vmatmul.mubr.msk.f32.vlgmr.msra.gmra.mrb[18].mxu0 %vm324_vm3, %v1322_v31 }
 0x776   :  { %v6380_v43 = vpop.f32.mrb[21].mxu1 }
 0x779   :  { %v6394_v44 = vpop.f32.mrb[22].mxu1 }
 0x77a   :  { %v1492_v45 = vpop.f32.mrb[23].mxu1  ;;  %v1504_v18 = vmul.f32 0.35355338, %v6394_v44 }
 0x77b   :  { %v1503_v13 = vmul.f32 0.35355338, %v1492_v45 }
 0x77c   :  { %v1514_v21 = vsel %vm504_vm6, %v1504_v18, -inf }
 0x77d   :  { %v1511_v19 = vsel %vm500_vm5, %v1503_v13, -inf }
 0x83c   :  { %v1216_v49 = vpop.f32.mrb[12].mxu0 }
 0x83d   :  { %v7625_v51 = vadd.f32 %v1305_v38, %v1216_v49  ;;  %v6363_v52 = vpop.f32.mrb[13].mxu0 }
 0x840   :  { %v1221_v53 = vpop.f32.mrb[14].mxu0 }
 0x841   :  { %v7627_v55 = vadd.f32 %v1310_v40, %v1221_v53  ;;  %v6366_v60 = vpop.f32.mrb[15].mxu0 }
 0x844   :  { %v1226_v63 = vpop.f32.mrb[16].mxu0 }
 0x845   :  { %v7629_v3 = vadd.f32 %v1315_v42, %v1226_v63  ;;  %v6369_v4 = vpop.f32.mrb[17].mxu0 }
 0x848   :  { %v6387_v5 = vpop.f32.mrb[18].mxu0 }
 0x849   :  { %v1502_v8 = vmul.f32 0.35355338, %v6387_v5  ;;  %v1401_v10 = vpop.f32.mrb[19].mxu0 }
 0x84a   :  { %v1501_v11 = vmul.f32 0.35355338, %v1401_v10 }
 0x84b   :  { %v1508_v12 = vsel %vm504_vm6, %v1502_v8, -inf }
 0x84c   :  { %1509 = vmax.xlane.f32.xlu1 %v1508_v12  ;;  %v1505_v17 = vsel %vm500_vm5, %v1501_v11, -inf }
 0x84d   :  { %1506 = vmax.xlane.f32.xlu0 %v1505_v17 }
 0x851   :  { %1512 = vmax.xlane.f32.xlu0 %v1511_v19 }
 0x855   :  { %1515 = vmax.xlane.f32.xlu0 %v1514_v21 }
 0x8d9   :  { %v1510_v26 = vpop.xlane.xlu1 %1509 }
 0x8da   :  { %v1507_v22 = vpop.xlane.xlu0 %1506  ;;  %v1518_v29 = vsub.f32 %v1502_v8, %v1510_v26 }
 0x8db   :  { %v1517_v25 = vsub.f32 %v1501_v11, %v1507_v22  ;;  %v192_v22 = vld [vmem:[#allocation2 + $0x50] sm:$0xff] }
 0x8dc   :  { %v1523_v33 = vmul.f32 1.442695, %v1518_v29 }
 0x8dd   :  { %v1521_v30 = vmul.f32 1.442695, %v1517_v25 }
 0x8de   :  { %v1513_v27 = vpop.xlane.xlu0 %1512 }
 0x8df   :  { %v1519_v28 = vsub.f32 %v1503_v13, %v1513_v27 }
 0x8e1   :  { %v1525_v31 = vmul.f32 1.442695, %v1519_v28 }
 0x8e2   :  { %v1516_v47 = vpop.xlane.xlu0 %1515 }
 0x8e3   :  { %7186 = vpow2.f32 %v1525_v31  ;;  %v1520_v32 = vsub.f32 %v1504_v18, %v1516_v47 }
 0x8e4   :  { %7188 = vpow2.f32 %v1521_v30 }
 0x8e5   :  { %v1527_v34 = vmul.f32 1.442695, %v1520_v32 }
 0x8e7   :  { %7190 = vpow2.f32 %v1527_v34 }
 0x8e8   :  { %7192 = vpow2.f32 %v1523_v33 }
 0x8ed   :  { %v7187_v35 = vpop.eup %7186 }
 0x8ee   :  { %v1535_v36 = vsel %vm500_vm5, %v7187_v35, 0.0  ;;  %v7189_v46 = vpop.eup %7188 }
 0x8ef   :  { %1536 = vadd.xlane.f32.xlu1 %v1535_v36  ;;  %v1529_v62 = vsel %vm500_vm5, %v7189_v46, 0.0 }
 0x8f1   :  { %v7191_v54 = vpop.eup %7190 }
 0x8f2   :  { %v1538_v37 = vsel %vm504_vm6, %v7191_v54, 0.0  ;;  %v7193_v2 = vpop.eup %7192 }
 0x8f3   :  { %1530 = vadd.xlane.f32.xlu1 %v1529_v62  ;;  %1539 = vadd.xlane.f32.xlu0 %v1538_v37  ;;  %v1532_v38 = vsel %vm504_vm6, %v7193_v2, 0.0 }
 0x8f7   :  { %1533 = vadd.xlane.f32.xlu0 %v1532_v38 }
 0x904   :  { %7040 = vrot.lane.b32.xlu1 %v7449_v9, %s7348_s9 }
 0x908   :  { %7050 = vrot.lane.b32.xlu1 %v7449_v9, %s7349_s10 }
 0x90c   :  { %7055 = vrot.lane.b32.xlu1 %v7463_v16, %s7349_s10 }
 0x90d   :  { %7045 = vrot.lane.b32.xlu0 %v7463_v16, %s7348_s9 }
 0x910   :  { %1825 = vrot.lane.b32.xlu1 %v7443_v7, %s7350_s11 }
 0x911   :  { %1823 = vrot.lane.b32.xlu0 %v7441_v6, %s7350_s11 }
 0x914   :  { %1916 = vrot.lane.b32.xlu1 %v7455_v14, %s7350_s11 }
 0x915   :  { %1914 = vrot.lane.b32.xlu0 %v7457_v15, %s7350_s11 }
 0x97c   :  { %v1537_v39 = vpop.xlane.xlu1 %1536 }
 0x97d   :  { %7194 = vrcp.f32 %v1537_v39 }
 0x980   :  { %v1531_v40 = vpop.xlane.xlu1 %1530  ;;  %v1540_v41 = vpop.xlane.xlu0 %1539 }
 0x981   :  { %7196 = vrcp.f32 %v1531_v40 }
 0x982   :  { %7198 = vrcp.f32 %v1540_v41 }
 0x984   :  { %v7041_v42 = vpop.permute.xlu1 %7040  ;;  %v1534_v43 = vpop.xlane.xlu0 %1533 }
 0x985   :  { %v7043_v44 = vunpack.i.h.bf16 %v7041_v42  ;;  %v7042_v45 = vunpack.i.l.bf16 %v7041_v42  ;;  %7200 = vrcp.f32 %v1534_v43 }
 0x987   :  { %v7195_v7 = vpop.eup %7194  ;;  %v6788_v49 = vpack.c.bf16 %v7043_v44, %v7042_v45 }
 0x988   :  { %v7051_v6 = vpop.permute.xlu1 %7050  ;;  %v7046_v52 = vpop.permute.xlu0 %7045  ;;  %v1547_v53 = vmul.f32 %v7195_v7, %v7187_v35 }
 0x989   :  { %v7053_v14 = vunpack.i.h.bf16 %v7051_v6  ;;  %v7052_v60 = vunpack.i.l.bf16 %v7051_v6  ;;  %v7048_v63 = vunpack.i.h.bf16 %v7046_v52  ;;  %v7047_v15 = vunpack.i.l.bf16 %v7046_v52  ;;  %6790 = vmatprep.subr.msk.bf16.mxu0 %vm7504_vm9, %v6788_v49 }
 0x98a   :  { %6793 = vmatpush3.bf16.msk.msra.mxu0 %vm7504_vm9, %v6788_v49  ;;  %6406 = vmatprep.mubr.msk.f32.mxu1 %vm500_vm5, %v1547_v53 }
 0x98b   :  { %v7197_v4 = vpop.eup %7196  ;;  %v6794_v5 = vpack.c.bf16 %v7048_v63, %v7047_v15  ;;  %6409 = vmatprep.subr.mxu0 %v7339_v1  ;;  %v6800_v12 = vpack.c.bf16 %v7053_v14, %v7052_v60 }
 0x98c   :  { %v7199_v8 = vpop.eup %7198  ;;  %v7056_v10 = vpop.permute.xlu1 %7055  ;;  %v1545_v11 = vmul.f32 %v7197_v4, %v7189_v46 }
 0x98d   :  { %6796 = vmatprep.subr.msk.bf16.mxu1 %vm7504_vm9, %v6794_v5  ;;  %v7058_v13 = vunpack.i.h.bf16 %v7056_v10  ;;  %v7057_v17 = vunpack.i.l.bf16 %v7056_v10  ;;  %v1548_v19 = vmul.f32 %v7199_v8, %v7191_v54  ;;  %v1824_v25 = vpop.permute.xlu0 %1823 }
 0x98e   :  { %6399 = vmatprep.mubr.msk.f32.mxu0 %vm500_vm5, %v1545_v11  ;;  %6799 = vmatpush3.bf16.msk.msra.mxu1 %vm7504_vm9, %v6794_v5 }
 0x98f   :  { %v7201_v18 = vpop.eup %7200  ;;  %6802 = vmatprep.subr.msk.bf16.mxu1 %vm7469_vm4, %v6800_v12  ;;  %v6806_v26 = vpack.c.bf16 %v7058_v13, %v7057_v17 }
 0x990   :  { %v1546_v21 = vmul.f32 %v7201_v18, %v7193_v2  ;;  %v1826_v27 = vpop.permute.xlu1 %1825 }
 0x991   :  { %6407 = vmatmul.mubr.msk.f32.vlgmr.msra.gmra.mrb[24].mxu1 %vm500_vm5, %v1548_v19  ;;  %v1915_v62 = vpop.permute.xlu0 %1914 }
 0x992   :  { %6400 = vmatmul.mubr.msk.f32.vlgmr.msra.gmra.mrb[20].mxu0 %vm500_vm5, %v1546_v21  ;;  %6424 = vmatprep.mubr.msk.f32.mxu1 %vm324_vm3, %v1824_v25 }
 0x993   :  { %6410 = vmatpush3.msra.mxu0 %v192_v22  ;;  %6411 = vmatprep.mubr.msk.f32.mxu0 %vm7338_vm0, %v7339_v1 }
 0x994   :  { %6808 = vmatprep.subr.msk.bf16.mxu0 %vm7469_vm4, %v6806_v26  ;;  %v1917_v39 = vpop.permute.xlu1 %1916 }
 0x997   :  { %6805 = vmatpush3.bf16.xpose.msk.msra.mxu1 %vm7469_vm4, %v6800_v12 }
 0x99e   :  { %6425 = vmatmul.mubr.msk.f32.vlgmr.msra.gmra.mrb[26].mxu1 %vm324_vm3, %v1826_v27 }
 0xa64   :  { %v6408_v28 = vpop.f32.mrb[24].mxu1 }
 0xa65   :  { %v6401_v29 = vpop.f32.mrb[20].mxu0  ;;  %v1716_v30 = vpop.f32.mrb[25].mxu1 }
 0xa66   :  { %v1730_v31 = vcombine.high %v1716_v30, %v1716_v30  ;;  %v1732_v47 = vcombine.low %v6401_v29, %v1716_v30  ;;  %v1628_v32 = vpop.f32.mrb[21].mxu0 }
 0xa67   :  { %v1729_v33 = vcombine.high %v1628_v32, %v1628_v32 }
 0xa68   :  { %v1733_v34 = vcombine.low %v1730_v31, %v6408_v28 }
 0xa69   :  { %v1731_v35 = vcombine.low %v1628_v32, %v1729_v33 }
 0xa6b   :  { %6412 = vmatmul.mubr.msk.f32.vlgmr.msra.gmra.mrb[22].mxu0 %vm324_vm3, %v1731_v35 }
 0xa6c   :  { %6811 = vmatpush3.bf16.xpose.msk.msra.mxu0 %vm7469_vm4, %v6806_v26  ;;  %6414 = vmatprep.mubr.msk.f32.mxu0 %vm7338_vm0, %v7339_v1 }
 0xa6d   :  { %6448 = vmatprep.subr.mxu0 %v7339_v1 }
 0xa6f   :  { %6415 = vmatmul.mubr.msk.f32.gmra.mrb[24].mxu0 %vm324_vm3, %v1732_v47 }
 0xa70   :  { %6417 = vmatprep.mubr.msk.f32.mxu0 %vm7338_vm0, %v7339_v1 }
 0xa71   :  { %v6426_v36 = vpop.f32.mrb[26].mxu1 }
 0xa72   :  { %v2006_v46 = vmul.f32 0.35355338, %v6426_v36  ;;  %v1905_v54 = vpop.f32.mrb[27].mxu1 }
 0xa73   :  { %v2005_v37 = vmul.f32 0.35355338, %v1905_v54  ;;  %6418 = vmatmul.mubr.msk.f32.gmra.mrb[26].mxu0 %vm324_vm3, %v1733_v34 }
 0xa74   :  { %6431 = vmatprep.mubr.msk.f32.mxu0 %vm324_vm3, %v1915_v62  ;;  %v2012_v2 = vsel %vm504_vm6, %v2006_v46, -inf }
 0xa75   :  { %2013 = vmax.xlane.f32.xlu1 %v2012_v2  ;;  %v2009_v38 = vsel %vm500_vm5, %v2005_v37, -inf }
 0xa76   :  { %2010 = vmax.xlane.f32.xlu0 %v2009_v38 }
 0xa77   :  { %6432 = vmatmul.mubr.msk.f32.vlgmr.msra.gmra.mrb[28].mxu0 %vm324_vm3, %v1917_v39 }
 0xa78   :  { %6450 = vmatprep.mubr.msk.f32.mxu0 %vm7338_vm0, %v7339_v1 }
 0xb02   :  { %v2014_v45 = vpop.xlane.xlu1 %2013 }
 0xb03   :  { %v2011_v40 = vpop.xlane.xlu0 %2010  ;;  %v2022_v52 = vsub.f32 %v2006_v46, %v2014_v45 }
 0xb04   :  { %v2021_v41 = vsub.f32 %v2005_v37, %v2011_v40 }
 0xb05   :  { %v2027_v63 = vmul.f32 1.442695, %v2022_v52 }
 0xb06   :  { %v2025_v42 = vmul.f32 1.442695, %v2021_v41 }
 0xb08   :  { %7202 = vpow2.f32 %v2025_v42 }
 0xb09   :  { %7204 = vpow2.f32 %v2027_v63 }
 0xb12   :  { %v7203_v43 = vpop.eup %7202 }
 0xb13   :  { %v2033_v44 = vsel %vm500_vm5, %v7203_v43, 0.0  ;;  %v7205_v17 = vpop.eup %7204 }
 0xb14   :  { %2034 = vadd.xlane.f32.xlu1 %v2033_v44 }
 0xb3e   :  { %v1806_v7 = vpop.f32.mrb[22].mxu0 }
 0xb3f   :  { %v7696_v49 = vadd.f32 %v1806_v7, %v7625_v51  ;;  %v6413_v6 = vpop.f32.mrb[23].mxu0 }
 0xb42   :  { %v1811_v53 = vpop.f32.mrb[24].mxu0 }
 0xb43   :  { %v7699_v14 = vadd.f32 %v1811_v53, %v7627_v55  ;;  %v6416_v60 = vpop.f32.mrb[25].mxu0  ;;  %v2036_v55 = vsel %vm504_vm6, %v7205_v17, 0.0 }
 0xb46   :  { %v1816_v15 = vpop.f32.mrb[26].mxu0 }
 0xb47   :  { %v7702_v4 = vadd.f32 %v1816_v15, %v7629_v3  ;;  %v6419_v5 = vpop.f32.mrb[27].mxu0 }
 0xb48   :  { %v5952_v5 = vld [vmem:[#allocation2 + $0x166] ss:$0 sm:$0xff] }
 0xb4a   :  { %v6433_v8 = vpop.f32.mrb[28].mxu0 }
 0xb4b   :  { %v1996_v10 = vpop.f32.mrb[29].mxu0  ;;  %v2008_v12 = vmul.f32 0.35355338, %v6433_v8 }
 0xb4c   :  { %v2007_v11 = vmul.f32 0.35355338, %v1996_v10 }
 0xb4d   :  { %v2018_v13 = vsel %vm504_vm6, %v2008_v12, -inf }
 0xb4e   :  { %v2015_v51 = vsel %vm500_vm5, %v2007_v11, -inf }
 0xb4f   :  { %2016 = vmax.xlane.f32.xlu0 %v2015_v51 }
 0xb53   :  { %2019 = vmax.xlane.f32.xlu0 %v2018_v13 }
 0xb57   :  { %2037 = vadd.xlane.f32.xlu0 %v2036_v55 }
 0xba1   :  { %v2035_v18 = vpop.xlane.xlu1 %2034 }
 0xba2   :  { %7206 = vrcp.f32 %v2035_v18 }
 0xbac   :  { %v7207_v3 = vpop.eup %7206 }
 0xbad   :  { %v2049_v19 = vmul.f32 %v7207_v3, %v7203_v43  ;;  %v193_v43 = vld [vmem:[#allocation2 + $0x58] sm:$0xff] }
 0xbae   :  { %6449 = vmatpush3.msra.mxu0 %v193_v43 }
 0xbaf   :  { %6438 = vmatprep.mubr.msk.f32.mxu1 %vm500_vm5, %v2049_v19  ;;  %6830 = vmatprep.subr.bf16.mxu0 %v7337_v0 }
 0xbdc   :  { %v2017_v21 = vpop.xlane.xlu0 %2016 }
 0xbdd   :  { %v2023_v22 = vsub.f32 %v2007_v11, %v2017_v21 }
 0xbdf   :  { %v2029_v25 = vmul.f32 1.442695, %v2023_v22 }
 0xbe0   :  { %v2020_v26 = vpop.xlane.xlu0 %2019 }
 0xbe1   :  { %7208 = vpow2.f32 %v2029_v25  ;;  %v2024_v27 = vsub.f32 %v2008_v12, %v2020_v26 }
 0xbe3   :  { %v2031_v28 = vmul.f32 1.442695, %v2024_v27 }
 0xbe4   :  { %v2038_v32 = vpop.xlane.xlu0 %2037 }
 0xbe5   :  { %7210 = vpow2.f32 %v2031_v28 }
 0xbe6   :  { %7212 = vrcp.f32 %v2038_v32 }
 0xbeb   :  { %v7209_v29 = vpop.eup %7208 }
 0xbec   :  { %v2039_v30 = vsel %vm500_vm5, %v7209_v29, 0.0 }
 0xbed   :  { %2040 = vadd.xlane.f32.xlu1 %v2039_v30 }
 0xbef   :  { %v7211_v31 = vpop.eup %7210 }
 0xbf0   :  { %v2042_v47 = vsel %vm504_vm6, %v7211_v31, 0.0  ;;  %v7213_v62 = vpop.eup %7212 }
 0xbf1   :  { %2043 = vadd.xlane.f32.xlu0 %v2042_v47 }
 0xbfe   :  { %7060 = vrot.lane.b32.xlu1 %v7449_v9, %s7351_s12 }
 0xc07   :  { %7065 = vrot.lane.b32.xlu0 %v7463_v16, %s7351_s12  ;;  %v2050_v16 = vmul.f32 %v7213_v62, %v7205_v17 }
 0xc7a   :  { %v2041_v33 = vpop.xlane.xlu1 %2040 }
 0xc7b   :  { %7214 = vrcp.f32 %v2041_v33  ;;  %v7352_v33 = vmov 839922192  }
 0xc7e   :  { %v7061_v34 = vpop.permute.xlu1 %7060  ;;  %v2044_v35 = vpop.xlane.xlu0 %2043 }
 0xc7f   :  { %v7063_v36 = vunpack.i.h.bf16 %v7061_v34  ;;  %v7062_v46 = vunpack.i.l.bf16 %v7061_v34  ;;  %7216 = vrcp.f32 %v2044_v35  ;;  %v2378_v34 = vunpack.c.l.s4 %v7352_v33 }
 0xc80   :  { %v7353_v35 = vmov 1985246804  }
 0xc81   :  { %v6812_v54 = vpack.c.bf16 %v7063_v36, %v7062_v46  ;;  %v2379_v36 = vunpack.c.0.s8 %v2378_v34 }
 0xc82   :  { %v7066_v37 = vpop.permute.xlu0 %7065 }
 0xc83   :  { %v7068_v2 = vunpack.i.h.bf16 %v7066_v37  ;;  %v7067_v38 = vunpack.i.l.bf16 %v7066_v37  ;;  %6814 = vmatprep.subr.msk.bf16.mxu1 %vm7504_vm9, %v6812_v54  ;;  %v7751_v46 = vsub.s32 %v2379_v36, %v7412_v24  ;;  %v5953_v36 = vld [vmem:[#allocation2 + $0x167] ss:$0 sm:$0xff] }
 0xc84   :  { %6817 = vmatpush3.bf16.msk.msra.mxu1 %vm7504_vm9, %v6812_v54 }
 0xc85   :  { %v7215_v9 = vpop.eup %7214  ;;  %v6818_v39 = vpack.c.bf16 %v7068_v2, %v7067_v38 }
 0xc86   :  { %v2051_v40 = vmul.f32 %v7215_v9, %v7209_v29 }
 0xc87   :  { %6439 = vmatmul.mubr.msk.f32.vlgmr.msra.gmra.mrb[28].mxu1 %vm500_vm5, %v2050_v16  ;;  %6820 = vmatprep.subr.msk.bf16.mxu1 %vm7504_vm9, %v6818_v39 }
 0xc88   :  { %6823 = vmatpush3.bf16.msk.msra.mxu1 %vm7504_vm9, %v6818_v39  ;;  %6445 = vmatprep.mubr.msk.f32.mxu1 %vm500_vm5, %v2051_v40 }
 0xc89   :  { %v7217_v41 = vpop.eup %7216  ;;  %6824 = vmatprep.subr.bf16.mxu1 %v7337_v0 }
 0xc8a   :  { %v2052_v42 = vmul.f32 %v7217_v41, %v7211_v31 }
 0xc8c   :  { %6446 = vmatmul.mubr.msk.f32.vlgmr.msra.gmra.mrb[30].mxu1 %vm500_vm5, %v2052_v42 }
 0xc8d   :  { %6467 = vmatprep.mubr.msk.f32.mxu1 %vm7338_vm0, %v7339_v1 }
 0xd5a   :  { %v6440_v44 = vpop.f32.mrb[28].mxu1 }
 0xd5b   :  { %v2132_v45 = vpop.f32.mrb[29].mxu1 }
 0xd5c   :  { %v2233_v7 = vcombine.high %v2132_v45, %v2132_v45 }
 0xd5e   :  { %v2235_v6 = vcombine.low %v2132_v45, %v2233_v7 }
 0xd5f   :  { %v6447_v52 = vpop.f32.mrb[30].mxu1 }
 0xd60   :  { %v2220_v53 = vpop.f32.mrb[31].mxu1  ;;  %6451 = vmatmul.mubr.msk.f32.vlgmr.msra.gmra.mrb[30].mxu0 %vm324_vm3, %v2235_v6 }
 0xd61   :  { %v2234_v60 = vcombine.high %v2220_v53, %v2220_v53  ;;  %v2236_v63 = vcombine.low %v6440_v44, %v2220_v53  ;;  %6453 = vmatprep.mubr.msk.f32.mxu0 %vm7338_vm0, %v7339_v1 }
 0xd63   :  { %v2237_v15 = vcombine.low %v2234_v60, %v6447_v52 }
 0xd64   :  { %6454 = vmatmul.mubr.msk.f32.gmra.mrb[32].mxu0 %vm324_vm3, %v2236_v63 }
 0xd65   :  { %6456 = vmatprep.mubr.msk.f32.mxu0 %vm7338_vm0, %v7339_v1 }
 0xd68   :  { %6457 = vmatmul.mubr.msk.f32.gmra.mrb[34].mxu0 %vm324_vm3, %v2237_v15 }
 0xd69   :  { %6492 = vmatprep.mubr.msk.f32.mxu0 %vm7338_vm0, %v7339_v1 }
 0xe33   :  { %v2310_v8 = vpop.f32.mrb[30].mxu0 }
 0xe34   :  { %v2324_v10 = vadd.f32 %v2310_v8, %v7696_v49  ;;  %v6452_v11 = vpop.f32.mrb[31].mxu0 }
 0xe36   :  { %v2331_v12 = vadd.f32 %v5952_v5, %v2324_v10 }
 0xe37   :  { %v2315_v51 = vpop.f32.mrb[32].mxu0 }
 0xe38   :  { %v2337_v13 = vcombine.high %v2331_v12, %v2331_v12  ;;  %v2325_v17 = vadd.f32 %v2315_v51, %v7699_v14  ;;  %v6455_v55 = vpop.f32.mrb[33].mxu0  ;;  %v2343_v3 = vadd.f32 %v2331_v12, %v7416_v48 }
 0xe39   :  { %v194_v55 = vld [vmem:[#allocation2 + $0x60] sm:$0xff] }
 0xe3a   :  { %v2332_v18 = vadd.f32 %v5952_v5, %v2325_v17  ;;  %v2344_v19 = vadd.f32 %v2337_v13, %v7418_v50 }
 0xe3b   :  { %v2320_v21 = vpop.f32.mrb[34].mxu0 }
 0xe3c   :  { %v2338_v22 = vcombine.high %v2332_v18, %v2332_v18  ;;  %v2326_v25 = vadd.f32 %v2320_v21, %v7702_v4  ;;  %v6458_v26 = vpop.f32.mrb[35].mxu0  ;;  %v2355_v27 = vcombine.low %v2343_v3, %v2344_v19  ;;  %v2345_v29 = vadd.f32 %v2332_v18, %v7422_v56  ;;  %v195_v18 = vld [vmem:[#allocation2 + $0x68] sm:$0xff]  ;;  %v197_v21 = vld [vmem:[#allocation2 + $0x78] sm:$0xff] }
 0xe3d   :  { %v2385_v56 = vunpack.c.l.s4 %v7353_v35  ;;  %v199_v26 = vld [vmem:[#allocation2 + $0x88] sm:$0xff] }
 0xe3e   :  { %v2333_v28 = vadd.f32 %v5952_v5, %v2326_v25  ;;  %v2361_v49 = vsel %vm47_vm1, %v2355_v27, 0.0  ;;  %v2346_v30 = vadd.f32 %v2338_v22, %v7424_v57  ;;  %v198_v25 = vld [vmem:[#allocation2 + $0x80] sm:$0xff]  ;;  %v200_v27 = vld [vmem:[#allocation2 + $0x90] sm:$0xff] }
 0xe3f   :  { %2362 = vadd.xlane.f32.xlu1 %v2361_v49  ;;  %v2386_v57 = vunpack.c.0.s8 %v2385_v56  ;;  %v201_v49 = vld [vmem:[#allocation2 + $0x98] sm:$0xff] }
 0xe40   :  { %v2339_v14 = vcombine.high %v2333_v28, %v2333_v28  ;;  %v2356_v31 = vcombine.low %v2345_v29, %v2346_v30  ;;  %v2347_v50 = vadd.f32 %v2333_v28, %v7426_v58  ;;  %v6831_v28 = vpack.c.bf16 %v199_v26, %v198_v25 }
 0xe41   :  { %v7754_v54 = vsub.s32 %v2386_v57, %v7412_v24 }
 0xe42   :  { %v2364_v48 = vsel %vm47_vm1, %v2356_v31, 0.0  ;;  %v2348_v47 = vadd.f32 %v2339_v14, %v7428_v59  ;;  %6832 = vmatpush3.bf16.msra.mxu0 %v6831_v28  ;;  %v203_v14 = vld [vmem:[#allocation2 + $0xa8] sm:$0xff] }
 0xe43   :  { %2365 = vadd.xlane.f32.xlu0 %v2364_v48  ;;  %6833 = vmatprep.subr.bf16.mxu0 %v7337_v0 }
 0xe44   :  { %v2357_v4 = vcombine.low %v2347_v50, %v2348_v47 }
 0xe46   :  { %v2367_v32 = vsel %vm47_vm1, %v2357_v4, 0.0 }
 0xe47   :  { %2368 = vadd.xlane.f32.xlu1 %v2367_v32 }
 0xecc   :  { %v2363_v58 = vpop.xlane.xlu1 %2362 }
 0xecd   :  { %v2371_v62 = vmul.f32 0.03125, %v2363_v58  ;;  %v5954_v58 = vld [vmem:[#allocation2 + $0x168] ss:$0 sm:$0xff] }
 0xecf   :  { %v2383_v59 = vrot.slane %v2371_v62, %v7751_v46  ;;  %v2390_v37 = vrot.slane %v2371_v62, %v7754_v54 }
 0xed0   :  { %v2366_v2 = vpop.xlane.xlu0 %2365 }
 0xed1   :  { %v7758_v38 = vsub.f32 %v2343_v3, %v2383_v59  ;;  %v7760_v9 = vsub.f32 %v2344_v19, %v2390_v37  ;;  %v2372_v16 = vmul.f32 0.03125, %v2366_v2  ;;  %v6825_v3 = vpack.c.bf16 %v195_v18, %v194_v55  ;;  %v196_v19 = vld [vmem:[#allocation2 + $0x70] sm:$0xff] }
 0xed2   :  { %v6828_v22 = vpack.c.bf16 %v197_v21, %v196_v19  ;;  %v2529_v37 = vcombine.high %v5953_v36, %v5953_v36 }
 0xed3   :  { %v2397_v39 = vrot.slane %v2372_v16, %v7751_v46  ;;  %v2404_v40 = vrot.slane %v2372_v16, %v7754_v54  ;;  %v2431_v41 = vmul.f32 %v7758_v38, %v7758_v38  ;;  %v2432_v42 = vmul.f32 %v7760_v9, %v7760_v9  ;;  %6826 = vmatpush3.bf16.msra.mxu1 %v6825_v3 }
 0xed4   :  { %v2369_v43 = vpop.xlane.xlu1 %2368  ;;  %6827 = vmatprep.subr.bf16.mxu1 %v7337_v0 }
 0xed5   :  { %v7768_v44 = vsub.f32 %v2345_v29, %v2397_v39  ;;  %v7770_v45 = vsub.f32 %v2346_v30, %v2404_v40  ;;  %v2373_v7 = vmul.f32 0.03125, %v2369_v43  ;;  %v2443_v6 = vcombine.low %v2431_v41, %v2432_v42  ;;  %v202_v30 = vld [vmem:[#allocation2 + $0xa0] sm:$0xff] }
 0xed6   :  { %v6834_v29 = vpack.c.bf16 %v201_v49, %v200_v27  ;;  %v6837_v31 = vpack.c.bf16 %v203_v14, %v202_v30  ;;  %v2542_v39 = vcombine.high %v5954_v58, %v5954_v58 }
 0xed7   :  { %v2411_v52 = vrot.slane %v2373_v7, %v7751_v46  ;;  %v2418_v53 = vrot.slane %v2373_v7, %v7754_v54  ;;  %v2449_v60 = vsel %vm47_vm1, %v2443_v6, 0.0  ;;  %v2433_v63 = vmul.f32 %v7768_v44, %v7768_v44  ;;  %6829 = vmatpush3.bf16.msra.mxu1 %v6828_v22  ;;  %v5955_v22 = vld [vmem:[#allocation2 + $0x169] ss:$0 sm:$0xff] }
 0xed8   :  { %2450 = vadd.xlane.f32.xlu0 %v2449_v60  ;;  %v2434_v15 = vmul.f32 %v7770_v45, %v7770_v45  ;;  %6842 = vmatprep.subr.bf16.mxu1 %v7337_v0 }
 0xed9   :  { %v7779_v5 = vsub.f32 %v2347_v50, %v2411_v52  ;;  %v7781_v8 = vsub.f32 %v2348_v47, %v2418_v53  ;;  %6835 = vmatpush3.bf16.msra.mxu0 %v6834_v29 }
 0xeda   :  { %v2444_v10 = vcombine.low %v2433_v63, %v2434_v15  ;;  %6836 = vmatprep.subr.bf16.mxu0 %v7337_v0 }
 0xedb   :  { %v2435_v11 = vmul.f32 %v7779_v5, %v7779_v5  ;;  %v2436_v12 = vmul.f32 %v7781_v8, %v7781_v8 }
 0xedc   :  { %v2452_v51 = vsel %vm47_vm1, %v2444_v10, 0.0 }
 0xedd   :  { %2453 = vadd.xlane.f32.xlu1 %v2452_v51  ;;  %v2445_v13 = vcombine.low %v2435_v11, %v2436_v12  ;;  %6838 = vmatpush3.bf16.msra.mxu0 %v6837_v31 }
 0xede   :  { %6839 = vmatprep.subr.bf16.mxu0 %v7337_v0 }
 0xedf   :  { %v2455_v17 = vsel %vm47_vm1, %v2445_v13, 0.0 }
 0xee0   :  { %2456 = vadd.xlane.f32.xlu0 %v2455_v17 }
 0xf65   :  { %v2451_v48 = vpop.xlane.xlu0 %2450 }
 0xf66   :  { %v2458_v50 = vmul.f32 0.03125, %v2451_v48 }
 0xf68   :  { %v2461_v47 = vadd.f32 1e-05, %v2458_v50 }
 0xf6a   :  { %7218 = vrsqrt.f32 %v2461_v47  ;;  %v2454_v4 = vpop.xlane.xlu1 %2453 }
 0xf6b   :  { %v2459_v32 = vmul.f32 0.03125, %v2454_v4  ;;  %v5959_v4 = vld [vmem:[#allocation2 + $0x16a] ss:$0 sm:$0xff] }
 0xf6d   :  { %v2462_v33 = vadd.f32 1e-05, %v2459_v32  ;;  %v2457_v34 = vpop.xlane.xlu0 %2456 }
 0xf6e   :  { %v2460_v35 = vmul.f32 0.03125, %v2457_v34 }
 0xf6f   :  { %7220 = vrsqrt.f32 %v2462_v33 }
 0xf70   :  { %v2463_v56 = vadd.f32 1e-05, %v2460_v35 }
 0xf72   :  { %7222 = vrsqrt.f32 %v2463_v56 }
 0xf74   :  { %v7219_v57 = vpop.eup %7218 }
 0xf75   :  { %v2476_v62 = vrot.slane %v7219_v57, %v7751_v46  ;;  %v2483_v59 = vrot.slane %v7219_v57, %v7754_v54 }
 0xf77   :  { %v2518_v2 = vmul.f32 %v2476_v62, %v7758_v38  ;;  %v2519_v16 = vmul.f32 %v2483_v59, %v7760_v9 }
 0xf79   :  { %v7221_v40 = vpop.eup %7220  ;;  %v2531_v41 = vmul.f32 %v5953_v36, %v2518_v2  ;;  %v2532_v42 = vmul.f32 %v2529_v37, %v2519_v16 }
 0xf7a   :  { %v2490_v43 = vrot.slane %v7221_v40, %v7751_v46  ;;  %v2497_v7 = vrot.slane %v7221_v40, %v7754_v54 }
 0xf7b   :  { %v2544_v6 = vadd.f32 %v5954_v58, %v2531_v41  ;;  %v2545_v52 = vadd.f32 %v2542_v39, %v2532_v42 }
 0xf7c   :  { %v7223_v53 = vpop.eup %7222  ;;  %v2520_v60 = vmul.f32 %v2490_v43, %v7768_v44  ;;  %v2521_v63 = vmul.f32 %v2497_v7, %v7770_v45 }
 0xf7d   :  { %v2504_v15 = vrot.slane %v7223_v53, %v7751_v46  ;;  %v2511_v38 = vrot.slane %v7223_v53, %v7754_v54  ;;  %v2560_v9 = vcombine.low %v2544_v6, %v2545_v52 }
 0xf7e   :  { %v2533_v10 = vmul.f32 %v5953_v36, %v2520_v60  ;;  %v2534_v11 = vmul.f32 %v2529_v37, %v2521_v63 }
 0xf7f   :  { %6468 = vmatmul.mubr.msk.f32.vlgmr.msra.gmra.mrb[32].mxu1 %vm47_vm1, %v2560_v9  ;;  %v2522_v12 = vmul.f32 %v2504_v15, %v7779_v5  ;;  %v2523_v51 = vmul.f32 %v2511_v38, %v7781_v8  ;;  %v204_v5 = vld [vmem:[#allocation2 + $0xb0] sm:$0xff]  ;;  %v205_v8 = vld [vmem:[#allocation2 + $0xb8] sm:$0xff] }
 0xf80   :  { %6470 = vmatprep.mubr.msk.f32.mxu1 %vm7338_vm0, %v7339_v1  ;;  %v2546_v13 = vadd.f32 %v5954_v58, %v2533_v10  ;;  %v2547_v44 = vadd.f32 %v2542_v39, %v2534_v11  ;;  %v6840_v21 = vpack.c.bf16 %v205_v8, %v204_v5 }
 0xf81   :  { %v2535_v17 = vmul.f32 %v5953_v36, %v2522_v12  ;;  %v2536_v45 = vmul.f32 %v2529_v37, %v2523_v51 }
 0xf82   :  { %v2561_v55 = vcombine.low %v2546_v13, %v2547_v44  ;;  %6841 = vmatpush3.bf16.msra.mxu0 %v6840_v21 }
 0xf83   :  { %v2548_v18 = vadd.f32 %v5954_v58, %v2535_v17  ;;  %v2549_v3 = vadd.f32 %v2542_v39, %v2536_v45 }
 0xf84   :  { %6471 = vmatmul.mubr.msk.f32.gmra.mrb[34].mxu1 %vm47_vm1, %v2561_v55 }
 0xf85   :  { %6473 = vmatprep.mubr.msk.f32.mxu1 %vm7338_vm0, %v7339_v1  ;;  %v2562_v19 = vcombine.low %v2548_v18, %v2549_v3 }
 0xf88   :  { %6474 = vmatmul.mubr.msk.f32.gmra.mrb[36].mxu1 %vm47_vm1, %v2562_v19 }
 0xf89   :  { %6509 = vmatprep.mubr.msk.f32.mxu1 %vm7338_vm0, %v7339_v1 }
0x1052   :  { %v2635_v25 = vpop.f32.mrb[32].mxu1 }
0x1053   :  { %v2636_v26 = vadd.f32 %v5955_v22, %v2635_v25  ;;  %v6469_v27 = vpop.f32.mrb[33].mxu1 }
0x1055   :  { %v2649_v28 = vmax.f32 %v2636_v26, 0.0 }
0x1057   :  { %v2640_v49 = vpop.f32.mrb[34].mxu1  ;;  %6493 = vmatmul.mubr.msk.f32.vlgmr.msra.gmra.mrb[36].mxu0 %vm2656_vm10, %v2649_v28 }
0x1058   :  { %v2641_v29 = vadd.f32 %v5955_v22, %v2640_v49  ;;  %v6472_v30 = vpop.f32.mrb[35].mxu1  ;;  %6495 = vmatprep.mubr.msk.f32.mxu0 %vm7338_vm0, %v7339_v1 }
0x105a   :  { %v2650_v14 = vmax.f32 %v2641_v29, 0.0 }
0x105b   :  { %v2645_v31 = vpop.f32.mrb[36].mxu1 }
0x105c   :  { %v2646_v48 = vadd.f32 %v5955_v22, %v2645_v31  ;;  %v6475_v50 = vpop.f32.mrb[37].mxu1  ;;  %6496 = vmatmul.mubr.msk.f32.gmra.mrb[38].mxu0 %vm2656_vm10, %v2650_v14 }
0x105d   :  { %6498 = vmatprep.mubr.msk.f32.mxu0 %vm7338_vm0, %v7339_v1 }
0x105e   :  { %v2651_v47 = vmax.f32 %v2646_v48, 0.0 }
0x1060   :  { %6499 = vmatmul.mubr.msk.f32.gmra.mrb[40].mxu0 %vm2656_vm10, %v2651_v47  ;;  %v2961_v47 = vld [vmem:[#allocation2 + $0xc0] sm:$0xff] }
0x112a   :  { %v2732_v32 = vpop.f32.mrb[36].mxu0 }
0x112b   :  { %v2733_v33 = vadd.f32 %v5959_v4, %v2732_v32  ;;  %v6494_v34 = vpop.f32.mrb[37].mxu0 }
0x112c   :  { %v2964_v34 = vld [vmem:[#allocation2 + $0xd8] sm:$0xff] }
0x112d   :  { %v2749_v35 = vcombine.high %v2733_v33, %v2733_v33  ;;  %v2755_v56 = vadd.f32 %v2733_v33, %v2544_v6  ;;  %v2963_v33 = vld [vmem:[#allocation2 + $0xd0] sm:$0xff] }
0x112f   :  { %v2737_v36 = vpop.f32.mrb[38].mxu0  ;;  %v2756_v57 = vadd.f32 %v2749_v35, %v2545_v52  ;;  %v6846_v35 = vpack.c.bf16 %v2964_v34, %v2963_v33 }
0x1130   :  { %v2738_v58 = vadd.f32 %v5959_v4, %v2737_v36  ;;  %v6497_v62 = vpop.f32.mrb[39].mxu0 }
0x1131   :  { %v2767_v59 = vcombine.low %v2755_v56, %v2756_v57 }
0x1132   :  { %v2750_v37 = vcombine.high %v2738_v58, %v2738_v58  ;;  %v2757_v39 = vadd.f32 %v2738_v58, %v2546_v13 }
0x1133   :  { %v2742_v2 = vpop.f32.mrb[40].mxu0  ;;  %v2773_v16 = vsel %vm47_vm1, %v2767_v59, 0.0 }
0x1134   :  { %v2743_v40 = vadd.f32 %v5959_v4, %v2742_v2  ;;  %v6500_v41 = vpop.f32.mrb[41].mxu0  ;;  %2774 = vadd.xlane.f32.xlu1 %v2773_v16  ;;  %v2758_v42 = vadd.f32 %v2750_v37, %v2547_v44  ;;  %v2962_v4 = vld [vmem:[#allocation2 + $0xc8] sm:$0xff] }
0x1135   :  { %v6843_v32 = vpack.c.bf16 %v2962_v4, %v2961_v47  ;;  %v5964_v41 = vld [vmem:[#allocation2 + $0x16c] ss:$0 sm:$0xff] }
0x1136   :  { %v2751_v43 = vcombine.high %v2743_v40, %v2743_v40  ;;  %v2768_v7 = vcombine.low %v2757_v39, %v2758_v42  ;;  %v2759_v53 = vadd.f32 %v2743_v40, %v2548_v18 }
0x1137   :  { %6844 = vmatpush3.bf16.msra.mxu1 %v6843_v32 }
0x1138   :  { %v2776_v60 = vsel %vm47_vm1, %v2768_v7, 0.0  ;;  %v2760_v6 = vadd.f32 %v2751_v43, %v2549_v3  ;;  %6845 = vmatprep.subr.bf16.mxu1 %v7337_v0 }
0x1139   :  { %2777 = vadd.xlane.f32.xlu0 %v2776_v60 }
0x113a   :  { %v2769_v52 = vcombine.low %v2759_v53, %v2760_v6 }
0x113b   :  { %6847 = vmatpush3.bf16.msra.mxu1 %v6846_v35 }
0x113c   :  { %v2779_v63 = vsel %vm47_vm1, %v2769_v52, 0.0 }
0x113d   :  { %2780 = vadd.xlane.f32.xlu1 %v2779_v63 }
0x11c1   :  { %v2775_v15 = vpop.xlane.xlu1 %2774 }
0x11c2   :  { %v2782_v38 = vmul.f32 0.03125, %v2775_v15 }
0x11c4   :  { %v2794_v9 = vrot.slane %v2782_v38, %v7751_v46  ;;  %v2801_v10 = vrot.slane %v2782_v38, %v7754_v54 }
0x11c6   :  { %v2836_v11 = vsub.f32 %v2755_v56, %v2794_v9  ;;  %v2837_v12 = vsub.f32 %v2756_v57, %v2801_v10  ;;  %v2778_v51 = vpop.xlane.xlu0 %2777 }
0x11c7   :  { %v2783_v13 = vmul.f32 0.03125, %v2778_v51 }
0x11c8   :  { %v2842_v44 = vmul.f32 %v2836_v11, %v2836_v11  ;;  %v2843_v17 = vmul.f32 %v2837_v12, %v2837_v12 }
0x11c9   :  { %v2808_v45 = vrot.slane %v2783_v13, %v7751_v46  ;;  %v2815_v55 = vrot.slane %v2783_v13, %v7754_v54 }
0x11ca   :  { %v2781_v18 = vpop.xlane.xlu1 %2780  ;;  %v2854_v3 = vcombine.low %v2842_v44, %v2843_v17 }
0x11cb   :  { %v2838_v19 = vsub.f32 %v2757_v39, %v2808_v45  ;;  %v2839_v5 = vsub.f32 %v2758_v42, %v2815_v55  ;;  %v2784_v8 = vmul.f32 0.03125, %v2781_v18  ;;  %v5963_v39 = vld [vmem:[#allocation2 + $0x16b] ss:$0 sm:$0xff] }
0x11cc   :  { %v2860_v21 = vsel %vm47_vm1, %v2854_v3, 0.0  ;;  %v2940_v42 = vcombine.high %v5963_v39, %v5963_v39 }
0x11cd   :  { %v2822_v22 = vrot.slane %v2784_v8, %v7751_v46  ;;  %v2829_v25 = vrot.slane %v2784_v8, %v7754_v54  ;;  %2861 = vadd.xlane.f32.xlu0 %v2860_v21  ;;  %v2844_v26 = vmul.f32 %v2838_v19, %v2838_v19  ;;  %v2845_v27 = vmul.f32 %v2839_v5, %v2839_v5 }
0x11cf   :  { %v2840_v28 = vsub.f32 %v2759_v53, %v2822_v22  ;;  %v2841_v49 = vsub.f32 %v2760_v6, %v2829_v25  ;;  %v2855_v29 = vcombine.low %v2844_v26, %v2845_v27  ;;  %v2953_v53 = vcombine.high %v5964_v41, %v5964_v41 }
0x11d1   :  { %v2863_v30 = vsel %vm47_vm1, %v2855_v29, 0.0  ;;  %v2846_v14 = vmul.f32 %v2840_v28, %v2840_v28  ;;  %v2847_v31 = vmul.f32 %v2841_v49, %v2841_v49 }
0x11d2   :  { %2864 = vadd.xlane.f32.xlu1 %v2863_v30 }
0x11d3   :  { %v2856_v48 = vcombine.low %v2846_v14, %v2847_v31 }
0x11d5   :  { %v2866_v50 = vsel %vm47_vm1, %v2856_v48, 0.0 }
0x11d6   :  { %2867 = vadd.xlane.f32.xlu0 %v2866_v50 }
0x125a   :  { %v2862_v56 = vpop.xlane.xlu0 %2861 }
0x125b   :  { %v2869_v36 = vmul.f32 0.03125, %v2862_v56 }
0x125d   :  { %v2872_v57 = vadd.f32 1e-05, %v2869_v36 }
0x125f   :  { %7224 = vrsqrt.f32 %v2872_v57  ;;  %v2865_v58 = vpop.xlane.xlu1 %2864 }
0x1260   :  { %v2870_v62 = vmul.f32 0.03125, %v2865_v58 }
0x1262   :  { %v2873_v59 = vadd.f32 1e-05, %v2870_v62 }
0x1263   :  { %v2868_v37 = vpop.xlane.xlu0 %2867 }
0x1264   :  { %7226 = vrsqrt.f32 %v2873_v59  ;;  %v2871_v2 = vmul.f32 0.03125, %v2868_v37 }
0x1266   :  { %v2874_v16 = vadd.f32 1e-05, %v2871_v2 }
0x1268   :  { %7228 = vrsqrt.f32 %v2874_v16 }
0x1269   :  { %v7225_v40 = vpop.eup %7224 }
0x126a   :  { %v2887_v43 = vrot.slane %v7225_v40, %v7751_v46  ;;  %v2894_v7 = vrot.slane %v7225_v40, %v7754_v54 }
0x126c   :  { %v2929_v60 = vmul.f32 %v2887_v43, %v2836_v11  ;;  %v2930_v6 = vmul.f32 %v2894_v7, %v2837_v12 }
0x126e   :  { %v7227_v52 = vpop.eup %7226  ;;  %v2942_v63 = vmul.f32 %v5963_v39, %v2929_v60  ;;  %v2943_v15 = vmul.f32 %v2940_v42, %v2930_v6 }
0x126f   :  { %v2901_v38 = vrot.slane %v7227_v52, %v7751_v46  ;;  %v2908_v9 = vrot.slane %v7227_v52, %v7754_v54 }
0x1270   :  { %v7839_v10 = vadd.f32 %v5964_v41, %v2942_v63  ;;  %v7841_v51 = vadd.f32 %v2953_v53, %v2943_v15 }
0x1271   :  { %v2931_v13 = vmul.f32 %v2901_v38, %v2838_v19  ;;  %v2932_v44 = vmul.f32 %v2908_v9, %v2839_v5 }
0x1272   :  { %v7229_v17 = vpop.eup %7228  ;;  %v2999_v45 = vcombine.low %v7839_v10, %v7841_v51 }
0x1273   :  { %v2915_v11 = vrot.slane %v7229_v17, %v7751_v46  ;;  %v2922_v12 = vrot.slane %v7229_v17, %v7754_v54  ;;  %v2944_v55 = vmul.f32 %v5963_v39, %v2931_v13  ;;  %v2945_v18 = vmul.f32 %v2940_v42, %v2932_v44 }
0x1274   :  { %6510 = vmatmul.mubr.msk.f32.vlgmr.msra.gmra.mrb[38].mxu1 %vm47_vm1, %v2999_v45 }
0x1275   :  { %6512 = vmatprep.mubr.msk.f32.mxu1 %vm7338_vm0, %v7339_v1  ;;  %v7850_v3 = vadd.f32 %v5964_v41, %v2944_v55  ;;  %v7852_v8 = vadd.f32 %v2953_v53, %v2945_v18  ;;  %v2933_v19 = vmul.f32 %v2915_v11, %v2840_v28  ;;  %v2934_v5 = vmul.f32 %v2922_v12, %v2841_v49  ;;  %v5965_v28 = vld [vmem:[#allocation2 + $0x16d] ss:$0 sm:$0xff] }
0x1277   :  { %v3000_v21 = vcombine.low %v7850_v3, %v7852_v8  ;;  %v2946_v22 = vmul.f32 %v5963_v39, %v2933_v19  ;;  %v2947_v25 = vmul.f32 %v2940_v42, %v2934_v5 }
0x1279   :  { %6513 = vmatmul.mubr.msk.f32.gmra.mrb[40].mxu1 %vm47_vm1, %v3000_v21  ;;  %v7857_v26 = vadd.f32 %v5964_v41, %v2946_v22  ;;  %v7859_v27 = vadd.f32 %v2953_v53, %v2947_v25 }
0x127a   :  { %6515 = vmatprep.mubr.msk.f32.mxu1 %vm7338_vm0, %v7339_v1 }
0x127b   :  { %v3001_v29 = vcombine.low %v7857_v26, %v7859_v27 }
0x127d   :  { %6516 = vmatmul.mubr.msk.f32.gmra.mrb[42].mxu1 %vm47_vm1, %v3001_v29 }
0x1347   :  { %v3074_v49 = vpop.f32.mrb[38].mxu1 }
0x1348   :  { %v3075_v30 = vadd.f32 %v5965_v28, %v3074_v49  ;;  %v6511_v14 = vpop.f32.mrb[39].mxu1 }
0x134a   :  { %v3091_v31 = vcombine.high %v3075_v30, %v3075_v30 }
0x134c   :  { %v7866_v48 = vcombine.low %v3075_v30, %v3091_v31  ;;  %v3079_v50 = vpop.f32.mrb[40].mxu1 }
0x134d   :  { %v7868_v47 = vadd.f32 %v5965_v28, %v3079_v50  ;;  %v6514_v4 = vpop.f32.mrb[41].mxu1 }
0x134e   :  { %6522 = vmatprep.mubr.msk.f32.mxu0 %vm324_vm3, %v7866_v48 }
0x134f   :  { %v7874_v32 = vpack.i.bf16 %v7868_v47, %v7866_v48  ;;  %v3092_v35 = vcombine.high %v7868_v47, %v7868_v47 }
0x1350   :  { %v3084_v33 = vpop.f32.mrb[42].mxu1 }
0x1351   :  { %v3085_v34 = vadd.f32 %v5965_v28, %v3084_v33  ;;  %7070 = vrot.lane.b32.xlu1 %v7874_v32, %s7340_s30  ;;  %v6517_v56 = vpop.f32.mrb[43].mxu1 }
0x1353   :  { %v7880_v36 = vcombine.high %v3085_v34, %v3085_v34  ;;  %v7882_v57 = vcombine.low %v3092_v35, %v3085_v34 }
0x1355   :  { %6529 = vmatprep.mubr.msk.f32.mxu1 %vm324_vm3, %v7882_v57  ;;  %v7888_v58 = vpack.i.bf16 %v7880_v36, %v7882_v57 }
0x1357   :  { %7075 = vrot.lane.b32.xlu0 %v7888_v58, %s7340_s30 }
0x13c3   :  { %v7071_v62 = vpop.permute.xlu1 %7070 }
0x13c4   :  { %v7073_v59 = vunpack.i.h.bf16 %v7071_v62  ;;  %v7072_v37 = vunpack.i.l.bf16 %v7071_v62 }
0x13c6   :  { %v6848_v2 = vpack.c.bf16 %v7073_v59, %v7072_v37 }
0x13c8   :  { %6850 = vmatprep.subr.msk.bf16.mxu0 %vm7469_vm4, %v6848_v2 }
0x13c9   :  { %6853 = vmatpush3.bf16.xpose.msk.msra.mxu0 %vm7469_vm4, %v6848_v2  ;;  %v7076_v16 = vpop.permute.xlu0 %7075 }
0x13ca   :  { %v7078_v39 = vunpack.i.h.bf16 %v7076_v16  ;;  %v7077_v40 = vunpack.i.l.bf16 %v7076_v16 }
0x13cc   :  { %v6854_v41 = vpack.c.bf16 %v7078_v39, %v7077_v40 }
0x13ce   :  { %6856 = vmatprep.subr.msk.bf16.mxu1 %vm7469_vm4, %v6854_v41 }
0x13cf   :  { %6859 = vmatpush3.bf16.xpose.msk.msra.mxu1 %vm7469_vm4, %v6854_v41 }
0x13d0   :  { %6523 = vmatmul.mubr.msk.f32.vlgmr.msra.gmra.mrb[42].mxu0 %vm324_vm3, %v7868_v47 }
0x13d6   :  { %6530 = vmatmul.mubr.msk.f32.vlgmr.msra.gmra.mrb[44].mxu1 %vm324_vm3, %v7880_v36 }
0x14a3   :  { %v6524_v42 = vpop.f32.mrb[42].mxu0 }
0x14a4   :  { %v3271_v43 = vmul.f32 0.35355338, %v6524_v42  ;;  %v3173_v7 = vpop.f32.mrb[43].mxu0 }
0x14a5   :  { %v3270_v53 = vmul.f32 0.35355338, %v3173_v7 }
0x14a6   :  { %v3277_v60 = vsel %vm504_vm6, %v3271_v43, -inf }
0x14a7   :  { %3278 = vmax.xlane.f32.xlu0 %v3277_v60  ;;  %v3274_v6 = vsel %vm500_vm5, %v3270_v53, -inf }
0x14a8   :  { %3275 = vmax.xlane.f32.xlu1 %v3274_v6 }
0x14a9   :  { %v6531_v52 = vpop.f32.mrb[44].mxu1 }
0x14aa   :  { %v3273_v63 = vmul.f32 0.35355338, %v6531_v52  ;;  %v3261_v15 = vpop.f32.mrb[45].mxu1 }
0x14ab   :  { %v3272_v9 = vmul.f32 0.35355338, %v3261_v15 }
0x14ac   :  { %v3283_v38 = vsel %vm504_vm6, %v3273_v63, -inf }
0x14ad   :  { %3284 = vmax.xlane.f32.xlu0 %v3283_v38  ;;  %v3280_v13 = vsel %vm500_vm5, %v3272_v9, -inf }
0x14b9   :  { %7080 = vrot.lane.b32.xlu1 %v7874_v32, %s7341_s3 }
0x14bd   :  { %7090 = vrot.lane.b32.xlu1 %v7874_v32, %s7342_s4 }
0x14c3   :  { %7085 = vrot.lane.b32.xlu0 %v7888_v58, %s7341_s3 }
0x14e1   :  { %3281 = vmax.xlane.f32.xlu1 %v3280_v13 }
0x14f2   :  { %7095 = vrot.lane.b32.xlu1 %v7888_v58, %s7342_s4 }
0x1534   :  { %v3279_v44 = vpop.xlane.xlu0 %3278 }
0x1535   :  { %v3287_v17 = vsub.f32 %v3271_v43, %v3279_v44  ;;  %v3276_v45 = vpop.xlane.xlu1 %3275 }
0x1536   :  { %v3286_v11 = vsub.f32 %v3270_v53, %v3276_v45 }
0x1537   :  { %v3292_v12 = vmul.f32 1.442695, %v3287_v17 }
0x1538   :  { %v3290_v55 = vmul.f32 1.442695, %v3286_v11 }
0x1539   :  { %7230 = vpow2.f32 %v3292_v12  ;;  %v7081_v18 = vpop.permute.xlu1 %7080 }
0x153a   :  { %7232 = vpow2.f32 %v3290_v55  ;;  %v7083_v19 = vunpack.i.h.bf16 %v7081_v18  ;;  %v7082_v5 = vunpack.i.l.bf16 %v7081_v18  ;;  %v3285_v21 = vpop.xlane.xlu0 %3284 }
0x153b   :  { %v3289_v22 = vsub.f32 %v3273_v63, %v3285_v21 }
0x153c   :  { %v6860_v25 = vpack.c.bf16 %v7083_v19, %v7082_v5 }
0x153d   :  { %v3296_v29 = vmul.f32 1.442695, %v3289_v22  ;;  %v7091_v28 = vpop.permute.xlu1 %7090 }
0x153e   :  { %v7093_v49 = vunpack.i.h.bf16 %v7091_v28  ;;  %v7092_v30 = vunpack.i.l.bf16 %v7091_v28  ;;  %v7086_v14 = vpop.permute.xlu0 %7085  ;;  %6862 = vmatprep.subr.msk.bf16.mxu0 %vm7504_vm9, %v6860_v25 }
0x153f   :  { %7234 = vpow2.f32 %v3296_v29  ;;  %v7088_v31 = vunpack.i.h.bf16 %v7086_v14  ;;  %v7087_v50 = vunpack.i.l.bf16 %v7086_v14  ;;  %6865 = vmatpush3.bf16.msk.msra.mxu0 %vm7504_vm9, %v6860_v25 }
0x1540   :  { %v6872_v4 = vpack.c.bf16 %v7093_v49, %v7092_v30 }
0x1541   :  { %v6866_v33 = vpack.c.bf16 %v7088_v31, %v7087_v50 }
0x1542   :  { %6874 = vmatprep.subr.msk.bf16.mxu0 %vm7469_vm4, %v6872_v4 }
0x1543   :  { %v7231_v34 = vpop.eup %7230  ;;  %6868 = vmatprep.subr.msk.bf16.mxu1 %vm7504_vm9, %v6866_v33 }
0x1544   :  { %v7233_v35 = vpop.eup %7232  ;;  %6871 = vmatpush3.bf16.msk.msra.mxu1 %vm7504_vm9, %v6866_v33  ;;  %v3301_v56 = vsel %vm504_vm6, %v7231_v34, 0.0 }
0x1545   :  { %3302 = vadd.xlane.f32.xlu0 %v3301_v56  ;;  %v3298_v62 = vsel %vm500_vm5, %v7233_v35, 0.0 }
0x1546   :  { %3299 = vadd.xlane.f32.xlu1 %v3298_v62 }
0x1549   :  { %v7235_v59 = vpop.eup %7234 }
0x154a   :  { %v3307_v37 = vsel %vm504_vm6, %v7235_v59, 0.0 }
0x154b   :  { %3308 = vadd.xlane.f32.xlu0 %v3307_v37 }
0x1557   :  { %3502 = vrot.lane.b32.xlu1 %v7868_v47, %s7343_s5 }
0x1561   :  { %3500 = vrot.lane.b32.xlu0 %v7866_v48, %s7343_s5 }
0x1565   :  { %3591 = vrot.lane.b32.xlu0 %v7882_v57, %s7343_s5 }
0x156e   :  { %v3282_v2 = vpop.xlane.xlu1 %3281 }
0x156f   :  { %v3288_v16 = vsub.f32 %v3272_v9, %v3282_v2 }
0x1571   :  { %v3294_v39 = vmul.f32 1.442695, %v3288_v16 }
0x1572   :  { %v7096_v40 = vpop.permute.xlu1 %7095 }
0x1573   :  { %7236 = vpow2.f32 %v3294_v39  ;;  %v7098_v41 = vunpack.i.h.bf16 %v7096_v40  ;;  %v7097_v42 = vunpack.i.l.bf16 %v7096_v40 }
0x1575   :  { %v6878_v43 = vpack.c.bf16 %v7098_v41, %v7097_v42 }
0x1577   :  { %6880 = vmatprep.subr.msk.bf16.mxu1 %vm7469_vm4, %v6878_v43 }
0x157d   :  { %v7237_v7 = vpop.eup %7236 }
0x157e   :  { %v3304_v53 = vsel %vm500_vm5, %v7237_v7, 0.0 }
0x157f   :  { %3305 = vadd.xlane.f32.xlu1 %v3304_v53 }
0x1590   :  { %3593 = vrot.lane.b32.xlu1 %v7880_v36, %s7343_s5 }
0x15d2   :  { %v3303_v60 = vpop.xlane.xlu0 %3302 }
0x15d3   :  { %7238 = vrcp.f32 %v3303_v60  ;;  %v3300_v6 = vpop.xlane.xlu1 %3299 }
0x15d4   :  { %7240 = vrcp.f32 %v3300_v6 }
0x15d7   :  { %v3503_v44 = vpop.permute.xlu1 %3502 }
0x15d8   :  { %v3309_v52 = vpop.xlane.xlu0 %3308 }
0x15d9   :  { %7242 = vrcp.f32 %v3309_v52 }
0x15dc   :  { %v3501_v13 = vpop.permute.xlu0 %3500 }
0x15dd   :  { %v7239_v63 = vpop.eup %7238 }
0x15de   :  { %v7241_v15 = vpop.eup %7240  ;;  %v3315_v9 = vmul.f32 %v7239_v63, %v7231_v34 }
0x15df   :  { %v3314_v38 = vmul.f32 %v7241_v15, %v7233_v35 }
0x15e0   :  { %v3592_v18 = vpop.permute.xlu0 %3591 }
0x15e1   :  { %6536 = vmatprep.mubr.msk.f32.mxu0 %vm500_vm5, %v3314_v38 }
0x15e2   :  { %6537 = vmatmul.mubr.msk.f32.vlgmr.msra.gmra.mrb[44].mxu0 %vm500_vm5, %v3315_v9 }
0x15e3   :  { %6877 = vmatpush3.bf16.xpose.msk.msra.mxu0 %vm7469_vm4, %v6872_v4  ;;  %6550 = vmatprep.mubr.msk.f32.mxu0 %vm324_vm3, %v3501_v13  ;;  %v7243_v45 = vpop.eup %7242 }
0x15e4   :  { %v3317_v55 = vmul.f32 %v7243_v45, %v7235_v59 }
0x15ea   :  { %6551 = vmatmul.mubr.msk.f32.vlgmr.msra.gmra.mrb[46].mxu0 %vm324_vm3, %v3503_v44 }
0x160c   :  { %v3306_v17 = vpop.xlane.xlu1 %3305 }
0x160d   :  { %7244 = vrcp.f32 %v3306_v17 }
0x1610   :  { %v3594_v19 = vpop.permute.xlu1 %3593 }
0x1617   :  { %v7245_v11 = vpop.eup %7244 }
0x1618   :  { %v3316_v12 = vmul.f32 %v7245_v11, %v7237_v7 }
0x161a   :  { %6543 = vmatprep.mubr.msk.f32.mxu1 %vm500_vm5, %v3316_v12 }
0x161b   :  { %6544 = vmatmul.mubr.msk.f32.vlgmr.msra.gmra.mrb[46].mxu1 %vm500_vm5, %v3317_v55 }
0x161c   :  { %6883 = vmatpush3.bf16.xpose.msk.msra.mxu1 %vm7469_vm4, %v6878_v43  ;;  %6557 = vmatprep.mubr.msk.f32.mxu1 %vm324_vm3, %v3592_v18 }
0x1623   :  { %6558 = vmatmul.mubr.msk.f32.vlgmr.msra.gmra.mrb[48].mxu1 %vm324_vm3, %v3594_v19 }
0x16b5   :  { %v7952_v5 = vpop.f32.mrb[44].mxu0 }
0x16b6   :  { %v7954_v21 = vpop.f32.mrb[45].mxu0 }
0x16bd   :  { %v6552_v22 = vpop.f32.mrb[46].mxu0 }
0x16be   :  { %v3683_v25 = vmul.f32 0.35355338, %v6552_v22  ;;  %v3582_v29 = vpop.f32.mrb[47].mxu0 }
0x16bf   :  { %v3682_v28 = vmul.f32 0.35355338, %v3582_v29 }
0x16c0   :  { %v3689_v49 = vsel %vm504_vm6, %v3683_v25, -inf }
0x16c1   :  { %3690 = vmax.xlane.f32.xlu1 %v3689_v49  ;;  %v3686_v30 = vsel %vm500_vm5, %v3682_v28, -inf }
0x16c2   :  { %3687 = vmax.xlane.f32.xlu0 %v3686_v30 }
0x16ee   :  { %v6545_v14 = vpop.f32.mrb[46].mxu1 }
0x16ef   :  { %v7958_v31 = vpop.f32.mrb[47].mxu1 }
0x16f0   :  { %v3499_v50 = vcombine.high %v7958_v31, %v7958_v31  ;;  %v4002_v4 = vcombine.low %v7952_v5, %v7958_v31 }
0x16f2   :  { %v7964_v33 = vcombine.low %v3499_v50, %v6545_v14 }
0x16f6   :  { %v6559_v34 = vpop.f32.mrb[48].mxu1 }
0x16f7   :  { %v3673_v35 = vpop.f32.mrb[49].mxu1  ;;  %v3685_v62 = vmul.f32 0.35355338, %v6559_v34 }
0x16f8   :  { %v3684_v56 = vmul.f32 0.35355338, %v3673_v35 }
0x16f9   :  { %v3695_v37 = vsel %vm504_vm6, %v3685_v62, -inf }
0x16fa   :  { %v3692_v59 = vsel %vm500_vm5, %v3684_v56, -inf }
0x16fb   :  { %3693 = vmax.xlane.f32.xlu0 %v3692_v59 }
0x16ff   :  { %3696 = vmax.xlane.f32.xlu0 %v3695_v37 }
0x174e   :  { %v3691_v2 = vpop.xlane.xlu1 %3690 }
0x174f   :  { %v3699_v16 = vsub.f32 %v3683_v25, %v3691_v2  ;;  %v3688_v39 = vpop.xlane.xlu0 %3687 }
0x1750   :  { %v3698_v40 = vsub.f32 %v3682_v28, %v3688_v39 }
0x1751   :  { %v3704_v41 = vmul.f32 1.442695, %v3699_v16 }
0x1752   :  { %v3702_v42 = vmul.f32 1.442695, %v3698_v40  ;;  %v2966_v40 = vld [vmem:[#allocation2 + $0xe8] sm:$0xff] }
0x1753   :  { %7246 = vpow2.f32 %v3704_v41 }
0x1754   :  { %7248 = vpow2.f32 %v3702_v42 }
0x175d   :  { %v7247_v43 = vpop.eup %7246 }
0x175e   :  { %v7249_v7 = vpop.eup %7248  ;;  %v3713_v53 = vsel %vm504_vm6, %v7247_v43, 0.0 }
0x175f   :  { %3714 = vadd.xlane.f32.xlu0 %v3713_v53  ;;  %v3710_v60 = vsel %vm500_vm5, %v7249_v7, 0.0  ;;  %v3498_v53 = vcombine.high %v7954_v21, %v7954_v21 }
0x1760   :  { %3711 = vadd.xlane.f32.xlu1 %v3710_v60 }
0x1788   :  { %v3694_v6 = vpop.xlane.xlu0 %3693 }
0x1789   :  { %v3700_v52 = vsub.f32 %v3684_v56, %v3694_v6  ;;  %v2965_v6 = vld [vmem:[#allocation2 + $0xe0] sm:$0xff] }
0x178b   :  { %v3706_v63 = vmul.f32 1.442695, %v3700_v52 }
0x178c   :  { %v3697_v15 = vpop.xlane.xlu0 %3696 }
0x178d   :  { %7250 = vpow2.f32 %v3706_v63  ;;  %v3701_v38 = vsub.f32 %v3685_v62, %v3697_v15  ;;  %v4001_v63 = vcombine.low %v7954_v21, %v3498_v53 }
0x178f   :  { %v3708_v9 = vmul.f32 1.442695, %v3701_v38 }
0x1791   :  { %7252 = vpow2.f32 %v3708_v9 }
0x1797   :  { %v7251_v13 = vpop.eup %7250 }
0x1798   :  { %v3716_v44 = vsel %vm500_vm5, %v7251_v13, 0.0 }
0x1799   :  { %3717 = vadd.xlane.f32.xlu1 %v3716_v44 }
0x179b   :  { %v7253_v17 = vpop.eup %7252 }
0x179c   :  { %v3719_v45 = vsel %vm504_vm6, %v7253_v17, 0.0 }
0x179d   :  { %3720 = vadd.xlane.f32.xlu0 %v3719_v45 }
0x17aa   :  { %7100 = vrot.lane.b32.xlu1 %v7874_v32, %s7345_s6 }
0x17ae   :  { %7110 = vrot.lane.b32.xlu1 %v7874_v32, %s7346_s7 }
0x17b2   :  { %7115 = vrot.lane.b32.xlu1 %v7888_v58, %s7346_s7 }
0x17b3   :  { %7105 = vrot.lane.b32.xlu0 %v7888_v58, %s7345_s6 }
0x17b6   :  { %4092 = vrot.lane.b32.xlu1 %v7868_v47, %s7347_s8 }
0x17b7   :  { %4090 = vrot.lane.b32.xlu0 %v7866_v48, %s7347_s8 }
0x17ba   :  { %4183 = vrot.lane.b32.xlu1 %v7880_v36, %s7347_s8 }
0x17bb   :  { %4181 = vrot.lane.b32.xlu0 %v7882_v57, %s7347_s8 }
0x17ec   :  { %v3715_v18 = vpop.xlane.xlu0 %3714 }
0x17ed   :  { %v3712_v11 = vpop.xlane.xlu1 %3711 }
0x17ee   :  { %7254 = vrcp.f32 %v3712_v11 }
0x17ef   :  { %7256 = vrcp.f32 %v3715_v18 }
0x17f8   :  { %v7255_v12 = vpop.eup %7254 }
0x17f9   :  { %v3726_v55 = vmul.f32 %v7255_v12, %v7249_v7  ;;  %v7257_v30 = vpop.eup %7256 }
0x17fa   :  { %v3727_v37 = vmul.f32 %v7257_v30, %v7247_v43 }
0x17fb   :  { %6564 = vmatprep.mubr.msk.f32.mxu0 %vm500_vm5, %v3726_v55 }
0x1826   :  { %v3718_v19 = vpop.xlane.xlu1 %3717 }
0x1827   :  { %7258 = vrcp.f32 %v3718_v19 }
0x182a   :  { %v7101_v22 = vpop.permute.xlu1 %7100  ;;  %v3721_v25 = vpop.xlane.xlu0 %3720 }
0x182b   :  { %v7103_v29 = vunpack.i.h.bf16 %v7101_v22  ;;  %v7102_v28 = vunpack.i.l.bf16 %v7101_v22  ;;  %7260 = vrcp.f32 %v3721_v25 }
0x182d   :  { %v6884_v49 = vpack.c.bf16 %v7103_v29, %v7102_v28 }
0x182e   :  { %v7111_v14 = vpop.permute.xlu1 %7110  ;;  %v7106_v50 = vpop.permute.xlu0 %7105 }
0x182f   :  { %v7108_v34 = vunpack.i.h.bf16 %v7106_v50  ;;  %v7107_v35 = vunpack.i.l.bf16 %v7106_v50  ;;  %6886 = vmatprep.subr.msk.bf16.mxu0 %vm7504_vm9, %v6884_v49  ;;  %v7113_v56 = vunpack.i.h.bf16 %v7111_v14  ;;  %v7112_v62 = vunpack.i.l.bf16 %v7111_v14 }
0x1830   :  { %6889 = vmatpush3.bf16.msk.msra.mxu0 %vm7504_vm9, %v6884_v49 }
0x1831   :  { %v7259_v59 = vpop.eup %7258  ;;  %v6890_v2 = vpack.c.bf16 %v7108_v34, %v7107_v35  ;;  %6574 = vmatprep.subr.mxu0 %v7339_v1  ;;  %v6896_v41 = vpack.c.bf16 %v7113_v56, %v7112_v62 }
0x1832   :  { %v7116_v16 = vpop.permute.xlu1 %7115  ;;  %v3728_v39 = vmul.f32 %v7259_v59, %v7251_v13  ;;  %v4091_v15 = vpop.permute.xlu0 %4090 }
0x1833   :  { %6565 = vmatmul.mubr.msk.f32.vlgmr.msra.gmra.mrb[48].mxu0 %vm500_vm5, %v3727_v37  ;;  %6892 = vmatprep.subr.msk.bf16.mxu1 %vm7504_vm9, %v6890_v2  ;;  %v7118_v42 = vunpack.i.h.bf16 %v7116_v16  ;;  %v7117_v7 = vunpack.i.l.bf16 %v7116_v16 }
0x1834   :  { %6895 = vmatpush3.bf16.msk.msra.mxu1 %vm7504_vm9, %v6890_v2  ;;  %6571 = vmatprep.mubr.msk.f32.mxu1 %vm500_vm5, %v3728_v39 }
0x1835   :  { %v7261_v43 = vpop.eup %7260  ;;  %6575 = vmatpush3.msra.mxu0 %v2966_v40  ;;  %6585 = vmatprep.subr.mxu1 %v7339_v1  ;;  %v6902_v52 = vpack.c.bf16 %v7118_v42, %v7117_v7 }
0x1836   :  { %v3729_v60 = vmul.f32 %v7261_v43, %v7253_v17  ;;  %6898 = vmatprep.subr.msk.bf16.mxu0 %vm7469_vm4, %v6896_v41  ;;  %6576 = vmatprep.mubr.msk.f32.mxu0 %vm7338_vm0, %v7339_v1  ;;  %v4093_v38 = vpop.permute.xlu1 %4092  ;;  %v4182_v21 = vpop.permute.xlu0 %4181 }
0x1838   :  { %6572 = vmatmul.mubr.msk.f32.vlgmr.msra.gmra.mrb[50].mxu1 %vm500_vm5, %v3729_v60 }
0x1839   :  { %6586 = vmatpush3.msra.mxu1 %v2965_v6  ;;  %6587 = vmatprep.mubr.msk.f32.mxu1 %vm7338_vm0, %v7339_v1 }
0x183a   :  { %6904 = vmatprep.subr.msk.bf16.mxu1 %vm7469_vm4, %v6902_v52  ;;  %v4184_v9 = vpop.permute.xlu1 %4183 }
0x183c   :  { %6588 = vmatmul.mubr.msk.f32.vlgmr.msra.gmra.mrb[52].mxu1 %vm324_vm3, %v4001_v63 }
0x183d   :  { %6590 = vmatprep.mubr.msk.f32.mxu1 %vm7338_vm0, %v7339_v1 }
0x1840   :  { %6907 = vmatpush3.bf16.xpose.msk.msra.mxu1 %vm7469_vm4, %v6902_v52 }
0x1841   :  { %6591 = vmatmul.mubr.msk.f32.gmra.mrb[54].mxu1 %vm324_vm3, %v4002_v4 }
0x1842   :  { %6593 = vmatprep.mubr.msk.f32.mxu1 %vm7338_vm0, %v7339_v1 }
0x1845   :  { %6594 = vmatmul.mubr.msk.f32.gmra.mrb[56].mxu1 %vm324_vm3, %v7964_v33 }
0x1846   :  { %6607 = vmatprep.mubr.msk.f32.mxu1 %vm324_vm3, %v4182_v21 }
0x1849   :  { %6608 = vmatmul.mubr.msk.f32.vlgmr.msra.gmra.mrb[58].mxu1 %vm324_vm3, %v4184_v9 }
0x1906   :  { %v6566_v13 = vpop.f32.mrb[48].mxu0 }
0x1907   :  { %v3809_v44 = vpop.f32.mrb[49].mxu0 }
0x1908   :  { %v3910_v17 = vcombine.high %v3809_v44, %v3809_v44 }
0x190a   :  { %v3912_v45 = vcombine.low %v3809_v44, %v3910_v17 }
0x190b   :  { %v6573_v5 = vpop.f32.mrb[50].mxu1 }
0x190c   :  { %v3897_v31 = vpop.f32.mrb[51].mxu1  ;;  %6577 = vmatmul.mubr.msk.f32.vlgmr.msra.gmra.mrb[50].mxu0 %vm324_vm3, %v3912_v45 }
0x190d   :  { %v3911_v4 = vcombine.high %v3897_v31, %v3897_v31  ;;  %v3913_v11 = vcombine.low %v6566_v13, %v3897_v31  ;;  %6901 = vmatpush3.bf16.xpose.msk.msra.mxu0 %vm7469_vm4, %v6896_v41  ;;  %6579 = vmatprep.mubr.msk.f32.mxu0 %vm7338_vm0, %v7339_v1 }
0x190f   :  { %v3914_v33 = vcombine.low %v3911_v4, %v6573_v5  ;;  %v4076_v12 = vpop.f32.mrb[52].mxu1 }
0x1910   :  { %6580 = vmatmul.mubr.msk.f32.gmra.mrb[52].mxu0 %vm324_vm3, %v3913_v11  ;;  %v6589_v55 = vpop.f32.mrb[53].mxu1 }
0x1911   :  { %6582 = vmatprep.mubr.msk.f32.mxu0 %vm7338_vm0, %v7339_v1 }
0x1914   :  { %v4081_v18 = vpop.f32.mrb[54].mxu1  ;;  %6583 = vmatmul.mubr.msk.f32.gmra.mrb[54].mxu0 %vm324_vm3, %v3914_v33 }
0x1915   :  { %v6592_v19 = vpop.f32.mrb[55].mxu1  ;;  %6600 = vmatprep.mubr.msk.f32.mxu0 %vm324_vm3, %v4091_v15 }
0x1918   :  { %v4086_v22 = vpop.f32.mrb[56].mxu1  ;;  %6601 = vmatmul.mubr.msk.f32.vlgmr.msra.gmra.mrb[56].mxu0 %vm324_vm3, %v4093_v38 }
0x1919   :  { %v6595_v25 = vpop.f32.mrb[57].mxu1 }
0x191c   :  { %v6609_v29 = vpop.f32.mrb[58].mxu1 }
0x191d   :  { %v4263_v28 = vpop.f32.mrb[59].mxu1  ;;  %v4275_v7 = vmul.f32 0.35355338, %v6609_v29 }
0x191e   :  { %v4274_v41 = vmul.f32 0.35355338, %v4263_v28 }
0x191f   :  { %v4285_v53 = vsel %vm504_vm6, %v4275_v7, -inf }
0x1920   :  { %v4282_v43 = vsel %vm500_vm5, %v4274_v41, -inf }
0x19df   :  { %v3987_v49 = vpop.f32.mrb[50].mxu0 }
0x19e0   :  { %v8039_v30 = vadd.f32 %v4076_v12, %v3987_v49  ;;  %v6578_v14 = vpop.f32.mrb[51].mxu0 }
0x19e3   :  { %v3992_v50 = vpop.f32.mrb[52].mxu0 }
0x19e4   :  { %v8041_v34 = vadd.f32 %v4081_v18, %v3992_v50  ;;  %v6581_v35 = vpop.f32.mrb[53].mxu0 }
0x19e7   :  { %v3997_v56 = vpop.f32.mrb[54].mxu0 }
0x19e8   :  { %v8043_v62 = vadd.f32 %v4086_v22, %v3997_v56  ;;  %v6584_v59 = vpop.f32.mrb[55].mxu0 }
0x19eb   :  { %v6602_v37 = vpop.f32.mrb[56].mxu0 }
0x19ec   :  { %v4273_v2 = vmul.f32 0.35355338, %v6602_v37  ;;  %v4172_v16 = vpop.f32.mrb[57].mxu0 }
0x19ed   :  { %v4272_v39 = vmul.f32 0.35355338, %v4172_v16 }
0x19ee   :  { %v4279_v40 = vsel %vm504_vm6, %v4273_v2, -inf }
0x19ef   :  { %4280 = vmax.xlane.f32.xlu1 %v4279_v40  ;;  %v4276_v42 = vsel %vm500_vm5, %v4272_v39, -inf }
0x19f0   :  { %4277 = vmax.xlane.f32.xlu0 %v4276_v42 }
0x19f4   :  { %4283 = vmax.xlane.f32.xlu0 %v4282_v43 }
0x19f8   :  { %4286 = vmax.xlane.f32.xlu0 %v4285_v53 }
0x1a7c   :  { %v4281_v52 = vpop.xlane.xlu1 %4280 }
0x1a7d   :  { %v4278_v60 = vpop.xlane.xlu0 %4277  ;;  %v4289_v38 = vsub.f32 %v4273_v2, %v4281_v52  ;;  %v2967_v52 = vld [vmem:[#allocation2 + $0xf0] sm:$0xff] }
0x1a7e   :  { %v4288_v6 = vsub.f32 %v4272_v39, %v4278_v60 }
0x1a7f   :  { %v4294_v17 = vmul.f32 1.442695, %v4289_v38 }
0x1a80   :  { %v4292_v21 = vmul.f32 1.442695, %v4288_v6 }
0x1a81   :  { %v4284_v63 = vpop.xlane.xlu0 %4283 }
0x1a82   :  { %v4290_v15 = vsub.f32 %v4274_v41, %v4284_v63 }
0x1a84   :  { %v4296_v9 = vmul.f32 1.442695, %v4290_v15 }
0x1a85   :  { %v4287_v13 = vpop.xlane.xlu0 %4286 }
0x1a86   :  { %7262 = vpow2.f32 %v4296_v9  ;;  %v4291_v44 = vsub.f32 %v4275_v7, %v4287_v13 }
0x1a87   :  { %7264 = vpow2.f32 %v4292_v21 }
0x1a88   :  { %v4298_v45 = vmul.f32 1.442695, %v4291_v44 }
0x1a8a   :  { %7266 = vpow2.f32 %v4298_v45 }
0x1a8b   :  { %7268 = vpow2.f32 %v4294_v17 }
0x1a90   :  { %v7263_v5 = vpop.eup %7262 }
0x1a91   :  { %v4306_v31 = vsel %vm500_vm5, %v7263_v5, 0.0  ;;  %v7265_v4 = vpop.eup %7264 }
0x1a92   :  { %4307 = vadd.xlane.f32.xlu1 %v4306_v31  ;;  %v4300_v33 = vsel %vm500_vm5, %v7265_v4, 0.0 }
0x1a94   :  { %v7267_v11 = vpop.eup %7266 }
0x1a95   :  { %v4309_v12 = vsel %vm504_vm6, %v7267_v11, 0.0  ;;  %v7269_v55 = vpop.eup %7268 }
0x1a96   :  { %4301 = vadd.xlane.f32.xlu1 %v4300_v33  ;;  %4310 = vadd.xlane.f32.xlu0 %v4309_v12  ;;  %v4303_v18 = vsel %vm504_vm6, %v7269_v55, 0.0 }
0x1a9a   :  { %4304 = vadd.xlane.f32.xlu0 %v4303_v18 }
0x1aa7   :  { %7120 = vrot.lane.b32.xlu1 %v7874_v32, %s7348_s9 }
0x1aab   :  { %7130 = vrot.lane.b32.xlu1 %v7874_v32, %s7349_s10 }
0x1aaf   :  { %7135 = vrot.lane.b32.xlu1 %v7888_v58, %s7349_s10 }
0x1ab0   :  { %7125 = vrot.lane.b32.xlu0 %v7888_v58, %s7348_s9 }
0x1ab3   :  { %4596 = vrot.lane.b32.xlu1 %v7868_v47, %s7350_s11 }
0x1ab4   :  { %4594 = vrot.lane.b32.xlu0 %v7866_v48, %s7350_s11 }
0x1ab7   :  { %4687 = vrot.lane.b32.xlu1 %v7880_v36, %s7350_s11 }
0x1ab8   :  { %4685 = vrot.lane.b32.xlu0 %v7882_v57, %s7350_s11 }
0x1b1f   :  { %v4308_v19 = vpop.xlane.xlu1 %4307 }
0x1b20   :  { %7270 = vrcp.f32 %v4308_v19 }
0x1b23   :  { %v4302_v22 = vpop.xlane.xlu1 %4301  ;;  %v4311_v25 = vpop.xlane.xlu0 %4310 }
0x1b24   :  { %7272 = vrcp.f32 %v4302_v22 }
0x1b25   :  { %7274 = vrcp.f32 %v4311_v25 }
0x1b27   :  { %v7121_v29 = vpop.permute.xlu1 %7120  ;;  %v4305_v28 = vpop.xlane.xlu0 %4304 }
0x1b28   :  { %v7123_v49 = vunpack.i.h.bf16 %v7121_v29  ;;  %v7122_v14 = vunpack.i.l.bf16 %v7121_v29  ;;  %7276 = vrcp.f32 %v4305_v28 }
0x1b2a   :  { %v7271_v47 = vpop.eup %7270  ;;  %v6908_v50 = vpack.c.bf16 %v7123_v49, %v7122_v14 }
0x1b2b   :  { %v7131_v48 = vpop.permute.xlu1 %7130  ;;  %v7126_v35 = vpop.permute.xlu0 %7125  ;;  %v4318_v56 = vmul.f32 %v7271_v47, %v7263_v5 }
0x1b2c   :  { %v7133_v36 = vunpack.i.h.bf16 %v7131_v48  ;;  %v7132_v59 = vunpack.i.l.bf16 %v7131_v48  ;;  %v7128_v37 = vunpack.i.h.bf16 %v7126_v35  ;;  %v7127_v57 = vunpack.i.l.bf16 %v7126_v35  ;;  %6910 = vmatprep.subr.msk.bf16.mxu0 %vm7504_vm9, %v6908_v50 }
0x1b2d   :  { %6913 = vmatpush3.bf16.msk.msra.mxu0 %vm7504_vm9, %v6908_v50  ;;  %6621 = vmatprep.mubr.msk.f32.mxu1 %vm500_vm5, %v4318_v56 }
0x1b2e   :  { %v7273_v2 = vpop.eup %7272  ;;  %v6914_v16 = vpack.c.bf16 %v7128_v37, %v7127_v57  ;;  %6624 = vmatprep.subr.mxu0 %v7339_v1  ;;  %v6920_v42 = vpack.c.bf16 %v7133_v36, %v7132_v59 }
0x1b2f   :  { %v7275_v39 = vpop.eup %7274  ;;  %v7136_v40 = vpop.permute.xlu1 %7135  ;;  %v4316_v41 = vmul.f32 %v7273_v2, %v7265_v4 }
0x1b30   :  { %6916 = vmatprep.subr.msk.bf16.mxu1 %vm7504_vm9, %v6914_v16  ;;  %v7138_v7 = vunpack.i.h.bf16 %v7136_v40  ;;  %v7137_v43 = vunpack.i.l.bf16 %v7136_v40  ;;  %v4319_v60 = vmul.f32 %v7275_v39, %v7267_v11  ;;  %v4595_v63 = vpop.permute.xlu0 %4594 }
0x1b31   :  { %6614 = vmatprep.mubr.msk.f32.mxu0 %vm500_vm5, %v4316_v41  ;;  %6919 = vmatpush3.bf16.msk.msra.mxu1 %vm7504_vm9, %v6914_v16 }
0x1b32   :  { %v7277_v53 = vpop.eup %7276  ;;  %6922 = vmatprep.subr.msk.bf16.mxu1 %vm7469_vm4, %v6920_v42  ;;  %v6926_v15 = vpack.c.bf16 %v7138_v7, %v7137_v43 }
0x1b33   :  { %v4317_v6 = vmul.f32 %v7277_v53, %v7269_v55  ;;  %v4597_v38 = vpop.permute.xlu1 %4596 }
0x1b34   :  { %6622 = vmatmul.mubr.msk.f32.vlgmr.msra.gmra.mrb[60].mxu1 %vm500_vm5, %v4319_v60  ;;  %v4686_v55 = vpop.permute.xlu0 %4685 }
0x1b35   :  { %6615 = vmatmul.mubr.msk.f32.vlgmr.msra.gmra.mrb[58].mxu0 %vm500_vm5, %v4317_v6  ;;  %6639 = vmatprep.mubr.msk.f32.mxu1 %vm324_vm3, %v4595_v63 }
0x1b36   :  { %6625 = vmatpush3.msra.mxu0 %v2967_v52  ;;  %6626 = vmatprep.mubr.msk.f32.mxu0 %vm7338_vm0, %v7339_v1 }
0x1b37   :  { %6928 = vmatprep.subr.msk.bf16.mxu0 %vm7469_vm4, %v6926_v15  ;;  %v4688_v22 = vpop.permute.xlu1 %4687 }
0x1b3a   :  { %6925 = vmatpush3.bf16.xpose.msk.msra.mxu1 %vm7469_vm4, %v6920_v42 }
0x1b41   :  { %6640 = vmatmul.mubr.msk.f32.vlgmr.msra.gmra.mrb[62].mxu1 %vm324_vm3, %v4597_v38 }
0x1c07   :  { %v6623_v21 = vpop.f32.mrb[60].mxu1 }
0x1c08   :  { %v6616_v9 = vpop.f32.mrb[58].mxu0  ;;  %v4487_v13 = vpop.f32.mrb[61].mxu1 }
0x1c09   :  { %v4501_v44 = vcombine.high %v4487_v13, %v4487_v13  ;;  %v4503_v17 = vcombine.low %v6616_v9, %v4487_v13  ;;  %v4399_v45 = vpop.f32.mrb[59].mxu0 }
0x1c0a   :  { %v4500_v5 = vcombine.high %v4399_v45, %v4399_v45 }
0x1c0b   :  { %v4504_v31 = vcombine.low %v4501_v44, %v6623_v21 }
0x1c0c   :  { %v4502_v4 = vcombine.low %v4399_v45, %v4500_v5 }
0x1c0e   :  { %6627 = vmatmul.mubr.msk.f32.vlgmr.msra.gmra.mrb[60].mxu0 %vm324_vm3, %v4502_v4 }
0x1c0f   :  { %6931 = vmatpush3.bf16.xpose.msk.msra.mxu0 %vm7469_vm4, %v6926_v15  ;;  %6629 = vmatprep.mubr.msk.f32.mxu0 %vm7338_vm0, %v7339_v1  ;;  %vm5865_vm4 = vcmask 1045504  }
0x1c10   :  { %6663 = vmatprep.subr.mxu0 %v7339_v1 }
0x1c12   :  { %6630 = vmatmul.mubr.msk.f32.gmra.mrb[62].mxu0 %vm324_vm3, %v4503_v17 }
0x1c13   :  { %6632 = vmatprep.mubr.msk.f32.mxu0 %vm7338_vm0, %v7339_v1 }
0x1c14   :  { %v6641_v11 = vpop.f32.mrb[62].mxu1 }
0x1c15   :  { %v4777_v33 = vmul.f32 0.35355338, %v6641_v11  ;;  %v4676_v12 = vpop.f32.mrb[63].mxu1 }
0x1c16   :  { %v4776_v18 = vmul.f32 0.35355338, %v4676_v12  ;;  %6633 = vmatmul.mubr.msk.f32.gmra.mrb[64].mxu0 %vm324_vm3, %v4504_v31 }
0x1c17   :  { %6646 = vmatprep.mubr.msk.f32.mxu0 %vm324_vm3, %v4686_v55  ;;  %v4783_v20 = vsel %vm504_vm6, %v4777_v33, -inf }
0x1c18   :  { %4784 = vmax.xlane.f32.xlu1 %v4783_v20  ;;  %v4780_v19 = vsel %vm500_vm5, %v4776_v18, -inf }
0x1c19   :  { %4781 = vmax.xlane.f32.xlu0 %v4780_v19 }
0x1c1a   :  { %6647 = vmatmul.mubr.msk.f32.vlgmr.msra.gmra.mrb[66].mxu0 %vm324_vm3, %v4688_v22 }
0x1c1b   :  { %6665 = vmatprep.mubr.msk.f32.mxu0 %vm7338_vm0, %v7339_v1 }
0x1ca5   :  { %v4785_v47 = vpop.xlane.xlu1 %4784 }
0x1ca6   :  { %v4782_v25 = vpop.xlane.xlu0 %4781  ;;  %v4793_v56 = vsub.f32 %v4777_v33, %v4785_v47 }
0x1ca7   :  { %v4792_v29 = vsub.f32 %v4776_v18, %v4782_v25 }
0x1ca8   :  { %v4798_v57 = vmul.f32 1.442695, %v4793_v56 }
0x1ca9   :  { %v4796_v28 = vmul.f32 1.442695, %v4792_v29 }
0x1cab   :  { %7278 = vpow2.f32 %v4796_v28 }
0x1cac   :  { %7280 = vpow2.f32 %v4798_v57 }
0x1cb5   :  { %v7279_v49 = vpop.eup %7278 }
0x1cb6   :  { %v4804_v14 = vsel %vm500_vm5, %v7279_v49, 0.0  ;;  %v7281_v53 = vpop.eup %7280 }
0x1cb7   :  { %4805 = vadd.xlane.f32.xlu1 %v4804_v14  ;;  %v2968_v14 = vld [vmem:[#allocation2 + $0xf8] sm:$0xff] }
0x1cb8   :  { %6664 = vmatpush3.msra.mxu0 %v2968_v14 }
0x1cb9   :  { %6950 = vmatprep.subr.bf16.mxu0 %v7337_v0 }
0x1ce1   :  { %v4577_v50 = vpop.f32.mrb[60].mxu0 }
0x1ce2   :  { %v8110_v48 = vadd.f32 %v4577_v50, %v8039_v30  ;;  %v6628_v35 = vpop.f32.mrb[61].mxu0 }
0x1ce5   :  { %v4582_v36 = vpop.f32.mrb[62].mxu0 }
0x1ce6   :  { %v8113_v59 = vadd.f32 %v4582_v36, %v8041_v34  ;;  %v6631_v37 = vpop.f32.mrb[63].mxu0  ;;  %v4807_v34 = vsel %vm504_vm6, %v7281_v53, 0.0 }
0x1ce9   :  { %v4587_v2 = vpop.f32.mrb[64].mxu0 }
0x1cea   :  { %v8116_v16 = vadd.f32 %v4587_v2, %v8043_v62  ;;  %v6634_v39 = vpop.f32.mrb[65].mxu0 }
0x1ceb   :  { %v6037_v39 = vld [vmem:[#allocation2 + $0x16e] ss:$0 sm:$0xff] }
0x1ced   :  { %v6648_v40 = vpop.f32.mrb[66].mxu0 }
0x1cee   :  { %v4767_v41 = vpop.f32.mrb[67].mxu0  ;;  %v4779_v7 = vmul.f32 0.35355338, %v6648_v40 }
0x1cef   :  { %v4778_v42 = vmul.f32 0.35355338, %v4767_v41 }
0x1cf0   :  { %v4789_v43 = vsel %vm504_vm6, %v4779_v7, -inf }
0x1cf1   :  { %v4786_v30 = vsel %vm500_vm5, %v4778_v42, -inf }
0x1cf2   :  { %4787 = vmax.xlane.f32.xlu0 %v4786_v30 }
0x1cf6   :  { %4790 = vmax.xlane.f32.xlu0 %v4789_v43 }
0x1cfa   :  { %4808 = vadd.xlane.f32.xlu0 %v4807_v34 }
0x1d44   :  { %v4806_v60 = vpop.xlane.xlu1 %4805 }
0x1d45   :  { %7282 = vrcp.f32 %v4806_v60 }
0x1d4f   :  { %v7283_v62 = vpop.eup %7282 }
0x1d50   :  { %v4820_v6 = vmul.f32 %v7283_v62, %v7279_v49 }
0x1d52   :  { %6653 = vmatprep.mubr.msk.f32.mxu1 %vm500_vm5, %v4820_v6 }
0x1d7f   :  { %v4788_v52 = vpop.xlane.xlu0 %4787 }
0x1d80   :  { %v4794_v63 = vsub.f32 %v4778_v42, %v4788_v52 }
0x1d82   :  { %v4800_v15 = vmul.f32 1.442695, %v4794_v63 }
0x1d83   :  { %v4791_v38 = vpop.xlane.xlu0 %4790 }
0x1d84   :  { %7284 = vpow2.f32 %v4800_v15  ;;  %v4795_v21 = vsub.f32 %v4779_v7, %v4791_v38 }
0x1d86   :  { %v4802_v9 = vmul.f32 1.442695, %v4795_v21 }
0x1d87   :  { %v4809_v5 = vpop.xlane.xlu0 %4808 }
0x1d88   :  { %7286 = vpow2.f32 %v4802_v9 }
0x1d89   :  { %7288 = vrcp.f32 %v4809_v5 }
0x1d8e   :  { %v7285_v13 = vpop.eup %7284 }
0x1d8f   :  { %v4810_v44 = vsel %vm500_vm5, %v7285_v13, 0.0 }
0x1d90   :  { %4811 = vadd.xlane.f32.xlu1 %v4810_v44 }
0x1d92   :  { %v7287_v17 = vpop.eup %7286 }
0x1d93   :  { %v4813_v45 = vsel %vm504_vm6, %v7287_v17, 0.0  ;;  %v7289_v18 = vpop.eup %7288 }
0x1d94   :  { %4814 = vadd.xlane.f32.xlu0 %v4813_v45 }
0x1da1   :  { %7140 = vrot.lane.b32.xlu1 %v7874_v32, %s7351_s12 }
0x1daa   :  { %7145 = vrot.lane.b32.xlu0 %v7888_v58, %s7351_s12  ;;  %v4821_v58 = vmul.f32 %v7289_v18, %v7281_v53 }
0x1e1d   :  { %v4812_v31 = vpop.xlane.xlu1 %4811 }
0x1e1e   :  { %7290 = vrcp.f32 %v4812_v31 }
0x1e21   :  { %v7141_v4 = vpop.permute.xlu1 %7140  ;;  %v4815_v11 = vpop.xlane.xlu0 %4814 }
0x1e22   :  { %v7143_v33 = vunpack.i.h.bf16 %v7141_v4  ;;  %v7142_v12 = vunpack.i.l.bf16 %v7141_v4  ;;  %7292 = vrcp.f32 %v4815_v11 }
0x1e24   :  { %v6932_v55 = vpack.c.bf16 %v7143_v33, %v7142_v12 }
0x1e25   :  { %v7146_v20 = vpop.permute.xlu0 %7145 }
0x1e26   :  { %v7148_v19 = vunpack.i.h.bf16 %v7146_v20  ;;  %v7147_v22 = vunpack.i.l.bf16 %v7146_v20  ;;  %6934 = vmatprep.subr.msk.bf16.mxu1 %vm7504_vm9, %v6932_v55 }
0x1e27   :  { %6937 = vmatpush3.bf16.msk.msra.mxu1 %vm7504_vm9, %v6932_v55 }
0x1e28   :  { %v7291_v32 = vpop.eup %7290  ;;  %v6938_v25 = vpack.c.bf16 %v7148_v19, %v7147_v22 }
0x1e29   :  { %v4822_v29 = vmul.f32 %v7291_v32, %v7285_v13 }
0x1e2a   :  { %6654 = vmatmul.mubr.msk.f32.vlgmr.msra.gmra.mrb[64].mxu1 %vm500_vm5, %v4821_v58  ;;  %6940 = vmatprep.subr.msk.bf16.mxu1 %vm7504_vm9, %v6938_v25 }
0x1e2b   :  { %6943 = vmatpush3.bf16.msk.msra.mxu1 %vm7504_vm9, %v6938_v25  ;;  %6660 = vmatprep.mubr.msk.f32.mxu1 %vm500_vm5, %v4822_v29 }
0x1e2c   :  { %v7293_v28 = vpop.eup %7292  ;;  %6944 = vmatprep.subr.bf16.mxu1 %v7337_v0 }
0x1e2d   :  { %v4823_v49 = vmul.f32 %v7293_v28, %v7287_v17 }
0x1e2f   :  { %6661 = vmatmul.mubr.msk.f32.vlgmr.msra.gmra.mrb[66].mxu1 %vm500_vm5, %v4823_v49 }
0x1e30   :  { %6682 = vmatprep.mubr.msk.f32.mxu1 %vm7338_vm0, %v7339_v1 }
0x1efd   :  { %v6655_v47 = vpop.f32.mrb[64].mxu1 }
0x1efe   :  { %v4903_v50 = vpop.f32.mrb[65].mxu1 }
0x1eff   :  { %v5004_v35 = vcombine.high %v4903_v50, %v4903_v50 }
0x1f01   :  { %v5006_v61 = vcombine.low %v4903_v50, %v5004_v35 }
0x1f02   :  { %v6662_v56 = vpop.f32.mrb[66].mxu1 }
0x1f03   :  { %v4991_v36 = vpop.f32.mrb[67].mxu1  ;;  %6666 = vmatmul.mubr.msk.f32.vlgmr.msra.gmra.mrb[68].mxu0 %vm324_vm3, %v5006_v61 }
0x1f04   :  { %v5005_v37 = vcombine.high %v4991_v36, %v4991_v36  ;;  %v5007_v57 = vcombine.low %v6655_v47, %v4991_v36  ;;  %6668 = vmatprep.mubr.msk.f32.mxu0 %vm7338_vm0, %v7339_v1 }
0x1f06   :  { %v5008_v2 = vcombine.low %v5005_v37, %v6662_v56 }
0x1f07   :  { %6669 = vmatmul.mubr.msk.f32.gmra.mrb[70].mxu0 %vm324_vm3, %v5007_v57 }
0x1f08   :  { %6671 = vmatprep.mubr.msk.f32.mxu0 %vm7338_vm0, %v7339_v1 }
0x1f0b   :  { %6672 = vmatmul.mubr.msk.f32.gmra.mrb[72].mxu0 %vm324_vm3, %v5008_v2 }
0x1f0c   :  { %6707 = vmatprep.mubr.msk.f32.mxu0 %vm7338_vm0, %v7339_v1 }
0x1fd6   :  { %v5081_v40 = vpop.f32.mrb[68].mxu0 }
0x1fd7   :  { %v5095_v41 = vadd.f32 %v5081_v40, %v8110_v48  ;;  %v6667_v42 = vpop.f32.mrb[69].mxu0  ;;  %v2970_v40 = vld [vmem:[#allocation2 + $0x108] sm:$0xff] }
0x1fd8   :  { %v2971_v42 = vld [vmem:[#allocation2 + $0x110] sm:$0xff] }
0x1fd9   :  { %v5102_v7 = vadd.f32 %v6037_v39, %v5095_v41 }
0x1fda   :  { %v5086_v30 = vpop.f32.mrb[70].mxu0 }
0x1fdb   :  { %v5108_v43 = vcombine.high %v5102_v7, %v5102_v7  ;;  %v5096_v53 = vadd.f32 %v5086_v30, %v8113_v59  ;;  %v6670_v34 = vpop.f32.mrb[71].mxu0  ;;  %v5114_v60 = vadd.f32 %v5102_v7, %v7839_v10  ;;  %v2972_v7 = vld [vmem:[#allocation2 + $0x118] sm:$0xff] }
0x1fdc   :  { %v6948_v30 = vpack.c.bf16 %v2972_v7, %v2971_v42  ;;  %v2975_v34 = vld [vmem:[#allocation2 + $0x130] sm:$0xff] }
0x1fdd   :  { %v5103_v62 = vadd.f32 %v6037_v39, %v5096_v53  ;;  %v5115_v6 = vadd.f32 %v5108_v43, %v7841_v51  ;;  %v2973_v43 = vld [vmem:[#allocation2 + $0x120] sm:$0xff]  ;;  %v2974_v53 = vld [vmem:[#allocation2 + $0x128] sm:$0xff] }
0x1fde   :  { %v5091_v52 = vpop.f32.mrb[72].mxu0 }
0x1fdf   :  { %v5109_v63 = vcombine.high %v5103_v62, %v5103_v62  ;;  %v5097_v15 = vadd.f32 %v5091_v52, %v8116_v16  ;;  %v6673_v38 = vpop.f32.mrb[73].mxu0  ;;  %v5126_v21 = vcombine.low %v5114_v60, %v5115_v6  ;;  %v5116_v48 = vadd.f32 %v5103_v62, %v7850_v3  ;;  %v2976_v62 = vld [vmem:[#allocation2 + $0x138] sm:$0xff]  ;;  %v2977_v52 = vld [vmem:[#allocation2 + $0x140] sm:$0xff] }
0x1fe1   :  { %v5104_v9 = vadd.f32 %v6037_v39, %v5097_v15  ;;  %v5132_v13 = vsel %vm47_vm1, %v5126_v21, 0.0  ;;  %v5117_v44 = vadd.f32 %v5109_v63, %v7852_v8  ;;  %v2969_v39 = vld [vmem:[#allocation2 + $0x100] sm:$0xff]  ;;  %v2978_v63 = vld [vmem:[#allocation2 + $0x148] sm:$0xff] }
0x1fe2   :  { %5133 = vadd.xlane.f32.xlu1 %v5132_v13  ;;  %v6945_v41 = vpack.c.bf16 %v2970_v40, %v2969_v39  ;;  %v6957_v15 = vpack.c.bf16 %v2978_v63, %v2977_v52 }
0x1fe3   :  { %v5110_v59 = vcombine.high %v5104_v9, %v5104_v9  ;;  %v5127_v17 = vcombine.low %v5116_v48, %v5117_v44  ;;  %v5118_v10 = vadd.f32 %v5104_v9, %v7857_v26 }
0x1fe4   :  { %6946 = vmatpush3.bf16.msra.mxu1 %v6945_v41  ;;  %v6040_v41 = vld [vmem:[#allocation2 + $0x171] ss:$0 sm:$0xff] }
0x1fe5   :  { %v5135_v51 = vsel %vm47_vm1, %v5127_v17, 0.0  ;;  %v5119_v45 = vadd.f32 %v5110_v59, %v7859_v27  ;;  %6947 = vmatprep.subr.bf16.mxu1 %v7337_v0 }
0x1fe6   :  { %5136 = vadd.xlane.f32.xlu0 %v5135_v51  ;;  %v6038_v51 = vld [vmem:[#allocation2 + $0x16f] ss:$0 sm:$0xff] }
0x1fe7   :  { %v5128_v16 = vcombine.low %v5118_v10, %v5119_v45 }
0x1fe8   :  { %6949 = vmatpush3.bf16.msra.mxu1 %v6948_v30 }
0x1fe9   :  { %v5138_v5 = vsel %vm47_vm1, %v5128_v16, 0.0  ;;  %v6039_v16 = vld [vmem:[#allocation2 + $0x170] ss:$0 sm:$0xff] }
0x1fea   :  { %5139 = vadd.xlane.f32.xlu1 %v5138_v5 }
0x206f   :  { %v5134_v3 = vpop.xlane.xlu1 %5133 }
0x2070   :  { %v5141_v31 = vmul.f32 0.03125, %v5134_v3 }
0x2072   :  { %v5153_v4 = vrot.slane %v5141_v31, %v7751_v46  ;;  %v5160_v8 = vrot.slane %v5141_v31, %v7754_v54 }
0x2073   :  { %v5137_v11 = vpop.xlane.xlu0 %5136 }
0x2074   :  { %v8166_v33 = vsub.f32 %v5114_v60, %v5153_v4  ;;  %v8168_v12 = vsub.f32 %v5115_v6, %v5160_v8  ;;  %v5142_v26 = vmul.f32 0.03125, %v5137_v11  ;;  %v6951_v60 = vpack.c.bf16 %v2974_v53, %v2973_v43 }
0x2075   :  { %v6954_v6 = vpack.c.bf16 %v2976_v62, %v2975_v34  ;;  %v5312_v8 = vcombine.high %v6039_v16, %v6039_v16 }
0x2076   :  { %v5167_v55 = vrot.slane %v5142_v26, %v7751_v46  ;;  %v5174_v27 = vrot.slane %v5142_v26, %v7754_v54  ;;  %v5201_v18 = vmul.f32 %v8166_v33, %v8166_v33  ;;  %v5202_v20 = vmul.f32 %v8168_v12, %v8168_v12  ;;  %6952 = vmatpush3.bf16.msra.mxu0 %v6951_v60 }
0x2077   :  { %v5140_v19 = vpop.xlane.xlu1 %5139  ;;  %6953 = vmatprep.subr.bf16.mxu0 %v7337_v0 }
0x2078   :  { %v8176_v22 = vsub.f32 %v5116_v48, %v5167_v55  ;;  %v8178_v32 = vsub.f32 %v5117_v44, %v5174_v27  ;;  %v5143_v58 = vmul.f32 0.03125, %v5140_v19  ;;  %v5213_v25 = vcombine.low %v5201_v18, %v5202_v20 }
0x207a   :  { %v5181_v29 = vrot.slane %v5143_v58, %v7751_v46  ;;  %v5188_v28 = vrot.slane %v5143_v58, %v7754_v54  ;;  %v5219_v49 = vsel %vm47_vm1, %v5213_v25, 0.0  ;;  %v5203_v14 = vmul.f32 %v8176_v22, %v8176_v22  ;;  %6955 = vmatpush3.bf16.msra.mxu0 %v6954_v6 }
0x207b   :  { %5220 = vadd.xlane.f32.xlu0 %v5219_v49  ;;  %v5204_v47 = vmul.f32 %v8178_v32, %v8178_v32  ;;  %6956 = vmatprep.subr.bf16.mxu0 %v7337_v0 }
0x207c   :  { %v8187_v50 = vsub.f32 %v5118_v10, %v5181_v29  ;;  %v8189_v35 = vsub.f32 %v5119_v45, %v5188_v28 }
0x207d   :  { %v5214_v61 = vcombine.low %v5203_v14, %v5204_v47 }
0x207e   :  { %v5205_v56 = vmul.f32 %v8187_v50, %v8187_v50  ;;  %v5206_v36 = vmul.f32 %v8189_v35, %v8189_v35  ;;  %6958 = vmatpush3.bf16.msra.mxu0 %v6957_v15 }
0x207f   :  { %v5222_v37 = vsel %vm47_vm1, %v5214_v61, 0.0  ;;  %6959 = vmatprep.subr.bf16.mxu0 %v7337_v0  ;;  %v5299_v0 = vcombine.high %v6038_v51, %v6038_v51 }
0x2080   :  { %5223 = vadd.xlane.f32.xlu1 %v5222_v37  ;;  %v5215_v57 = vcombine.low %v5205_v56, %v5206_v36 }
0x2082   :  { %v5225_v2 = vsel %vm47_vm1, %v5215_v57, 0.0 }
0x2083   :  { %5226 = vadd.xlane.f32.xlu0 %v5225_v2 }
0x2108   :  { %v5221_v38 = vpop.xlane.xlu0 %5220 }
0x2109   :  { %v5228_v21 = vmul.f32 0.03125, %v5221_v38  ;;  %v6044_v38 = vld [vmem:[#allocation2 + $0x172] ss:$0 sm:$0xff] }
0x210b   :  { %v5231_v48 = vadd.f32 1e-05, %v5228_v21 }
0x210d   :  { %7294 = vrsqrt.f32 %v5231_v48  ;;  %v5224_v9 = vpop.xlane.xlu1 %5223 }
0x210e   :  { %v5229_v13 = vmul.f32 0.03125, %v5224_v9 }
0x2110   :  { %v5232_v44 = vadd.f32 1e-05, %v5229_v13  ;;  %v5227_v59 = vpop.xlane.xlu0 %5226 }
0x2111   :  { %v5230_v17 = vmul.f32 0.03125, %v5227_v59 }
0x2112   :  { %7296 = vrsqrt.f32 %v5232_v44 }
0x2113   :  { %v5233_v10 = vadd.f32 1e-05, %v5230_v17 }
0x2115   :  { %7298 = vrsqrt.f32 %v5233_v10 }
0x2117   :  { %v7295_v45 = vpop.eup %7294 }
0x2118   :  { %v5246_v5 = vrot.slane %v7295_v45, %v7751_v46  ;;  %v5253_v3 = vrot.slane %v7295_v45, %v7754_v54 }
0x211a   :  { %v5288_v31 = vmul.f32 %v5246_v5, %v8166_v33  ;;  %v5289_v4 = vmul.f32 %v5253_v3, %v8168_v12 }
0x211c   :  { %v7297_v11 = vpop.eup %7296  ;;  %v5301_v26 = vmul.f32 %v6038_v51, %v5288_v31  ;;  %v5302_v55 = vmul.f32 %v5299_v0, %v5289_v4 }
0x211d   :  { %v5260_v27 = vrot.slane %v7297_v11, %v7751_v46  ;;  %v5267_v18 = vrot.slane %v7297_v11, %v7754_v54 }
0x211e   :  { %v5314_v20 = vadd.f32 %v6039_v16, %v5301_v26  ;;  %v5315_v19 = vadd.f32 %v5312_v8, %v5302_v55 }
0x211f   :  { %v7299_v58 = vpop.eup %7298  ;;  %v5290_v25 = vmul.f32 %v5260_v27, %v8176_v22  ;;  %v5291_v29 = vmul.f32 %v5267_v18, %v8178_v32 }
0x2120   :  { %v5274_v28 = vrot.slane %v7299_v58, %v7751_v46  ;;  %v5281_v33 = vrot.slane %v7299_v58, %v7754_v54  ;;  %v5330_v12 = vcombine.low %v5314_v20, %v5315_v19 }
0x2121   :  { %v5303_v49 = vmul.f32 %v6038_v51, %v5290_v25  ;;  %v5304_v14 = vmul.f32 %v5299_v0, %v5291_v29 }
0x2122   :  { %6683 = vmatmul.mubr.msk.f32.vlgmr.msra.gmra.mrb[68].mxu1 %vm47_vm1, %v5330_v12  ;;  %v5292_v47 = vmul.f32 %v5274_v28, %v8187_v50  ;;  %v5293_v61 = vmul.f32 %v5281_v33, %v8189_v35  ;;  %v2979_v50 = vld [vmem:[#allocation2 + $0x150] sm:$0xff]  ;;  %v2980_v35 = vld [vmem:[#allocation2 + $0x158] sm:$0xff] }
0x2123   :  { %6685 = vmatprep.mubr.msk.f32.mxu1 %vm7338_vm0, %v7339_v1  ;;  %v5316_v56 = vadd.f32 %v6039_v16, %v5303_v49  ;;  %v5317_v22 = vadd.f32 %v5312_v8, %v5304_v14  ;;  %v6960_v40 = vpack.c.bf16 %v2980_v35, %v2979_v50 }
0x2124   :  { %v5305_v36 = vmul.f32 %v6038_v51, %v5292_v47  ;;  %v5306_v32 = vmul.f32 %v5299_v0, %v5293_v61 }
0x2125   :  { %v5331_v37 = vcombine.low %v5316_v56, %v5317_v22  ;;  %6961 = vmatpush3.bf16.msra.mxu0 %v6960_v40 }
0x2126   :  { %v5318_v57 = vadd.f32 %v6039_v16, %v5305_v36  ;;  %v5319_v2 = vadd.f32 %v5312_v8, %v5306_v32 }
0x2127   :  { %6686 = vmatmul.mubr.msk.f32.gmra.mrb[70].mxu1 %vm47_vm1, %v5331_v37 }
0x2128   :  { %6688 = vmatprep.mubr.msk.f32.mxu1 %vm7338_vm0, %v7339_v1  ;;  %v5332_v39 = vcombine.low %v5318_v57, %v5319_v2 }
0x212b   :  { %6689 = vmatmul.mubr.msk.f32.gmra.mrb[72].mxu1 %vm47_vm1, %v5332_v39 }
0x21f5   :  { %v5405_v42 = vpop.f32.mrb[68].mxu1 }
0x21f6   :  { %v5406_v7 = vadd.f32 %v6040_v41, %v5405_v42  ;;  %v6684_v30 = vpop.f32.mrb[69].mxu1 }
0x21f8   :  { %v5419_v43 = vmax.f32 %v5406_v7, 0.0 }
0x21fa   :  { %v5410_v53 = vpop.f32.mrb[70].mxu1  ;;  %6708 = vmatmul.mubr.msk.f32.vlgmr.msra.gmra.mrb[74].mxu0 %vm2656_vm10, %v5419_v43 }
0x21fb   :  { %v5411_v34 = vadd.f32 %v6040_v41, %v5410_v53  ;;  %v6687_v60 = vpop.f32.mrb[71].mxu1  ;;  %6710 = vmatprep.mubr.msk.f32.mxu0 %vm7338_vm0, %v7339_v1 }
0x21fd   :  { %v5420_v62 = vmax.f32 %v5411_v34, 0.0 }
0x21fe   :  { %v5415_v6 = vpop.f32.mrb[72].mxu1 }
0x21ff   :  { %v5416_v52 = vadd.f32 %v6040_v41, %v5415_v6  ;;  %v6690_v63 = vpop.f32.mrb[73].mxu1  ;;  %6711 = vmatmul.mubr.msk.f32.gmra.mrb[76].mxu0 %vm2656_vm10, %v5420_v62  ;;  %v5709_v6 = vld [vmem:[#allocation2 + $0x164] sm:$0x1] }
0x2200   :  { %6713 = vmatprep.mubr.msk.f32.mxu0 %vm7338_vm0, %v7339_v1  ;;  %6966 = vpush %v5709_v6 }
0x2201   :  { %v5421_v15 = vmax.f32 %v5416_v52, 0.0 }
0x2203   :  { %6714 = vmatmul.mubr.msk.f32.gmra.mrb[78].mxu0 %vm2656_vm10, %v5421_v15 }
0x2231   :  { %s6967_s13 = spop %6966 }
0x22cd   :  { %v5501_v21 = vpop.f32.mrb[74].mxu0 }
0x22ce   :  { %v5502_v48 = vadd.f32 %v6044_v38, %v5501_v21  ;;  %v6709_v9 = vpop.f32.mrb[75].mxu0 }
0x22d0   :  { %v5518_v13 = vcombine.high %v5502_v48, %v5502_v48  ;;  %v5524_v44 = vadd.f32 %v5502_v48, %v5314_v20 }
0x22d2   :  { %v5525_v59 = vadd.f32 %v5518_v13, %v5315_v19  ;;  %v5506_v17 = vpop.f32.mrb[76].mxu0 }
0x22d3   :  { %v5507_v10 = vadd.f32 %v6044_v38, %v5506_v17  ;;  %v6712_v51 = vpop.f32.mrb[77].mxu0 }
0x22d4   :  { %v5536_v45 = vcombine.low %v5524_v44, %v5525_v59 }
0x22d5   :  { %v5519_v16 = vcombine.high %v5507_v10, %v5507_v10  ;;  %v5526_v0 = vadd.f32 %v5507_v10, %v5316_v56 }
0x22d6   :  { %v5511_v5 = vpop.f32.mrb[78].mxu0  ;;  %v5542_v3 = vsel %vm47_vm1, %v5536_v45, 0.0  ;;  %v6049_v45 = vld [vmem:[#allocation2 + $0x174] ss:$0 sm:$0xff] }
0x22d7   :  { %v5527_v31 = vadd.f32 %v5519_v16, %v5317_v22  ;;  %v5512_v4 = vadd.f32 %v6044_v38, %v5511_v5  ;;  %v6715_v8 = vpop.f32.mrb[79].mxu0  ;;  %5543 = vadd.xlane.f32.xlu1 %v5542_v3 }
0x22d8   :  { %v6050_v8 = vld [vmem:[#allocation2 + $0x163] ss:$0 sm:$0xff] }
0x22d9   :  { %v5520_v11 = vcombine.high %v5512_v4, %v5512_v4  ;;  %v5537_v26 = vcombine.low %v5526_v0, %v5527_v31  ;;  %v5528_v55 = vadd.f32 %v5512_v4, %v5318_v57 }
0x22db   :  { %v5529_v27 = vadd.f32 %v5520_v11, %v5319_v2  ;;  %v5545_v18 = vsel %vm47_vm1, %v5537_v26, 0.0  ;;  %v5715_v26 = vcombine.high %v6050_v8, %v6050_v8 }
0x22dc   :  { %5546 = vadd.xlane.f32.xlu0 %v5545_v18 }
0x22dd   :  { %v5538_v20 = vcombine.low %v5528_v55, %v5529_v27 }
0x22df   :  { %v5548_v19 = vsel %vm47_vm1, %v5538_v20, 0.0 }
0x22e0   :  { %5549 = vadd.xlane.f32.xlu1 %v5548_v19 }
0x2364   :  { %v5544_v58 = vpop.xlane.xlu1 %5543 }
0x2365   :  { %v5551_v25 = vmul.f32 0.03125, %v5544_v58 }
0x2367   :  { %v5563_v29 = vrot.slane %v5551_v25, %v7751_v46  ;;  %v5570_v28 = vrot.slane %v5551_v25, %v7754_v54 }
0x2369   :  { %v5605_v33 = vsub.f32 %v5524_v44, %v5563_v29  ;;  %v5606_v12 = vsub.f32 %v5525_v59, %v5570_v28  ;;  %v5547_v49 = vpop.xlane.xlu0 %5546  ;;  %v6048_v59 = vld [vmem:[#allocation2 + $0x173] ss:$0 sm:$0xff] }
0x236a   :  { %v5552_v14 = vmul.f32 0.03125, %v5547_v49  ;;  %v5691_v51 = vcombine.high %v6048_v59, %v6048_v59 }
0x236b   :  { %v5611_v47 = vmul.f32 %v5605_v33, %v5605_v33  ;;  %v5612_v61 = vmul.f32 %v5606_v12, %v5606_v12 }
0x236c   :  { %v5577_v56 = vrot.slane %v5552_v14, %v7751_v46  ;;  %v5584_v22 = vrot.slane %v5552_v14, %v7754_v54 }
0x236d   :  { %v5550_v36 = vpop.xlane.xlu1 %5549  ;;  %v5623_v32 = vcombine.low %v5611_v47, %v5612_v61 }
0x236e   :  { %v5607_v37 = vsub.f32 %v5526_v0, %v5577_v56  ;;  %v5608_v57 = vsub.f32 %v5527_v31, %v5584_v22  ;;  %v5553_v2 = vmul.f32 0.03125, %v5550_v36  ;;  %v5702_v31 = vcombine.high %v6049_v45, %v6049_v45 }
0x236f   :  { %v5629_v39 = vsel %vm47_vm1, %v5623_v32, 0.0  ;;  %v5742_v36 = vand.u32 127, %v145_v23  ;;  %v5737_v32 = vstv %s6967_s13  ;;  %v7354_v23 = vmov 0  }
0x2370   :  { %v5614_v50 = vmul.f32 %v5608_v57, %v5608_v57  ;;  %v5591_v35 = vrot.slane %v5553_v2, %v7751_v46  ;;  %v5598_v40 = vrot.slane %v5553_v2, %v7754_v54  ;;  %5630 = vadd.xlane.f32.xlu0 %v5629_v39  ;;  %v5613_v41 = vmul.f32 %v5607_v37, %v5607_v37 }
0x2371   :  { %v5747_v57 = vsub.s32 %v5742_v36, %v7412_v24  ;;  %7149 = vset.pattern.permute.xlu1 %v7354_v23  ;;  %7150 = vset.pattern.permute.xlu0 %v7354_v23 }
0x2372   :  { %v5609_v42 = vsub.f32 %v5528_v55, %v5591_v35  ;;  %v5610_v7 = vsub.f32 %v5529_v27, %v5598_v40  ;;  %v5624_v30 = vcombine.low %v5613_v41, %v5614_v50 }
0x2374   :  { %v5632_v43 = vsel %vm47_vm1, %v5624_v30, 0.0  ;;  %v5615_v53 = vmul.f32 %v5609_v42, %v5609_v42  ;;  %v5616_v34 = vmul.f32 %v5610_v7, %v5610_v7  ;;  %v5767_v30 = vsub.s32 1, %v7412_v24 }
0x2375   :  { %5633 = vadd.xlane.f32.xlu1 %v5632_v43 }
0x2376   :  { %v5625_v60 = vcombine.low %v5615_v53, %v5616_v34 }
0x2378   :  { %v5635_v62 = vsel %vm47_vm1, %v5625_v60, 0.0 }
0x2379   :  { %5636 = vadd.xlane.f32.xlu0 %v5635_v62 }
0x23fd   :  { %v5631_v52 = vpop.xlane.xlu0 %5630 }
0x23fe   :  { %v5638_v63 = vmul.f32 0.03125, %v5631_v52 }
0x2400   :  { %v5641_v15 = vadd.f32 1e-05, %v5638_v63 }
0x2402   :  { %7300 = vrsqrt.f32 %v5641_v15  ;;  %v5634_v38 = vpop.xlane.xlu1 %5633 }
0x2403   :  { %v5639_v21 = vmul.f32 0.03125, %v5634_v38 }
0x2405   :  { %v5642_v48 = vadd.f32 1e-05, %v5639_v21 }
0x2406   :  { %v5637_v9 = vpop.xlane.xlu0 %5636 }
0x2407   :  { %7302 = vrsqrt.f32 %v5642_v48  ;;  %v5640_v13 = vmul.f32 0.03125, %v5637_v9 }
0x2409   :  { %v5643_v44 = vadd.f32 1e-05, %v5640_v13 }
0x240b   :  { %7304 = vrsqrt.f32 %v5643_v44 }
0x240c   :  { %v7301_v17 = vpop.eup %7300 }
0x240d   :  { %v5656_v10 = vrot.slane %v7301_v17, %v7754_v54 }
0x240f   :  { %v5682_v16 = vmul.f32 %v5656_v10, %v5606_v12 }
0x2411   :  { %v7303_v5 = vpop.eup %7302  ;;  %v5693_v0 = vmul.f32 %v5691_v51, %v5682_v16 }
0x2412   :  { %v5663_v3 = vrot.slane %v7303_v5, %v7751_v46 }
0x2413   :  { %v5704_v20 = vadd.f32 %v5702_v31, %v5693_v0 }
0x2414   :  { %v5683_v4 = vmul.f32 %v5663_v3, %v5607_v37 }
0x2415   :  { %v7305_v11 = vpop.eup %7304  ;;  %v5717_v29 = vmul.f32 %v6050_v8, %v5704_v20 }
0x2416   :  { %v5670_v55 = vrot.slane %v7305_v11, %v7751_v46  ;;  %v5677_v27 = vrot.slane %v7305_v11, %v7754_v54  ;;  %v5694_v18 = vmul.f32 %v6048_v59, %v5683_v4  ;;  %v7306_v4 = vld [vmem:[%s8282_s0 + $0x10] sm:$0xff]  ;;  %v7307_v11 = vld [vmem:[%s8282_s0 + $0x18] sm:$0xf] }
0x2418   :  { %v5705_v19 = vadd.f32 %v6049_v45, %v5694_v18  ;;  %v5684_v58 = vmul.f32 %v5670_v55, %v5609_v42  ;;  %v5685_v25 = vmul.f32 %v5677_v27, %v5610_v7  ;;  %v5763_v7 = vsub.s32 0, %v7412_v24  ;;  %v7308_v55 = vld [vmem:[%s8282_s0] sm:$0xff] }
0x2419   :  { %v5825_v27 = vrot.slane %v7308_v55, 4 }
0x241a   :  { %v5718_v28 = vmul.f32 %v5715_v26, %v5705_v19  ;;  %v5695_v33 = vmul.f32 %v6048_v59, %v5684_v58  ;;  %v5696_v12 = vmul.f32 %v5691_v51, %v5685_v25 }
0x241c   :  { %v5725_v49 = vcombine.low %v5717_v29, %v5718_v28  ;;  %v5706_v14 = vadd.f32 %v6049_v45, %v5695_v33  ;;  %v5707_v47 = vadd.f32 %v5702_v31, %v5696_v12 }
0x241e   :  { %v5729_v61 = vsel %vm47_vm1, %v5725_v49, 0.0  ;;  %v5719_v56 = vmul.f32 %v6050_v8, %v5706_v14  ;;  %v5720_v22 = vmul.f32 %v5715_v26, %v5707_v47  ;;  %v5828_v8 = vrot.slane %v7306_v4, 4 }
0x241f   :  { %5730 = vadd.xlane.f32.xlu1 %v5729_v61  ;;  %v5829_v26 = vrot.slane %v7307_v11, 4 }
0x2420   :  { %v5726_v46 = vcombine.low %v5719_v56, %v5720_v22 }
0x2421   :  { %v5830_v20 = vsel %vm557_vm7, %v5828_v8, %v5829_v26 }
0x2422   :  { %v5732_v54 = vsel %vm47_vm1, %v5726_v46, 0.0 }
0x2423   :  { %5733 = vadd.xlane.f32.xlu0 %v5732_v54 }
0x2439   :  { %5774 = vbcast.lane.b32.xlu0 %v5742_v36, 256 }
0x24ac   :  { %v5731_v37 = vpop.xlane.xlu1 %5730 }
0x24ad   :  { %v5739_v2 = vadd.f32 %v5737_v32, %v5731_v37 }
0x24af   :  { %v5748_v35 = vrot.slane %v5739_v2, %v5747_v57 }
0x24b0   :  { %v5734_v39 = vpop.xlane.xlu0 %5733 }
0x24b1   :  { %v5740_v50 = vadd.f32 %v5737_v32, %v5734_v39 }
0x24b3   :  { %v5752_v40 = vrot.slane %v5740_v50, %v5747_v57 }
0x24b4   :  { %v5775_v60 = vpop.permute.xlu0 %5774 }
0x24b5   :  { %v8248_v41 = vsel %vm5753_vm11, %v5752_v40, %v5748_v35 }
0x24b6   :  { %v5757_v42 = vsel %vm5756_vm12, %v8248_v41, -inf }
0x24b7   :  { %5758 = vmax.xlane.f32.xlu1 %v5757_v42 }
0x2544   :  { %v5759_v43 = vpop.xlane.xlu1 %5758 }
0x2545   :  { %v5764_v53 = vrot.slane %v5759_v43, %v5763_v7  ;;  %v5768_v34 = vrot.slane %v5759_v43, %v5767_v30 }
0x2547   :  { %vm5771_vm13 = vcmp.eq.f32.partialorder %v5739_v2, %v5764_v53  ;;  %vm5772_vm14 = vcmp.eq.f32.partialorder %v5740_v50, %v5768_v34 }
0x2548   :  { %v5776_v62 = vsel %vm5771_vm13, %v5775_v60, 8  ;;  %v5777_v6 = vsel %vm5772_vm14, %v5775_v60, 8 }
0x2549   :  { %5779 = vperm.xlu1 %7149, %v5776_v62  }
0x254d   :  { %5782 = vperm.xlu1 %7149, %v5777_v6  }
0x25c8   :  { %v5780_v52 = vpop.permute.xlu1 %5779 }
0x25c9   :  { %v5787_v15 = vrot.slane %v5780_v52, %v5747_v57 }
0x25cc   :  { %v5783_v63 = vpop.permute.xlu1 %5782 }
0x25cd   :  { %v5791_v38 = vrot.slane %v5783_v63, %v5747_v57  ;;  %v5855_v57 = vsel %vm324_vm3, %v8248_v41, 0.0 }
0x25ce   :  { %v5860_v40 = vrot.slane %v5855_v57, 4 }
0x25cf   :  { %v5792_v21 = vsel %vm5753_vm11, %v5791_v38, %v5787_v15 }
0x25d0   :  { %v5793_v48 = vsel %vm5756_vm12, %v5792_v21, 2147483647 }
0x25d1   :  { %v5795_v9 = vshra.s32 %v5793_v48, 16  ;;  %v5794_v13 = vand.u32 65535, %v5793_v48 }
0x25d3   :  { %v5797_v24 = vcvt.s32.f32 %v5795_v9  ;;  %v5796_v59 = vcvt.s32.f32 %v5794_v13 }
0x25d5   :  { %5798 = vmin.xlane.f32.xlu0 %v5797_v24 }
0x2662   :  { %v5799_v44 = vpop.xlane.xlu0 %5798 }
0x2663   :  { %vm5800_vm15 = vcmp.eq.f32.partialorder %v5797_v24, %v5799_v44  ;;  %v5805_v10 = vcvt.f32.s32 %v5799_v44 }
0x2664   :  { %v5801_v17 = vsel %vm5800_vm15, %v5796_v59, inf }
0x2665   :  { %5802 = vmin.xlane.f32.xlu1 %v5801_v17  ;;  %v5806_v45 = vshll.u32 %v5805_v10, 16 }
0x26f2   :  { %v5803_v51 = vpop.xlane.xlu1 %5802 }
0x26f3   :  { %v5804_v16 = vcvt.f32.s32 %v5803_v51 }
0x26f5   :  { %v5807_v5 = vadd.s32 %v5806_v45, %v5804_v16 }
0x26f7   :  { %vm5808_vm0 = vcmp.eq.s32.totalorder %v5742_v36, %v5807_v5 }
0x26f8   :  { %v6051_v3 = vsel %vm5808_vm0, 1.0, %v7339_v1  ;;  %v7309_v1 = vld [vmem:[%s8282_s0 + $0x8] sm:$0xf] }
0x26f9   :  { %v5821_v0 = vrot.slane %v6051_v3, %v5767_v30  ;;  %v5814_v31 = vrot.slane %v6051_v3, %v5763_v7  ;;  %v5826_v18 = vrot.slane %v7309_v1, 4  ;;  %v5854_v37 = vsel %vm324_vm3, %v6051_v3, 0.0 }
0x26fa   :  { %v5857_v50 = vrot.slane %v5854_v37, 6 }
0x26fb   :  { %5823 = vbcast.lane.b32.xlu1 %v5821_v0, 256  ;;  %5816 = vbcast.lane.b32.xlu0 %v5814_v31, 256  ;;  %v5827_v19 = vsel %vm557_vm7, %v5825_v27, %v5826_v18 }
0x276d   :  { %v5824_v58 = vpop.permute.xlu1 %5823  ;;  %v5817_v25 = vpop.permute.xlu0 %5816 }
0x276e   :  { %v5834_v29 = vmul.f32 %v5830_v20, %v5824_v58  ;;  %v5833_v28 = vmul.f32 %v5827_v19, %v5817_v25 }
0x2770   :  { %v5842_v33 = vsel %vm47_vm1, %v5834_v29, 0.0  ;;  %v5835_v12 = vsel %vm47_vm1, %v5833_v28, 0.0 }
0x2771   :  { %v5843_v49 = vrot.slane %v5842_v33, 4  ;;  %v5836_v14 = vrot.slane %v5835_v12, 4 }
0x2773   :  { %v5844_v47 = vadd.f32 %v5843_v49, %v5842_v33  ;;  %v5837_v61 = vadd.f32 %v5836_v14, %v5835_v12 }
0x2775   :  { %v5845_v56 = vrot.slane %v5844_v47, 2  ;;  %v5838_v22 = vrot.slane %v5837_v61, 2 }
0x2777   :  { %v5846_v46 = vadd.f32 %v5845_v56, %v5844_v47  ;;  %v5839_v54 = vadd.f32 %v5838_v22, %v5837_v61 }
0x2779   :  { %v5847_v36 = vrot.slane %v5846_v46, 1  ;;  %v5840_v32 = vrot.slane %v5839_v54, 1 }
0x277b   :  { %v5848_v2 = vadd.f32 %v5847_v36, %v5846_v46  ;;  %v5841_v39 = vadd.f32 %v5840_v32, %v5839_v54 }
0x277d   :  { %v5851_v35 = vsel %vm5753_vm11, %v5848_v2, %v5841_v39 }
0x277e   :  { %v5853_v42 = vsel %vm47_vm1, %v5851_v35, 0.0 }
0x277f   :  { %v5863_v23 = vsel %vm5862_vm2, %v5853_v42, %v5857_v50 }
0x2780   :  { %v5864_v7 = vsel %vm557_vm7, %v5863_v23, %v5860_v40 }
0x2781   :  { %v5866_v30 = vsel %vm5865_vm4, %v5864_v7, 0.0 }
0x2782   :  { %5867 = vst [vmem:[%s8284_s2] sm:$0xff] %v5866_v30 }
0x2783   :  { %5872 = vsyncpa [#allocation3], 1 }

</bundles_post_ra>
